<compile_context>
chip_gen: v7x
topology: tpu7x:2x2x1
jax: 0.10.0
libtpu: 0.0.40
codegen_flags: <defaults>
</compile_context>

<pallas_src>
import jax
import jax.numpy as jnp
import numpy as np
from jax.experimental import pallas as pl
from jax.experimental.pallas import tpu as pltpu


def _round_up(n, m):
    return ((n + m - 1) // m) * m


# ----------------------------------------------------------------------------
# Kernel
# ----------------------------------------------------------------------------
def _lstm_value_kernel(x_ref,
                       w0x_ref, w0h_ref, b0_ref,
                       w1s_ref, b1_ref,
                       wfc_ref, bfc_ref,
                       out_ref,
                       xg0_ref):
    bb, S, D = x_ref.shape
    Hp = w0h_ref.shape[0]          # padded hidden (multiple of 128)
    Gp = 4 * Hp
    mm_dtype = w0h_ref.dtype       # matmul operand dtype (f32 or bf16)

    # --- whole-sequence layer-0 input projection: one big MXU pass -----------
    # (bb, S, D) -> time-major (S, bb, D) -> (S*bb, D); result lands in a VMEM
    # scratch so the unrolled recurrence doesn't keep (S*bb, 4Hp) live in vregs.
    x_tm = jnp.swapaxes(x_ref[...], 0, 1)
    x2d = x_tm.reshape(S * bb, D).astype(mm_dtype)
    xg0_ref[...] = (jnp.dot(x2d, w0x_ref[...],
                            preferred_element_type=jnp.float32)
                    + b0_ref[...])                         # (S*bb, 4Hp), f32

    w0h = w0h_ref[...]
    w1s = w1s_ref[...]
    # Hoist the loop-invariant bias broadcast (JAX does not CSE broadcast_in_dim,
    # so doing it inside `step` would re-emit it every unrolled iteration).
    b1b = jnp.broadcast_to(b1_ref[...], (bb, Gp))

    def lstm_gates(g, c):
        # Every slice is Hp lanes (multiple of 128) -> no sub-vreg masking.
        i = jax.nn.sigmoid(g[:, 0 * Hp:1 * Hp])
        f = jax.nn.sigmoid(g[:, 1 * Hp:2 * Hp])
        u = jnp.tanh(g[:, 2 * Hp:3 * Hp])
        o = jax.nn.sigmoid(g[:, 3 * Hp:4 * Hp])
        c_new = f * c + i * u
        h_new = o * jnp.tanh(c_new)
        return h_new, c_new

    def step(t, carry):
        h0, c0, h1, c1 = carry
        row = t * bb
        if bb % 8 == 0:
            row = pl.multiple_of(row, 8)
        # layer 0: precomputed input gates (VMEM read) + hidden matmul
        g0 = (xg0_ref[pl.ds(row, bb), :]
              + jnp.dot(h0.astype(mm_dtype), w0h,
                        preferred_element_type=jnp.float32))
        h0n, c0n = lstm_gates(g0, c0)
        # layer 1: fused [input ; hidden] @ [W_ih ; W_hh]  (one MXU push)
        inp1 = jnp.concatenate([h0n, h1], axis=1).astype(mm_dtype)   # (bb, 2Hp)
        g1 = jnp.dot(inp1, w1s, preferred_element_type=jnp.float32) + b1b
        h1n, c1n = lstm_gates(g1, c1)
        return (h0n, c0n, h1n, c1n)

    zero = jnp.zeros((bb, Hp), jnp.float32)
    # Partial unroll: LLO scheduling visibility without instruction-stream /
    # live-range blowup when S is large.
    _, _, h1, _ = jax.lax.fori_loop(0, S, step, (zero, zero, zero, zero),
                                    unroll=min(S, 8))

    # final fc on last-timestep hidden; Op is a multiple of 128 -> lane-dense store.
    out_ref[...] = (jnp.dot(h1.astype(mm_dtype), wfc_ref[...],
                            preferred_element_type=jnp.float32)
                    + bfc_ref[...])


# ----------------------------------------------------------------------------
# Wrapper
# ----------------------------------------------------------------------------
def _default_batch_block(B):
    """One fat tile per TensorCore: v5e/v6e have 1 TC (grid=(1,)), v7x has 2."""
    try:
        kind = jax.devices()[0].device_kind.lower()
    except Exception:
        kind = ""
    n_tc = 2 if "v7" in kind else 1
    bb = B // n_tc
    if n_tc > 1 and B % n_tc == 0 and bb >= 8 and bb % 8 == 0:
        return bb
    return B


def _vmem_bytes_estimate(bb, S, D, Hp, Op, x_bytes, w_bytes):
    Gp = 4 * Hp
    x_tile = 2 * bb * S * D * x_bytes                              # 2x-buffered x tile
    weights = 2 * ((D * Gp + Hp * Gp + 2 * Hp * Gp + Hp * Op) * w_bytes
                   + (Gp + Gp + Op) * 4)                           # 2x-buffered weights+biases
    xg0 = S * bb * Gp * 4                                          # f32 scratch
    out = 2 * bb * Op * 4
    live = bb * (8 * Hp + 3 * Gp) * 4                              # h/c state + gate temps
    return x_tile + weights + xg0 + out + live


def rnn_value_network_forward(x_bsd, packed, output_dim, *, batch_block=None):
    """x_bsd: (B, S, D) float32, batch_first like the PyTorch module."""
    B, S, D = x_bsd.shape
    Hp = packed["w0h"].shape[0]
    Op = packed["wfc"].shape[1]
    mm_dtype = packed["w0h"].dtype

    bb = _default_batch_block(B) if batch_block is None else batch_block
    assert B % bb == 0, "batch_block must divide batch"
    grid = (B // bb,)

    # bf16 production path: pre-cast x once in HBM -> halves the x DMA bytes.
    is_bf16 = mm_dtype == jnp.bfloat16
    x_in = x_bsd.astype(jnp.bfloat16) if is_bf16 else x_bsd
    x_bytes = 2 if is_bf16 else 4
    w_bytes = 2 if is_bf16 else 4

    est = _vmem_bytes_estimate(bb, S, D, Hp, Op, x_bytes, w_bytes)
    # Leave 2x headroom but never ask for more than ~100 MiB (v5e/v6e have
    # 128 MiB physical; a properly budgeted v7x tile stays well under 64 MiB).
    vmem_limit = int(min(max(2 * est, 32 * 1024 * 1024), 100 * 1024 * 1024))

    const = lambda b: (0, 0)   # weights/biases: resident, constant block index

    grid_spec = pltpu.PrefetchScalarGridSpec(
        num_scalar_prefetch=0,
        grid=grid,
        in_specs=[
            pl.BlockSpec((bb, S, D), lambda b: (b, 0, 0)),   # x batch tile (batch_first)
            pl.BlockSpec((D, 4 * Hp), const),                # W_ih layer0 (pre-T, padded)
            pl.BlockSpec((Hp, 4 * Hp), const),               # W_hh layer0
            pl.BlockSpec((1, 4 * Hp), const),                # bias layer0 (ih+hh)
            pl.BlockSpec((2 * Hp, 4 * Hp), const),           # stacked [W_ih;W_hh] layer1
            pl.BlockSpec((1, 4 * Hp), const),                # bias layer1 (ih+hh)
            pl.BlockSpec((Hp, Op), const),                   # fc weight (pre-T, padded)
            pl.BlockSpec((1, Op), const),                    # fc bias (padded)
        ],
        out_specs=pl.BlockSpec((bb, Op), lambda b: (b, 0)),
        scratch_shapes=[pltpu.VMEM((S * bb, 4 * Hp), jnp.float32)],  # xg0
    )

    out_padded = pl.pallas_call(
        _lstm_value_kernel,
        out_shape=jax.ShapeDtypeStruct((B, Op), jnp.float32),
        grid_spec=grid_spec,
        compiler_params=pltpu.CompilerParams(
            dimension_semantics=("parallel",),           # batch tiles are independent
            vmem_limit_bytes=vmem_limit,
        ),
    )(x_in,
      packed["w0x"], packed["w0h"], packed["b0"],
      packed["w1s"], packed["b1"],
      packed["wfc"], packed["bfc"])

    return out_padded[:, :output_dim]


# ----------------------------------------------------------------------------
# Parameters (PyTorch-shaped raw params + kernel-friendly packing)
# ----------------------------------------------------------------------------
def init_torch_like_params(key, input_dim, hidden_dim, output_dim):
    H = hidden_dim
    ks = jax.random.split(key, 10)
    bound = 1.0 / np.sqrt(H)
    u = lambda k, shape: jax.random.uniform(k, shape, jnp.float32, -bound, bound)
    return dict(
        w_ih_l0=u(ks[0], (4 * H, input_dim)),
        w_hh_l0=u(ks[1], (4 * H, H)),
        b_ih_l0=u(ks[2], (4 * H,)),
        b_hh_l0=u(ks[3], (4 * H,)),
        w_ih_l1=u(ks[4], (4 * H, H)),
        w_hh_l1=u(ks[5], (4 * H, H)),
        b_ih_l1=u(ks[6], (4 * H,)),
        b_hh_l1=u(ks[7], (4 * H,)),
        w_fc=u(ks[8], (output_dim, H)),
        b_fc=u(ks[9], (output_dim,)),
    )


def pack_params(raw, input_dim, hidden_dim, output_dim,
                matmul_dtype=jnp.float32):
    """Pre-transpose, pad (H->Hp, O->Op multiples of 128), fuse biases, stack layer-1
    weights.  Zero padding keeps padded hidden state exactly 0, so semantics match."""
    H = hidden_dim
    Hp = _round_up(H, 128)
    Op = _round_up(output_dim, 128)

    def pad_gates_w(w_t, in_real, in_pad):
        # torch layout (4H, in) -> (in_pad, 4Hp), gate order (i,f,g,o) preserved,
        # each gate block padded H -> Hp with zeros.
        w4 = w_t.reshape(4, H, in_real).astype(matmul_dtype)
        out = jnp.zeros((4, Hp, in_pad), matmul_dtype)
        out = out.at[:, :H, :in_real].set(w4)
        return out.reshape(4 * Hp, in_pad).T

    def pad_gates_b(b):
        b4 = b.reshape(4, H)
        out = jnp.zeros((4, Hp), jnp.float32)
        out = out.at[:, :H].set(b4)
        return out.reshape(1, 4 * Hp)

    w0x = pad_gates_w(raw["w_ih_l0"], input_dim, input_dim)
    w0h = pad_gates_w(raw["w_hh_l0"], H, Hp)
    b0 = pad_gates_b(raw["b_ih_l0"] + raw["b_hh_l0"])

    w1i = pad_gates_w(raw["w_ih_l1"], H, Hp)
    w1h = pad_gates_w(raw["w_hh_l1"], H, Hp)
    w1s = jnp.concatenate([w1i, w1h], axis=0)            # (2Hp, 4Hp)
    b1 = pad_gates_b(raw["b_ih_l1"] + raw["b_hh_l1"])

    wfc = jnp.zeros((Hp, Op), matmul_dtype).at[:H, :output_dim].set(
        raw["w_fc"].T.astype(matmul_dtype))
    bfc = jnp.zeros((1, Op), jnp.float32).at[0, :output_dim].set(raw["b_fc"])

    return dict(w0x=w0x, w0h=w0h, b0=b0, w1s=w1s, b1=b1, wfc=wfc, bfc=bfc)


# ----------------------------------------------------------------------------
# Pure-JAX reference of the PyTorch forward (exact semantics, unpadded)
# ----------------------------------------------------------------------------
def reference_forward(x, raw, hidden_dim):
    H = hidden_dim
    B, S, D = x.shape

    def cell(inp, h, c, w_ih, w_hh, b_ih, b_hh):
        g = inp @ w_ih.T + h @ w_hh.T + b_ih + b_hh
        i = jax.nn.sigmoid(g[:, :H])
        f = jax.nn.sigmoid(g[:, H:2 * H])
        u = jnp.tanh(g[:, 2 * H:3 * H])
        o = jax.nn.sigmoid(g[:, 3 * H:])
        c_new = f * c + i * u
        return o * jnp.tanh(c_new), c_new

    h0 = jnp.zeros((B, H)); c0 = jnp.zeros((B, H))
    h1 = jnp.zeros((B, H)); c1 = jnp.zeros((B, H))
    for t in range(S):
        h0, c0 = cell(x[:, t], h0, c0, raw["w_ih_l0"], raw["w_hh_l0"],
                      raw["b_ih_l0"], raw["b_hh_l0"])
        h1, c1 = cell(h0, h1, c1, raw["w_ih_l1"], raw["w_hh_l1"],
                      raw["b_ih_l1"], raw["b_hh_l1"])
    return h1 @ raw["w_fc"].T + raw["b_fc"]


if __name__ == "__main__":
    # batch, seq, input_dim, hidden_dim, output_dim
    B, S, D, H, O = 16, 8, 16, 32, 4

    key = jax.random.PRNGKey(0)
    k_x, k_p = jax.random.split(key)
    x = jax.random.normal(k_x, (B, S, D), jnp.float32)

    raw = init_torch_like_params(k_p, D, H, O)
    ref = reference_forward(x, raw, H)

    # f32-operand path: tight check against the PyTorch-equivalent reference.
    packed_f32 = pack_params(raw, D, H, O, matmul_dtype=jnp.float32)
    out_f32 = jax.block_until_ready(rnn_value_network_forward(x, packed_f32, O))
    np.testing.assert_allclose(np.asarray(out_f32), np.asarray(ref),
                               rtol=1e-5, atol=1e-5)

    # bf16-operand production path (full MXU rate on v5e/v6e/v7x); f32 accumulation
    # and gate math, so only per-step operand casts differ -> loose tolerance.
    packed_bf16 = pack_params(raw, D, H, O, matmul_dtype=jnp.bfloat16)
    out_bf16 = jax.block_until_ready(rnn_value_network_forward(x, packed_bf16, O))
    np.testing.assert_allclose(np.asarray(out_bf16), np.asarray(ref),
                               rtol=5e-2, atol=5e-2)

    print("KERNEL_OK")
</pallas_src>

<mosaic_0001>
module attributes {stable_mosaic.version = 11 : i64} {
  func.func @_lstm_value_kernel(%arg0: i32, %arg1: memref<16x8x16xf32, #tpu.memory_space<vmem>>, %arg2: memref<16x512xf32, #tpu.memory_space<vmem>>, %arg3: memref<128x512xf32, #tpu.memory_space<vmem>>, %arg4: memref<1x512xf32, #tpu.memory_space<vmem>>, %arg5: memref<256x512xf32, #tpu.memory_space<vmem>>, %arg6: memref<1x512xf32, #tpu.memory_space<vmem>>, %arg7: memref<128x128xf32, #tpu.memory_space<vmem>>, %arg8: memref<1x128xf32, #tpu.memory_space<vmem>>, %arg9: memref<16x128xf32, #tpu.memory_space<vmem>>, %arg10: memref<128x512xf32, #tpu.memory_space<vmem>>) attributes {dimension_semantics = [#tpu.dimension_semantics<parallel>], iteration_bounds = array<i64: 1>, scalar_prefetch = 0 : i64, scratch_operands = 1 : i64, tpu.core_type = #tpu.core_type<tc>, window_params = [{transform_indices = @transform_0, window_bounds = array<i64: 16, 8, 16>}, {pipeline_mode = #tpu.pipeline_mode<synchronous>, transform_indices = @transform_1, window_bounds = array<i64: 16, 512>}, {pipeline_mode = #tpu.pipeline_mode<synchronous>, transform_indices = @transform_2, window_bounds = array<i64: 128, 512>}, {pipeline_mode = #tpu.pipeline_mode<synchronous>, transform_indices = @transform_3, window_bounds = array<i64: 1, 512>}, {pipeline_mode = #tpu.pipeline_mode<synchronous>, transform_indices = @transform_4, window_bounds = array<i64: 256, 512>}, {pipeline_mode = #tpu.pipeline_mode<synchronous>, transform_indices = @transform_5, window_bounds = array<i64: 1, 512>}, {pipeline_mode = #tpu.pipeline_mode<synchronous>, transform_indices = @transform_6, window_bounds = array<i64: 128, 128>}, {pipeline_mode = #tpu.pipeline_mode<synchronous>, transform_indices = @transform_7, window_bounds = array<i64: 1, 128>}, {transform_indices = @transform_8, window_bounds = array<i64: 16, 128>}]} {
    %c0 = arith.constant 0 : index
    %c0_0 = arith.constant 0 : index
    %c0_1 = arith.constant 0 : index
    %0 = vector.load %arg1[%c0, %c0_0, %c0_1] : memref<16x8x16xf32, #tpu.memory_space<vmem>>, vector<16x8x16xf32>
    %1 = tpu.transpose %0, [1, 0, 2] : vector<16x8x16xf32> -> vector<8x16x16xf32>
    %2 = vector.shape_cast %1 : vector<8x16x16xf32> to vector<128x16xf32>
    %c0_2 = arith.constant 0 : index
    %c0_3 = arith.constant 0 : index
    %3 = vector.load %arg2[%c0_2, %c0_3] : memref<16x512xf32, #tpu.memory_space<vmem>>, vector<16x512xf32>
    %cst = arith.constant dense<0.000000e+00> : vector<128x512xf32>
    %4 = tpu.matmul %2, %3, %cst {dimension_numbers = #tpu.dot_dimension_numbers<[1], [0], [0], [1], [0, 0, 1, 1], [], []>} : vector<128x16xf32>, vector<16x512xf32>, vector<128x512xf32> -> vector<128x512xf32>
    %c0_4 = arith.constant 0 : index
    %c0_5 = arith.constant 0 : index
    %5 = vector.load %arg4[%c0_4, %c0_5] : memref<1x512xf32, #tpu.memory_space<vmem>>, vector<1x512xf32>
    %6 = vector.broadcast %5 : vector<1x512xf32> to vector<128x512xf32>
    %7 = arith.addf %4, %6 : vector<128x512xf32>
    %c0_6 = arith.constant 0 : index
    %c0_7 = arith.constant 0 : index
    %8 = vector.load %arg10[%c0_6, %c0_7] : memref<128x512xf32, #tpu.memory_space<vmem>>, vector<128x512xf32>
    tpu.vector_store %arg10[%c0_6, %c0_7], %7 {strides = array<i32>} : memref<128x512xf32, #tpu.memory_space<vmem>>, vector<128x512xf32>,
    %c0_8 = arith.constant 0 : index
    %c0_9 = arith.constant 0 : index
    %9 = vector.load %arg3[%c0_8, %c0_9] : memref<128x512xf32, #tpu.memory_space<vmem>>, vector<128x512xf32>
    %c0_10 = arith.constant 0 : index
    %c0_11 = arith.constant 0 : index
    %10 = vector.load %arg5[%c0_10, %c0_11] : memref<256x512xf32, #tpu.memory_space<vmem>>, vector<256x512xf32>
    %c0_12 = arith.constant 0 : index
    %c0_13 = arith.constant 0 : index
    %11 = vector.load %arg6[%c0_12, %c0_13] : memref<1x512xf32, #tpu.memory_space<vmem>>, vector<1x512xf32>
    %12 = vector.shape_cast %11 : vector<1x512xf32> to vector<1x512xf32>
    %13 = vector.broadcast %12 : vector<1x512xf32> to vector<16x512xf32>
    %cst_14 = arith.constant 0.000000e+00 : f32
    %14 = vector.broadcast %cst_14 : f32 to vector<16x128xf32>
    %c0_i32 = arith.constant 0 : i32
    %c16_i32 = arith.constant 16 : i32
    %15 = arith.muli %c0_i32, %c16_i32 : i32
    %16 = tpu.assume_multiple %15, 8 : i32
    %17 = arith.index_cast %16 : i32 to index
    %c0_15 = arith.constant 0 : index
    %18 = vector.load %arg10[%17, %c0_15] : memref<128x512xf32, #tpu.memory_space<vmem>>, vector<16x512xf32>
    %cst_16 = arith.constant dense<0.000000e+00> : vector<16x512xf32>
    %19 = tpu.matmul %14, %9, %cst_16 {dimension_numbers = #tpu.dot_dimension_numbers<[1], [0], [0], [1], [0, 0, 1, 1], [], []>} : vector<16x128xf32>, vector<128x512xf32>, vector<16x512xf32> -> vector<16x512xf32>
    %20 = arith.addf %18, %19 : vector<16x512xf32>
    %21 = vector.extract_strided_slice %20 {offsets = [0, 0], sizes = [16, 128], strides = [1, 1]} : vector<16x512xf32> to vector<16x128xf32>
    %22 = arith.negf %21 : vector<16x128xf32>
    %23 = math.exp %22 : vector<16x128xf32>
    %cst_17 = arith.constant 1.000000e+00 : f32
    %24 = vector.broadcast %cst_17 : f32 to vector<16x128xf32>
    %25 = arith.addf %24, %23 : vector<16x128xf32>
    %26 = arith.divf %24, %25 : vector<16x128xf32>
    %27 = vector.extract_strided_slice %20 {offsets = [0, 128], sizes = [16, 128], strides = [1, 1]} : vector<16x512xf32> to vector<16x128xf32>
    %28 = arith.negf %27 : vector<16x128xf32>
    %29 = math.exp %28 : vector<16x128xf32>
    %cst_18 = arith.constant 1.000000e+00 : f32
    %30 = vector.broadcast %cst_18 : f32 to vector<16x128xf32>
    %31 = arith.addf %30, %29 : vector<16x128xf32>
    %32 = arith.divf %30, %31 : vector<16x128xf32>
    %33 = vector.extract_strided_slice %20 {offsets = [0, 256], sizes = [16, 128], strides = [1, 1]} : vector<16x512xf32> to vector<16x128xf32>
    %34 = math.tanh %33 : vector<16x128xf32>
    %35 = vector.extract_strided_slice %20 {offsets = [0, 384], sizes = [16, 128], strides = [1, 1]} : vector<16x512xf32> to vector<16x128xf32>
    %36 = arith.negf %35 : vector<16x128xf32>
    %37 = math.exp %36 : vector<16x128xf32>
    %cst_19 = arith.constant 1.000000e+00 : f32
    %38 = vector.broadcast %cst_19 : f32 to vector<16x128xf32>
    %39 = arith.addf %38, %37 : vector<16x128xf32>
    %40 = arith.divf %38, %39 : vector<16x128xf32>
    %41 = arith.mulf %32, %14 : vector<16x128xf32>
    %42 = arith.mulf %26, %34 : vector<16x128xf32>
    %43 = arith.addf %41, %42 : vector<16x128xf32>
    %44 = math.tanh %43 : vector<16x128xf32>
    %45 = arith.mulf %40, %44 : vector<16x128xf32>
    %46 = tpu.concatenate %45, %14 in 1 : vector<16x128xf32>, vector<16x128xf32> -> vector<16x256xf32>
    %cst_20 = arith.constant dense<0.000000e+00> : vector<16x512xf32>
    %47 = tpu.matmul %46, %10, %cst_20 {dimension_numbers = #tpu.dot_dimension_numbers<[1], [0], [0], [1], [0, 0, 1, 1], [], []>} : vector<16x256xf32>, vector<256x512xf32>, vector<16x512xf32> -> vector<16x512xf32>
    %48 = arith.addf %47, %13 : vector<16x512xf32>
    %49 = vector.extract_strided_slice %48 {offsets = [0, 0], sizes = [16, 128], strides = [1, 1]} : vector<16x512xf32> to vector<16x128xf32>
    %50 = arith.negf %49 : vector<16x128xf32>
    %51 = math.exp %50 : vector<16x128xf32>
    %cst_21 = arith.constant 1.000000e+00 : f32
    %52 = vector.broadcast %cst_21 : f32 to vector<16x128xf32>
    %53 = arith.addf %52, %51 : vector<16x128xf32>
    %54 = arith.divf %52, %53 : vector<16x128xf32>
    %55 = vector.extract_strided_slice %48 {offsets = [0, 128], sizes = [16, 128], strides = [1, 1]} : vector<16x512xf32> to vector<16x128xf32>
    %56 = arith.negf %55 : vector<16x128xf32>
    %57 = math.exp %56 : vector<16x128xf32>
    %cst_22 = arith.constant 1.000000e+00 : f32
    %58 = vector.broadcast %cst_22 : f32 to vector<16x128xf32>
    %59 = arith.addf %58, %57 : vector<16x128xf32>
    %60 = arith.divf %58, %59 : vector<16x128xf32>
    %61 = vector.extract_strided_slice %48 {offsets = [0, 256], sizes = [16, 128], strides = [1, 1]} : vector<16x512xf32> to vector<16x128xf32>
    %62 = math.tanh %61 : vector<16x128xf32>
    %63 = vector.extract_strided_slice %48 {offsets = [0, 384], sizes = [16, 128], strides = [1, 1]} : vector<16x512xf32> to vector<16x128xf32>
    %64 = arith.negf %63 : vector<16x128xf32>
    %65 = math.exp %64 : vector<16x128xf32>
    %cst_23 = arith.constant 1.000000e+00 : f32
    %66 = vector.broadcast %cst_23 : f32 to vector<16x128xf32>
    %67 = arith.addf %66, %65 : vector<16x128xf32>
    %68 = arith.divf %66, %67 : vector<16x128xf32>
    %69 = arith.mulf %60, %14 : vector<16x128xf32>
    %70 = arith.mulf %54, %62 : vector<16x128xf32>
    %71 = arith.addf %69, %70 : vector<16x128xf32>
    %72 = math.tanh %71 : vector<16x128xf32>
    %73 = arith.mulf %68, %72 : vector<16x128xf32>
    %c1_i32 = arith.constant 1 : i32
    %c16_i32_24 = arith.constant 16 : i32
    %74 = arith.muli %c1_i32, %c16_i32_24 : i32
    %75 = tpu.assume_multiple %74, 8 : i32
    %76 = arith.index_cast %75 : i32 to index
    %c0_25 = arith.constant 0 : index
    %77 = vector.load %arg10[%76, %c0_25] : memref<128x512xf32, #tpu.memory_space<vmem>>, vector<16x512xf32>
    %cst_26 = arith.constant dense<0.000000e+00> : vector<16x512xf32>
    %78 = tpu.matmul %45, %9, %cst_26 {dimension_numbers = #tpu.dot_dimension_numbers<[1], [0], [0], [1], [0, 0, 1, 1], [], []>} : vector<16x128xf32>, vector<128x512xf32>, vector<16x512xf32> -> vector<16x512xf32>
    %79 = arith.addf %77, %78 : vector<16x512xf32>
    %80 = vector.extract_strided_slice %79 {offsets = [0, 0], sizes = [16, 128], strides = [1, 1]} : vector<16x512xf32> to vector<16x128xf32>
    %81 = arith.negf %80 : vector<16x128xf32>
    %82 = math.exp %81 : vector<16x128xf32>
    %cst_27 = arith.constant 1.000000e+00 : f32
    %83 = vector.broadcast %cst_27 : f32 to vector<16x128xf32>
    %84 = arith.addf %83, %82 : vector<16x128xf32>
    %85 = arith.divf %83, %84 : vector<16x128xf32>
    %86 = vector.extract_strided_slice %79 {offsets = [0, 128], sizes = [16, 128], strides = [1, 1]} : vector<16x512xf32> to vector<16x128xf32>
    %87 = arith.negf %86 : vector<16x128xf32>
    %88 = math.exp %87 : vector<16x128xf32>
    %cst_28 = arith.constant 1.000000e+00 : f32
    %89 = vector.broadcast %cst_28 : f32 to vector<16x128xf32>
    %90 = arith.addf %89, %88 : vector<16x128xf32>
    %91 = arith.divf %89, %90 : vector<16x128xf32>
    %92 = vector.extract_strided_slice %79 {offsets = [0, 256], sizes = [16, 128], strides = [1, 1]} : vector<16x512xf32> to vector<16x128xf32>
    %93 = math.tanh %92 : vector<16x128xf32>
    %94 = vector.extract_strided_slice %79 {offsets = [0, 384], sizes = [16, 128], strides = [1, 1]} : vector<16x512xf32> to vector<16x128xf32>
    %95 = arith.negf %94 : vector<16x128xf32>
    %96 = math.exp %95 : vector<16x128xf32>
    %cst_29 = arith.constant 1.000000e+00 : f32
    %97 = vector.broadcast %cst_29 : f32 to vector<16x128xf32>
    %98 = arith.addf %97, %96 : vector<16x128xf32>
    %99 = arith.divf %97, %98 : vector<16x128xf32>
    %100 = arith.mulf %91, %43 : vector<16x128xf32>
    %101 = arith.mulf %85, %93 : vector<16x128xf32>
    %102 = arith.addf %100, %101 : vector<16x128xf32>
    %103 = math.tanh %102 : vector<16x128xf32>
    %104 = arith.mulf %99, %103 : vector<16x128xf32>
    %105 = tpu.concatenate %104, %73 in 1 : vector<16x128xf32>, vector<16x128xf32> -> vector<16x256xf32>
    %cst_30 = arith.constant dense<0.000000e+00> : vector<16x512xf32>
    %106 = tpu.matmul %105, %10, %cst_30 {dimension_numbers = #tpu.dot_dimension_numbers<[1], [0], [0], [1], [0, 0, 1, 1], [], []>} : vector<16x256xf32>, vector<256x512xf32>, vector<16x512xf32> -> vector<16x512xf32>
    %107 = arith.addf %106, %13 : vector<16x512xf32>
    %108 = vector.extract_strided_slice %107 {offsets = [0, 0], sizes = [16, 128], strides = [1, 1]} : vector<16x512xf32> to vector<16x128xf32>
    %109 = arith.negf %108 : vector<16x128xf32>
    %110 = math.exp %109 : vector<16x128xf32>
    %cst_31 = arith.constant 1.000000e+00 : f32
    %111 = vector.broadcast %cst_31 : f32 to vector<16x128xf32>
    %112 = arith.addf %111, %110 : vector<16x128xf32>
    %113 = arith.divf %111, %112 : vector<16x128xf32>
    %114 = vector.extract_strided_slice %107 {offsets = [0, 128], sizes = [16, 128], strides = [1, 1]} : vector<16x512xf32> to vector<16x128xf32>
    %115 = arith.negf %114 : vector<16x128xf32>
    %116 = math.exp %115 : vector<16x128xf32>
    %cst_32 = arith.constant 1.000000e+00 : f32
    %117 = vector.broadcast %cst_32 : f32 to vector<16x128xf32>
    %118 = arith.addf %117, %116 : vector<16x128xf32>
    %119 = arith.divf %117, %118 : vector<16x128xf32>
    %120 = vector.extract_strided_slice %107 {offsets = [0, 256], sizes = [16, 128], strides = [1, 1]} : vector<16x512xf32> to vector<16x128xf32>
    %121 = math.tanh %120 : vector<16x128xf32>
    %122 = vector.extract_strided_slice %107 {offsets = [0, 384], sizes = [16, 128], strides = [1, 1]} : vector<16x512xf32> to vector<16x128xf32>
    %123 = arith.negf %122 : vector<16x128xf32>
    %124 = math.exp %123 : vector<16x128xf32>
    %cst_33 = arith.constant 1.000000e+00 : f32
    %125 = vector.broadcast %cst_33 : f32 to vector<16x128xf32>
    %126 = arith.addf %125, %124 : vector<16x128xf32>
    %127 = arith.divf %125, %126 : vector<16x128xf32>
    %128 = arith.mulf %119, %71 : vector<16x128xf32>
    %129 = arith.mulf %113, %121 : vector<16x128xf32>
    %130 = arith.addf %128, %129 : vector<16x128xf32>
    %131 = math.tanh %130 : vector<16x128xf32>
    %132 = arith.mulf %127, %131 : vector<16x128xf32>
    %c2_i32 = arith.constant 2 : i32
    %c16_i32_34 = arith.constant 16 : i32
    %133 = arith.muli %c2_i32, %c16_i32_34 : i32
    %134 = tpu.assume_multiple %133, 8 : i32
    %135 = arith.index_cast %134 : i32 to index
    %c0_35 = arith.constant 0 : index
    %136 = vector.load %arg10[%135, %c0_35] : memref<128x512xf32, #tpu.memory_space<vmem>>, vector<16x512xf32>
    %cst_36 = arith.constant dense<0.000000e+00> : vector<16x512xf32>
    %137 = tpu.matmul %104, %9, %cst_36 {dimension_numbers = #tpu.dot_dimension_numbers<[1], [0], [0], [1], [0, 0, 1, 1], [], []>} : vector<16x128xf32>, vector<128x512xf32>, vector<16x512xf32> -> vector<16x512xf32>
    %138 = arith.addf %136, %137 : vector<16x512xf32>
    %139 = vector.extract_strided_slice %138 {offsets = [0, 0], sizes = [16, 128], strides = [1, 1]} : vector<16x512xf32> to vector<16x128xf32>
    %140 = arith.negf %139 : vector<16x128xf32>
    %141 = math.exp %140 : vector<16x128xf32>
    %cst_37 = arith.constant 1.000000e+00 : f32
    %142 = vector.broadcast %cst_37 : f32 to vector<16x128xf32>
    %143 = arith.addf %142, %141 : vector<16x128xf32>
    %144 = arith.divf %142, %143 : vector<16x128xf32>
    %145 = vector.extract_strided_slice %138 {offsets = [0, 128], sizes = [16, 128], strides = [1, 1]} : vector<16x512xf32> to vector<16x128xf32>
    %146 = arith.negf %145 : vector<16x128xf32>
    %147 = math.exp %146 : vector<16x128xf32>
    %cst_38 = arith.constant 1.000000e+00 : f32
    %148 = vector.broadcast %cst_38 : f32 to vector<16x128xf32>
    %149 = arith.addf %148, %147 : vector<16x128xf32>
    %150 = arith.divf %148, %149 : vector<16x128xf32>
    %151 = vector.extract_strided_slice %138 {offsets = [0, 256], sizes = [16, 128], strides = [1, 1]} : vector<16x512xf32> to vector<16x128xf32>
    %152 = math.tanh %151 : vector<16x128xf32>
    %153 = vector.extract_strided_slice %138 {offsets = [0, 384], sizes = [16, 128], strides = [1, 1]} : vector<16x512xf32> to vector<16x128xf32>
    %154 = arith.negf %153 : vector<16x128xf32>
    %155 = math.exp %154 : vector<16x128xf32>
    %cst_39 = arith.constant 1.000000e+00 : f32
    %156 = vector.broadcast %cst_39 : f32 to vector<16x128xf32>
    %157 = arith.addf %156, %155 : vector<16x128xf32>
    %158 = arith.divf %156, %157 : vector<16x128xf32>
    %159 = arith.mulf %150, %102 : vector<16x128xf32>
    %160 = arith.mulf %144, %152 : vector<16x128xf32>
    %161 = arith.addf %159, %160 : vector<16x128xf32>
    %162 = math.tanh %161 : vector<16x128xf32>
    %163 = arith.mulf %158, %162 : vector<16x128xf32>
    %164 = tpu.concatenate %163, %132 in 1 : vector<16x128xf32>, vector<16x128xf32> -> vector<16x256xf32>
    %cst_40 = arith.constant dense<0.000000e+00> : vector<16x512xf32>
    %165 = tpu.matmul %164, %10, %cst_40 {dimension_numbers = #tpu.dot_dimension_numbers<[1], [0], [0], [1], [0, 0, 1, 1], [], []>} : vector<16x256xf32>, vector<256x512xf32>, vector<16x512xf32> -> vector<16x512xf32>
    %166 = arith.addf %165, %13 : vector<16x512xf32>
    %167 = vector.extract_strided_slice %166 {offsets = [0, 0], sizes = [16, 128], strides = [1, 1]} : vector<16x512xf32> to vector<16x128xf32>
    %168 = arith.negf %167 : vector<16x128xf32>
    %169 = math.exp %168 : vector<16x128xf32>
    %cst_41 = arith.constant 1.000000e+00 : f32
    %170 = vector.broadcast %cst_41 : f32 to vector<16x128xf32>
    %171 = arith.addf %170, %169 : vector<16x128xf32>
    %172 = arith.divf %170, %171 : vector<16x128xf32>
    %173 = vector.extract_strided_slice %166 {offsets = [0, 128], sizes = [16, 128], strides = [1, 1]} : vector<16x512xf32> to vector<16x128xf32>
    %174 = arith.negf %173 : vector<16x128xf32>
    %175 = math.exp %174 : vector<16x128xf32>
    %cst_42 = arith.constant 1.000000e+00 : f32
    %176 = vector.broadcast %cst_42 : f32 to vector<16x128xf32>
    %177 = arith.addf %176, %175 : vector<16x128xf32>
    %178 = arith.divf %176, %177 : vector<16x128xf32>
    %179 = vector.extract_strided_slice %166 {offsets = [0, 256], sizes = [16, 128], strides = [1, 1]} : vector<16x512xf32> to vector<16x128xf32>
    %180 = math.tanh %179 : vector<16x128xf32>
    %181 = vector.extract_strided_slice %166 {offsets = [0, 384], sizes = [16, 128], strides = [1, 1]} : vector<16x512xf32> to vector<16x128xf32>
    %182 = arith.negf %181 : vector<16x128xf32>
    %183 = math.exp %182 : vector<16x128xf32>
    %cst_43 = arith.constant 1.000000e+00 : f32
    %184 = vector.broadcast %cst_43 : f32 to vector<16x128xf32>
    %185 = arith.addf %184, %183 : vector<16x128xf32>
    %186 = arith.divf %184, %185 : vector<16x128xf32>
    %187 = arith.mulf %178, %130 : vector<16x128xf32>
    %188 = arith.mulf %172, %180 : vector<16x128xf32>
    %189 = arith.addf %187, %188 : vector<16x128xf32>
    %190 = math.tanh %189 : vector<16x128xf32>
    %191 = arith.mulf %186, %190 : vector<16x128xf32>
    %c3_i32 = arith.constant 3 : i32
    %c16_i32_44 = arith.constant 16 : i32
    %192 = arith.muli %c3_i32, %c16_i32_44 : i32
    %193 = tpu.assume_multiple %192, 8 : i32
    %194 = arith.index_cast %193 : i32 to index
    %c0_45 = arith.constant 0 : index
    %195 = vector.load %arg10[%194, %c0_45] : memref<128x512xf32, #tpu.memory_space<vmem>>, vector<16x512xf32>
    %cst_46 = arith.constant dense<0.000000e+00> : vector<16x512xf32>
    %196 = tpu.matmul %163, %9, %cst_46 {dimension_numbers = #tpu.dot_dimension_numbers<[1], [0], [0], [1], [0, 0, 1, 1], [], []>} : vector<16x128xf32>, vector<128x512xf32>, vector<16x512xf32> -> vector<16x512xf32>
    %197 = arith.addf %195, %196 : vector<16x512xf32>
    %198 = vector.extract_strided_slice %197 {offsets = [0, 0], sizes = [16, 128], strides = [1, 1]} : vector<16x512xf32> to vector<16x128xf32>
    %199 = arith.negf %198 : vector<16x128xf32>
    %200 = math.exp %199 : vector<16x128xf32>
    %cst_47 = arith.constant 1.000000e+00 : f32
    %201 = vector.broadcast %cst_47 : f32 to vector<16x128xf32>
    %202 = arith.addf %201, %200 : vector<16x128xf32>
    %203 = arith.divf %201, %202 : vector<16x128xf32>
    %204 = vector.extract_strided_slice %197 {offsets = [0, 128], sizes = [16, 128], strides = [1, 1]} : vector<16x512xf32> to vector<16x128xf32>
    %205 = arith.negf %204 : vector<16x128xf32>
    %206 = math.exp %205 : vector<16x128xf32>
    %cst_48 = arith.constant 1.000000e+00 : f32
    %207 = vector.broadcast %cst_48 : f32 to vector<16x128xf32>
    %208 = arith.addf %207, %206 : vector<16x128xf32>
    %209 = arith.divf %207, %208 : vector<16x128xf32>
    %210 = vector.extract_strided_slice %197 {offsets = [0, 256], sizes = [16, 128], strides = [1, 1]} : vector<16x512xf32> to vector<16x128xf32>
    %211 = math.tanh %210 : vector<16x128xf32>
    %212 = vector.extract_strided_slice %197 {offsets = [0, 384], sizes = [16, 128], strides = [1, 1]} : vector<16x512xf32> to vector<16x128xf32>
    %213 = arith.negf %212 : vector<16x128xf32>
    %214 = math.exp %213 : vector<16x128xf32>
    %cst_49 = arith.constant 1.000000e+00 : f32
    %215 = vector.broadcast %cst_49 : f32 to vector<16x128xf32>
    %216 = arith.addf %215, %214 : vector<16x128xf32>
    %217 = arith.divf %215, %216 : vector<16x128xf32>
    %218 = arith.mulf %209, %161 : vector<16x128xf32>
    %219 = arith.mulf %203, %211 : vector<16x128xf32>
    %220 = arith.addf %218, %219 : vector<16x128xf32>
    %221 = math.tanh %220 : vector<16x128xf32>
    %222 = arith.mulf %217, %221 : vector<16x128xf32>
    %223 = tpu.concatenate %222, %191 in 1 : vector<16x128xf32>, vector<16x128xf32> -> vector<16x256xf32>
    %cst_50 = arith.constant dense<0.000000e+00> : vector<16x512xf32>
    %224 = tpu.matmul %223, %10, %cst_50 {dimension_numbers = #tpu.dot_dimension_numbers<[1], [0], [0], [1], [0, 0, 1, 1], [], []>} : vector<16x256xf32>, vector<256x512xf32>, vector<16x512xf32> -> vector<16x512xf32>
    %225 = arith.addf %224, %13 : vector<16x512xf32>
    %226 = vector.extract_strided_slice %225 {offsets = [0, 0], sizes = [16, 128], strides = [1, 1]} : vector<16x512xf32> to vector<16x128xf32>
    %227 = arith.negf %226 : vector<16x128xf32>
    %228 = math.exp %227 : vector<16x128xf32>
    %cst_51 = arith.constant 1.000000e+00 : f32
    %229 = vector.broadcast %cst_51 : f32 to vector<16x128xf32>
    %230 = arith.addf %229, %228 : vector<16x128xf32>
    %231 = arith.divf %229, %230 : vector<16x128xf32>
    %232 = vector.extract_strided_slice %225 {offsets = [0, 128], sizes = [16, 128], strides = [1, 1]} : vector<16x512xf32> to vector<16x128xf32>
    %233 = arith.negf %232 : vector<16x128xf32>
    %234 = math.exp %233 : vector<16x128xf32>
    %cst_52 = arith.constant 1.000000e+00 : f32
    %235 = vector.broadcast %cst_52 : f32 to vector<16x128xf32>
    %236 = arith.addf %235, %234 : vector<16x128xf32>
    %237 = arith.divf %235, %236 : vector<16x128xf32>
    %238 = vector.extract_strided_slice %225 {offsets = [0, 256], sizes = [16, 128], strides = [1, 1]} : vector<16x512xf32> to vector<16x128xf32>
    %239 = math.tanh %238 : vector<16x128xf32>
    %240 = vector.extract_strided_slice %225 {offsets = [0, 384], sizes = [16, 128], strides = [1, 1]} : vector<16x512xf32> to vector<16x128xf32>
    %241 = arith.negf %240 : vector<16x128xf32>
    %242 = math.exp %241 : vector<16x128xf32>
    %cst_53 = arith.constant 1.000000e+00 : f32
    %243 = vector.broadcast %cst_53 : f32 to vector<16x128xf32>
    %244 = arith.addf %243, %242 : vector<16x128xf32>
    %245 = arith.divf %243, %244 : vector<16x128xf32>
    %246 = arith.mulf %237, %189 : vector<16x128xf32>
    %247 = arith.mulf %231, %239 : vector<16x128xf32>
    %248 = arith.addf %246, %247 : vector<16x128xf32>
    %249 = math.tanh %248 : vector<16x128xf32>
    %250 = arith.mulf %245, %249 : vector<16x128xf32>
    %c4_i32 = arith.constant 4 : i32
    %c16_i32_54 = arith.constant 16 : i32
    %251 = arith.muli %c4_i32, %c16_i32_54 : i32
    %252 = tpu.assume_multiple %251, 8 : i32
    %253 = arith.index_cast %252 : i32 to index
    %c0_55 = arith.constant 0 : index
    %254 = vector.load %arg10[%253, %c0_55] : memref<128x512xf32, #tpu.memory_space<vmem>>, vector<16x512xf32>
    %cst_56 = arith.constant dense<0.000000e+00> : vector<16x512xf32>
    %255 = tpu.matmul %222, %9, %cst_56 {dimension_numbers = #tpu.dot_dimension_numbers<[1], [0], [0], [1], [0, 0, 1, 1], [], []>} : vector<16x128xf32>, vector<128x512xf32>, vector<16x512xf32> -> vector<16x512xf32>
    %256 = arith.addf %254, %255 : vector<16x512xf32>
    %257 = vector.extract_strided_slice %256 {offsets = [0, 0], sizes = [16, 128], strides = [1, 1]} : vector<16x512xf32> to vector<16x128xf32>
    %258 = arith.negf %257 : vector<16x128xf32>
    %259 = math.exp %258 : vector<16x128xf32>
    %cst_57 = arith.constant 1.000000e+00 : f32
    %260 = vector.broadcast %cst_57 : f32 to vector<16x128xf32>
    %261 = arith.addf %260, %259 : vector<16x128xf32>
    %262 = arith.divf %260, %261 : vector<16x128xf32>
    %263 = vector.extract_strided_slice %256 {offsets = [0, 128], sizes = [16, 128], strides = [1, 1]} : vector<16x512xf32> to vector<16x128xf32>
    %264 = arith.negf %263 : vector<16x128xf32>
    %265 = math.exp %264 : vector<16x128xf32>
    %cst_58 = arith.constant 1.000000e+00 : f32
    %266 = vector.broadcast %cst_58 : f32 to vector<16x128xf32>
    %267 = arith.addf %266, %265 : vector<16x128xf32>
    %268 = arith.divf %266, %267 : vector<16x128xf32>
    %269 = vector.extract_strided_slice %256 {offsets = [0, 256], sizes = [16, 128], strides = [1, 1]} : vector<16x512xf32> to vector<16x128xf32>
    %270 = math.tanh %269 : vector<16x128xf32>
    %271 = vector.extract_strided_slice %256 {offsets = [0, 384], sizes = [16, 128], strides = [1, 1]} : vector<16x512xf32> to vector<16x128xf32>
    %272 = arith.negf %271 : vector<16x128xf32>
    %273 = math.exp %272 : vector<16x128xf32>
    %cst_59 = arith.constant 1.000000e+00 : f32
    %274 = vector.broadcast %cst_59 : f32 to vector<16x128xf32>
    %275 = arith.addf %274, %273 : vector<16x128xf32>
    %276 = arith.divf %274, %275 : vector<16x128xf32>
    %277 = arith.mulf %268, %220 : vector<16x128xf32>
    %278 = arith.mulf %262, %270 : vector<16x128xf32>
    %279 = arith.addf %277, %278 : vector<16x128xf32>
    %280 = math.tanh %279 : vector<16x128xf32>
    %281 = arith.mulf %276, %280 : vector<16x128xf32>
    %282 = tpu.concatenate %281, %250 in 1 : vector<16x128xf32>, vector<16x128xf32> -> vector<16x256xf32>
    %cst_60 = arith.constant dense<0.000000e+00> : vector<16x512xf32>
    %283 = tpu.matmul %282, %10, %cst_60 {dimension_numbers = #tpu.dot_dimension_numbers<[1], [0], [0], [1], [0, 0, 1, 1], [], []>} : vector<16x256xf32>, vector<256x512xf32>, vector<16x512xf32> -> vector<16x512xf32>
    %284 = arith.addf %283, %13 : vector<16x512xf32>
    %285 = vector.extract_strided_slice %284 {offsets = [0, 0], sizes = [16, 128], strides = [1, 1]} : vector<16x512xf32> to vector<16x128xf32>
    %286 = arith.negf %285 : vector<16x128xf32>
    %287 = math.exp %286 : vector<16x128xf32>
    %cst_61 = arith.constant 1.000000e+00 : f32
    %288 = vector.broadcast %cst_61 : f32 to vector<16x128xf32>
    %289 = arith.addf %288, %287 : vector<16x128xf32>
    %290 = arith.divf %288, %289 : vector<16x128xf32>
    %291 = vector.extract_strided_slice %284 {offsets = [0, 128], sizes = [16, 128], strides = [1, 1]} : vector<16x512xf32> to vector<16x128xf32>
    %292 = arith.negf %291 : vector<16x128xf32>
    %293 = math.exp %292 : vector<16x128xf32>
    %cst_62 = arith.constant 1.000000e+00 : f32
    %294 = vector.broadcast %cst_62 : f32 to vector<16x128xf32>
    %295 = arith.addf %294, %293 : vector<16x128xf32>
    %296 = arith.divf %294, %295 : vector<16x128xf32>
    %297 = vector.extract_strided_slice %284 {offsets = [0, 256], sizes = [16, 128], strides = [1, 1]} : vector<16x512xf32> to vector<16x128xf32>
    %298 = math.tanh %297 : vector<16x128xf32>
    %299 = vector.extract_strided_slice %284 {offsets = [0, 384], sizes = [16, 128], strides = [1, 1]} : vector<16x512xf32> to vector<16x128xf32>
    %300 = arith.negf %299 : vector<16x128xf32>
    %301 = math.exp %300 : vector<16x128xf32>
    %cst_63 = arith.constant 1.000000e+00 : f32
    %302 = vector.broadcast %cst_63 : f32 to vector<16x128xf32>
    %303 = arith.addf %302, %301 : vector<16x128xf32>
    %304 = arith.divf %302, %303 : vector<16x128xf32>
    %305 = arith.mulf %296, %248 : vector<16x128xf32>
    %306 = arith.mulf %290, %298 : vector<16x128xf32>
    %307 = arith.addf %305, %306 : vector<16x128xf32>
    %308 = math.tanh %307 : vector<16x128xf32>
    %309 = arith.mulf %304, %308 : vector<16x128xf32>
    %c5_i32 = arith.constant 5 : i32
    %c16_i32_64 = arith.constant 16 : i32
    %310 = arith.muli %c5_i32, %c16_i32_64 : i32
    %311 = tpu.assume_multiple %310, 8 : i32
    %312 = arith.index_cast %311 : i32 to index
    %c0_65 = arith.constant 0 : index
    %313 = vector.load %arg10[%312, %c0_65] : memref<128x512xf32, #tpu.memory_space<vmem>>, vector<16x512xf32>
    %cst_66 = arith.constant dense<0.000000e+00> : vector<16x512xf32>
    %314 = tpu.matmul %281, %9, %cst_66 {dimension_numbers = #tpu.dot_dimension_numbers<[1], [0], [0], [1], [0, 0, 1, 1], [], []>} : vector<16x128xf32>, vector<128x512xf32>, vector<16x512xf32> -> vector<16x512xf32>
    %315 = arith.addf %313, %314 : vector<16x512xf32>
    %316 = vector.extract_strided_slice %315 {offsets = [0, 0], sizes = [16, 128], strides = [1, 1]} : vector<16x512xf32> to vector<16x128xf32>
    %317 = arith.negf %316 : vector<16x128xf32>
    %318 = math.exp %317 : vector<16x128xf32>
    %cst_67 = arith.constant 1.000000e+00 : f32
    %319 = vector.broadcast %cst_67 : f32 to vector<16x128xf32>
    %320 = arith.addf %319, %318 : vector<16x128xf32>
    %321 = arith.divf %319, %320 : vector<16x128xf32>
    %322 = vector.extract_strided_slice %315 {offsets = [0, 128], sizes = [16, 128], strides = [1, 1]} : vector<16x512xf32> to vector<16x128xf32>
    %323 = arith.negf %322 : vector<16x128xf32>
    %324 = math.exp %323 : vector<16x128xf32>
    %cst_68 = arith.constant 1.000000e+00 : f32
    %325 = vector.broadcast %cst_68 : f32 to vector<16x128xf32>
    %326 = arith.addf %325, %324 : vector<16x128xf32>
    %327 = arith.divf %325, %326 : vector<16x128xf32>
    %328 = vector.extract_strided_slice %315 {offsets = [0, 256], sizes = [16, 128], strides = [1, 1]} : vector<16x512xf32> to vector<16x128xf32>
    %329 = math.tanh %328 : vector<16x128xf32>
    %330 = vector.extract_strided_slice %315 {offsets = [0, 384], sizes = [16, 128], strides = [1, 1]} : vector<16x512xf32> to vector<16x128xf32>
    %331 = arith.negf %330 : vector<16x128xf32>
    %332 = math.exp %331 : vector<16x128xf32>
    %cst_69 = arith.constant 1.000000e+00 : f32
    %333 = vector.broadcast %cst_69 : f32 to vector<16x128xf32>
    %334 = arith.addf %333, %332 : vector<16x128xf32>
    %335 = arith.divf %333, %334 : vector<16x128xf32>
    %336 = arith.mulf %327, %279 : vector<16x128xf32>
    %337 = arith.mulf %321, %329 : vector<16x128xf32>
    %338 = arith.addf %336, %337 : vector<16x128xf32>
    %339 = math.tanh %338 : vector<16x128xf32>
    %340 = arith.mulf %335, %339 : vector<16x128xf32>
    %341 = tpu.concatenate %340, %309 in 1 : vector<16x128xf32>, vector<16x128xf32> -> vector<16x256xf32>
    %cst_70 = arith.constant dense<0.000000e+00> : vector<16x512xf32>
    %342 = tpu.matmul %341, %10, %cst_70 {dimension_numbers = #tpu.dot_dimension_numbers<[1], [0], [0], [1], [0, 0, 1, 1], [], []>} : vector<16x256xf32>, vector<256x512xf32>, vector<16x512xf32> -> vector<16x512xf32>
    %343 = arith.addf %342, %13 : vector<16x512xf32>
    %344 = vector.extract_strided_slice %343 {offsets = [0, 0], sizes = [16, 128], strides = [1, 1]} : vector<16x512xf32> to vector<16x128xf32>
    %345 = arith.negf %344 : vector<16x128xf32>
    %346 = math.exp %345 : vector<16x128xf32>
    %cst_71 = arith.constant 1.000000e+00 : f32
    %347 = vector.broadcast %cst_71 : f32 to vector<16x128xf32>
    %348 = arith.addf %347, %346 : vector<16x128xf32>
    %349 = arith.divf %347, %348 : vector<16x128xf32>
    %350 = vector.extract_strided_slice %343 {offsets = [0, 128], sizes = [16, 128], strides = [1, 1]} : vector<16x512xf32> to vector<16x128xf32>
    %351 = arith.negf %350 : vector<16x128xf32>
    %352 = math.exp %351 : vector<16x128xf32>
    %cst_72 = arith.constant 1.000000e+00 : f32
    %353 = vector.broadcast %cst_72 : f32 to vector<16x128xf32>
    %354 = arith.addf %353, %352 : vector<16x128xf32>
    %355 = arith.divf %353, %354 : vector<16x128xf32>
    %356 = vector.extract_strided_slice %343 {offsets = [0, 256], sizes = [16, 128], strides = [1, 1]} : vector<16x512xf32> to vector<16x128xf32>
    %357 = math.tanh %356 : vector<16x128xf32>
    %358 = vector.extract_strided_slice %343 {offsets = [0, 384], sizes = [16, 128], strides = [1, 1]} : vector<16x512xf32> to vector<16x128xf32>
    %359 = arith.negf %358 : vector<16x128xf32>
    %360 = math.exp %359 : vector<16x128xf32>
    %cst_73 = arith.constant 1.000000e+00 : f32
    %361 = vector.broadcast %cst_73 : f32 to vector<16x128xf32>
    %362 = arith.addf %361, %360 : vector<16x128xf32>
    %363 = arith.divf %361, %362 : vector<16x128xf32>
    %364 = arith.mulf %355, %307 : vector<16x128xf32>
    %365 = arith.mulf %349, %357 : vector<16x128xf32>
    %366 = arith.addf %364, %365 : vector<16x128xf32>
    %367 = math.tanh %366 : vector<16x128xf32>
    %368 = arith.mulf %363, %367 : vector<16x128xf32>
    %c6_i32 = arith.constant 6 : i32
    %c16_i32_74 = arith.constant 16 : i32
    %369 = arith.muli %c6_i32, %c16_i32_74 : i32
    %370 = tpu.assume_multiple %369, 8 : i32
    %371 = arith.index_cast %370 : i32 to index
    %c0_75 = arith.constant 0 : index
    %372 = vector.load %arg10[%371, %c0_75] : memref<128x512xf32, #tpu.memory_space<vmem>>, vector<16x512xf32>
    %cst_76 = arith.constant dense<0.000000e+00> : vector<16x512xf32>
    %373 = tpu.matmul %340, %9, %cst_76 {dimension_numbers = #tpu.dot_dimension_numbers<[1], [0], [0], [1], [0, 0, 1, 1], [], []>} : vector<16x128xf32>, vector<128x512xf32>, vector<16x512xf32> -> vector<16x512xf32>
    %374 = arith.addf %372, %373 : vector<16x512xf32>
    %375 = vector.extract_strided_slice %374 {offsets = [0, 0], sizes = [16, 128], strides = [1, 1]} : vector<16x512xf32> to vector<16x128xf32>
    %376 = arith.negf %375 : vector<16x128xf32>
    %377 = math.exp %376 : vector<16x128xf32>
    %cst_77 = arith.constant 1.000000e+00 : f32
    %378 = vector.broadcast %cst_77 : f32 to vector<16x128xf32>
    %379 = arith.addf %378, %377 : vector<16x128xf32>
    %380 = arith.divf %378, %379 : vector<16x128xf32>
    %381 = vector.extract_strided_slice %374 {offsets = [0, 128], sizes = [16, 128], strides = [1, 1]} : vector<16x512xf32> to vector<16x128xf32>
    %382 = arith.negf %381 : vector<16x128xf32>
    %383 = math.exp %382 : vector<16x128xf32>
    %cst_78 = arith.constant 1.000000e+00 : f32
    %384 = vector.broadcast %cst_78 : f32 to vector<16x128xf32>
    %385 = arith.addf %384, %383 : vector<16x128xf32>
    %386 = arith.divf %384, %385 : vector<16x128xf32>
    %387 = vector.extract_strided_slice %374 {offsets = [0, 256], sizes = [16, 128], strides = [1, 1]} : vector<16x512xf32> to vector<16x128xf32>
    %388 = math.tanh %387 : vector<16x128xf32>
    %389 = vector.extract_strided_slice %374 {offsets = [0, 384], sizes = [16, 128], strides = [1, 1]} : vector<16x512xf32> to vector<16x128xf32>
    %390 = arith.negf %389 : vector<16x128xf32>
    %391 = math.exp %390 : vector<16x128xf32>
    %cst_79 = arith.constant 1.000000e+00 : f32
    %392 = vector.broadcast %cst_79 : f32 to vector<16x128xf32>
    %393 = arith.addf %392, %391 : vector<16x128xf32>
    %394 = arith.divf %392, %393 : vector<16x128xf32>
    %395 = arith.mulf %386, %338 : vector<16x128xf32>
    %396 = arith.mulf %380, %388 : vector<16x128xf32>
    %397 = arith.addf %395, %396 : vector<16x128xf32>
    %398 = math.tanh %397 : vector<16x128xf32>
    %399 = arith.mulf %394, %398 : vector<16x128xf32>
    %400 = tpu.concatenate %399, %368 in 1 : vector<16x128xf32>, vector<16x128xf32> -> vector<16x256xf32>
    %cst_80 = arith.constant dense<0.000000e+00> : vector<16x512xf32>
    %401 = tpu.matmul %400, %10, %cst_80 {dimension_numbers = #tpu.dot_dimension_numbers<[1], [0], [0], [1], [0, 0, 1, 1], [], []>} : vector<16x256xf32>, vector<256x512xf32>, vector<16x512xf32> -> vector<16x512xf32>
    %402 = arith.addf %401, %13 : vector<16x512xf32>
    %403 = vector.extract_strided_slice %402 {offsets = [0, 0], sizes = [16, 128], strides = [1, 1]} : vector<16x512xf32> to vector<16x128xf32>
    %404 = arith.negf %403 : vector<16x128xf32>
    %405 = math.exp %404 : vector<16x128xf32>
    %cst_81 = arith.constant 1.000000e+00 : f32
    %406 = vector.broadcast %cst_81 : f32 to vector<16x128xf32>
    %407 = arith.addf %406, %405 : vector<16x128xf32>
    %408 = arith.divf %406, %407 : vector<16x128xf32>
    %409 = vector.extract_strided_slice %402 {offsets = [0, 128], sizes = [16, 128], strides = [1, 1]} : vector<16x512xf32> to vector<16x128xf32>
    %410 = arith.negf %409 : vector<16x128xf32>
    %411 = math.exp %410 : vector<16x128xf32>
    %cst_82 = arith.constant 1.000000e+00 : f32
    %412 = vector.broadcast %cst_82 : f32 to vector<16x128xf32>
    %413 = arith.addf %412, %411 : vector<16x128xf32>
    %414 = arith.divf %412, %413 : vector<16x128xf32>
    %415 = vector.extract_strided_slice %402 {offsets = [0, 256], sizes = [16, 128], strides = [1, 1]} : vector<16x512xf32> to vector<16x128xf32>
    %416 = math.tanh %415 : vector<16x128xf32>
    %417 = vector.extract_strided_slice %402 {offsets = [0, 384], sizes = [16, 128], strides = [1, 1]} : vector<16x512xf32> to vector<16x128xf32>
    %418 = arith.negf %417 : vector<16x128xf32>
    %419 = math.exp %418 : vector<16x128xf32>
    %cst_83 = arith.constant 1.000000e+00 : f32
    %420 = vector.broadcast %cst_83 : f32 to vector<16x128xf32>
    %421 = arith.addf %420, %419 : vector<16x128xf32>
    %422 = arith.divf %420, %421 : vector<16x128xf32>
    %423 = arith.mulf %414, %366 : vector<16x128xf32>
    %424 = arith.mulf %408, %416 : vector<16x128xf32>
    %425 = arith.addf %423, %424 : vector<16x128xf32>
    %426 = math.tanh %425 : vector<16x128xf32>
    %427 = arith.mulf %422, %426 : vector<16x128xf32>
    %c7_i32 = arith.constant 7 : i32
    %c16_i32_84 = arith.constant 16 : i32
    %428 = arith.muli %c7_i32, %c16_i32_84 : i32
    %429 = tpu.assume_multiple %428, 8 : i32
    %430 = arith.index_cast %429 : i32 to index
    %c0_85 = arith.constant 0 : index
    %431 = vector.load %arg10[%430, %c0_85] : memref<128x512xf32, #tpu.memory_space<vmem>>, vector<16x512xf32>
    %cst_86 = arith.constant dense<0.000000e+00> : vector<16x512xf32>
    %432 = tpu.matmul %399, %9, %cst_86 {dimension_numbers = #tpu.dot_dimension_numbers<[1], [0], [0], [1], [0, 0, 1, 1], [], []>} : vector<16x128xf32>, vector<128x512xf32>, vector<16x512xf32> -> vector<16x512xf32>
    %433 = arith.addf %431, %432 : vector<16x512xf32>
    %434 = vector.extract_strided_slice %433 {offsets = [0, 0], sizes = [16, 128], strides = [1, 1]} : vector<16x512xf32> to vector<16x128xf32>
    %435 = arith.negf %434 : vector<16x128xf32>
    %436 = math.exp %435 : vector<16x128xf32>
    %cst_87 = arith.constant 1.000000e+00 : f32
    %437 = vector.broadcast %cst_87 : f32 to vector<16x128xf32>
    %438 = arith.addf %437, %436 : vector<16x128xf32>
    %439 = arith.divf %437, %438 : vector<16x128xf32>
    %440 = vector.extract_strided_slice %433 {offsets = [0, 128], sizes = [16, 128], strides = [1, 1]} : vector<16x512xf32> to vector<16x128xf32>
    %441 = arith.negf %440 : vector<16x128xf32>
    %442 = math.exp %441 : vector<16x128xf32>
    %cst_88 = arith.constant 1.000000e+00 : f32
    %443 = vector.broadcast %cst_88 : f32 to vector<16x128xf32>
    %444 = arith.addf %443, %442 : vector<16x128xf32>
    %445 = arith.divf %443, %444 : vector<16x128xf32>
    %446 = vector.extract_strided_slice %433 {offsets = [0, 256], sizes = [16, 128], strides = [1, 1]} : vector<16x512xf32> to vector<16x128xf32>
    %447 = math.tanh %446 : vector<16x128xf32>
    %448 = vector.extract_strided_slice %433 {offsets = [0, 384], sizes = [16, 128], strides = [1, 1]} : vector<16x512xf32> to vector<16x128xf32>
    %449 = arith.negf %448 : vector<16x128xf32>
    %450 = math.exp %449 : vector<16x128xf32>
    %cst_89 = arith.constant 1.000000e+00 : f32
    %451 = vector.broadcast %cst_89 : f32 to vector<16x128xf32>
    %452 = arith.addf %451, %450 : vector<16x128xf32>
    %453 = arith.divf %451, %452 : vector<16x128xf32>
    %454 = arith.mulf %445, %397 : vector<16x128xf32>
    %455 = arith.mulf %439, %447 : vector<16x128xf32>
    %456 = arith.addf %454, %455 : vector<16x128xf32>
    %457 = math.tanh %456 : vector<16x128xf32>
    %458 = arith.mulf %453, %457 : vector<16x128xf32>
    %459 = tpu.concatenate %458, %427 in 1 : vector<16x128xf32>, vector<16x128xf32> -> vector<16x256xf32>
    %cst_90 = arith.constant dense<0.000000e+00> : vector<16x512xf32>
    %460 = tpu.matmul %459, %10, %cst_90 {dimension_numbers = #tpu.dot_dimension_numbers<[1], [0], [0], [1], [0, 0, 1, 1], [], []>} : vector<16x256xf32>, vector<256x512xf32>, vector<16x512xf32> -> vector<16x512xf32>
    %461 = arith.addf %460, %13 : vector<16x512xf32>
    %462 = vector.extract_strided_slice %461 {offsets = [0, 0], sizes = [16, 128], strides = [1, 1]} : vector<16x512xf32> to vector<16x128xf32>
    %463 = arith.negf %462 : vector<16x128xf32>
    %464 = math.exp %463 : vector<16x128xf32>
    %cst_91 = arith.constant 1.000000e+00 : f32
    %465 = vector.broadcast %cst_91 : f32 to vector<16x128xf32>
    %466 = arith.addf %465, %464 : vector<16x128xf32>
    %467 = arith.divf %465, %466 : vector<16x128xf32>
    %468 = vector.extract_strided_slice %461 {offsets = [0, 128], sizes = [16, 128], strides = [1, 1]} : vector<16x512xf32> to vector<16x128xf32>
    %469 = arith.negf %468 : vector<16x128xf32>
    %470 = math.exp %469 : vector<16x128xf32>
    %cst_92 = arith.constant 1.000000e+00 : f32
    %471 = vector.broadcast %cst_92 : f32 to vector<16x128xf32>
    %472 = arith.addf %471, %470 : vector<16x128xf32>
    %473 = arith.divf %471, %472 : vector<16x128xf32>
    %474 = vector.extract_strided_slice %461 {offsets = [0, 256], sizes = [16, 128], strides = [1, 1]} : vector<16x512xf32> to vector<16x128xf32>
    %475 = math.tanh %474 : vector<16x128xf32>
    %476 = vector.extract_strided_slice %461 {offsets = [0, 384], sizes = [16, 128], strides = [1, 1]} : vector<16x512xf32> to vector<16x128xf32>
    %477 = arith.negf %476 : vector<16x128xf32>
    %478 = math.exp %477 : vector<16x128xf32>
    %cst_93 = arith.constant 1.000000e+00 : f32
    %479 = vector.broadcast %cst_93 : f32 to vector<16x128xf32>
    %480 = arith.addf %479, %478 : vector<16x128xf32>
    %481 = arith.divf %479, %480 : vector<16x128xf32>
    %482 = arith.mulf %473, %425 : vector<16x128xf32>
    %483 = arith.mulf %467, %475 : vector<16x128xf32>
    %484 = arith.addf %482, %483 : vector<16x128xf32>
    %485 = math.tanh %484 : vector<16x128xf32>
    %486 = arith.mulf %481, %485 : vector<16x128xf32>
    %c8_i32 = arith.constant 8 : i32
    %c0_94 = arith.constant 0 : index
    %c0_95 = arith.constant 0 : index
    %487 = vector.load %arg7[%c0_94, %c0_95] : memref<128x128xf32, #tpu.memory_space<vmem>>, vector<128x128xf32>
    %cst_96 = arith.constant dense<0.000000e+00> : vector<16x128xf32>
    %488 = tpu.matmul %486, %487, %cst_96 {dimension_numbers = #tpu.dot_dimension_numbers<[1], [0], [0], [1], [0, 0, 1, 1], [], []>} : vector<16x128xf32>, vector<128x128xf32>, vector<16x128xf32> -> vector<16x128xf32>
    %c0_97 = arith.constant 0 : index
    %c0_98 = arith.constant 0 : index
    %489 = vector.load %arg8[%c0_97, %c0_98] : memref<1x128xf32, #tpu.memory_space<vmem>>, vector<1x128xf32>
    %490 = vector.broadcast %489 : vector<1x128xf32> to vector<16x128xf32>
    %491 = arith.addf %488, %490 : vector<16x128xf32>
    %c0_99 = arith.constant 0 : index
    %c0_100 = arith.constant 0 : index
    %492 = vector.load %arg9[%c0_99, %c0_100] : memref<16x128xf32, #tpu.memory_space<vmem>>, vector<16x128xf32>
    tpu.vector_store %arg9[%c0_99, %c0_100], %491 {strides = array<i32>} : memref<16x128xf32, #tpu.memory_space<vmem>>, vector<16x128xf32>,
    return
  }
  func.func @transform_0(%arg0: i32) -> (i32, i32, i32) {
    %c0_i32 = arith.constant 0 : i32
    %c0_i32_0 = arith.constant 0 : i32
    %c0_i32_1 = arith.constant 0 : i32
    return %arg0, %c0_i32, %c0_i32_0 : i32, i32, i32
  }
  func.func @transform_1(%arg0: i32) -> (i32, i32) {
    %c0_i32 = arith.constant 0 : i32
    %c0_i32_0 = arith.constant 0 : i32
    %c0_i32_1 = arith.constant 0 : i32
    return %c0_i32, %c0_i32_0 : i32, i32
  }
  func.func @transform_2(%arg0: i32) -> (i32, i32) {
    %c0_i32 = arith.constant 0 : i32
    %c0_i32_0 = arith.constant 0 : i32
    %c0_i32_1 = arith.constant 0 : i32
    return %c0_i32, %c0_i32_0 : i32, i32
  }
  func.func @transform_3(%arg0: i32) -> (i32, i32) {
    %c0_i32 = arith.constant 0 : i32
    %c0_i32_0 = arith.constant 0 : i32
    %c0_i32_1 = arith.constant 0 : i32
    return %c0_i32, %c0_i32_0 : i32, i32
  }
  func.func @transform_4(%arg0: i32) -> (i32, i32) {
    %c0_i32 = arith.constant 0 : i32
    %c0_i32_0 = arith.constant 0 : i32
    %c0_i32_1 = arith.constant 0 : i32
    return %c0_i32, %c0_i32_0 : i32, i32
  }
  func.func @transform_5(%arg0: i32) -> (i32, i32) {
    %c0_i32 = arith.constant 0 : i32
    %c0_i32_0 = arith.constant 0 : i32
    %c0_i32_1 = arith.constant 0 : i32
    return %c0_i32, %c0_i32_0 : i32, i32
  }
  func.func @transform_6(%arg0: i32) -> (i32, i32) {
    %c0_i32 = arith.constant 0 : i32
    %c0_i32_0 = arith.constant 0 : i32
    %c0_i32_1 = arith.constant 0 : i32
    return %c0_i32, %c0_i32_0 : i32, i32
  }
  func.func @transform_7(%arg0: i32) -> (i32, i32) {
    %c0_i32 = arith.constant 0 : i32
    %c0_i32_0 = arith.constant 0 : i32
    %c0_i32_1 = arith.constant 0 : i32
    return %c0_i32, %c0_i32_0 : i32, i32
  }
  func.func @transform_8(%arg0: i32) -> (i32, i32) {
    %c0_i32 = arith.constant 0 : i32
    %c0_i32_0 = arith.constant 0 : i32
    return %arg0, %c0_i32 : i32, i32
  }
}

</mosaic_0001>

<bundles_post_ra>
// kernel: tpu_custom_call.1
= control target key start
LH: loop header
LB: loop body
LE: loop exit
PB: predicated region body
PF: predicated region fallthrough
CT: control target
= control target key end

     0   :  { %13 = vsyncpa [#allocation4], 0  ;;  %s8817_s0 = inlined_call_operand.hbm [shape: f32[16,8,16], index: 0, kind: input, shape index: {}]   ;;  %s8818_s1 = inlined_call_operand.hbm [shape: f32[16,512], index: 1, kind: input, shape index: {}]   ;;  %s8819_s2 = inlined_call_operand.hbm [shape: f32[128,512], index: 2, kind: input, shape index: {}]   ;;  %s8820_s3 = inlined_call_operand.vmem [shape: f32[1,512], index: 3, kind: input, shape index: {}]   ;;  %s8821_s4 = inlined_call_operand.hbm [shape: f32[256,512], index: 4, kind: input, shape index: {}]   ;;  %s8822_s5 = inlined_call_operand.vmem [shape: f32[1,512], index: 5, kind: input, shape index: {}]   ;;  %s8823_s6 = inlined_call_operand.hbm [shape: f32[128,128], index: 6, kind: input, shape index: {}]   ;;  %s8824_s7 = inlined_call_operand.vmem [shape: f32[1,128], index: 7, kind: input, shape index: {}]   ;;  %s8825_s8 = inlined_call_operand.hbm [shape: f32[16,128], index: 8, kind: output, shape index: {}]  }
   0x1   :  { %14 = vsyncpa [#allocation7], 0 }
   0x2   :  { %15 = vsyncpa [#allocation10], 0 }
   0x3   :  { %16 = vsyncpa [#allocation5], 0  ;;  %s7152_s27 = smov [#allocation6]   ;;  %s7012_s9 = scalar_lea.hbm %s8818_s1, 1024 }
   0x4   :  { %s34_s28 = sshll.u32 %s7152_s27, 4  ;;  %p7013_p0 = scmp.ne.s32.totalorder %s8818_s1, %s7012_s9  ;;  %s35_s28 = int_to_ptr.vmem [resolvable:$true] %s34_s28 }
   0x5   :  { %p7016_p1 = scmp.lt.u32.totalorder %s7012_s9, %s8818_s1 }
   0x7   :  { %p7018_p2 = pnand %p7016_p1, %p7013_p0 }
   0x9   :  { %7021 = shalt.err (!%p7018_p2)
}
   0xa   :  { %s7022_s14 = scalar_lea.vmem %s35_s28, 1024  ;;  %p7027_p4 = scmp.lt.s32.totalorder %s35_s28, %s35_s28 }
   0xb   :  { %p7023_p3 = scmp.ne.s32.totalorder %s35_s28, %s7022_s14  ;;  %p7028_p5 = scmp.lt.s32.totalorder %s7022_s14, %s7022_s14 }
   0xd   :  { %p7029_p6 = por %p7028_p5, %p7027_p4 }
   0xf   :  { %p7030_p7 = pnand %p7029_p6, %p7023_p3 }
  0x11   :  { %7033 = shalt.err (!%p7030_p7)
}
  0x12   :  { %s7153_s15 = smov 512   ;;  %s7154_s16 = smov 32  }
  0x13   :  { %40 = dma.hbm_to_vmem [thread:$0]  %s8818_s1, 1024, %s35_s28, [#allocation7], %s7153_s15, %s7153_s15, %s7154_s16  }
  0x14   :  { %s7155_s19 = smov [#allocation9]   ;;  %s7156_s21 = smov [#allocation3]  }
  0x15   :  { %s60_s20 = sshll.u32 %s7155_s19, 4  ;;  %s22_s22 = sshll.u32 %s7156_s21, 4  ;;  %s61_s20 = int_to_ptr.vmem [resolvable:$true] %s60_s20  ;;  %s23_s22 = int_to_ptr.vmem [resolvable:$true] %s22_s22 }
  0x16   :  { %s7034_s25 = scalar_lea.hbm %s8821_s4, 16384 }
  0x17   :  { %p7035_p8 = scmp.ne.s32.totalorder %s8821_s4, %s7034_s25  ;;  %p7038_p9 = scmp.lt.u32.totalorder %s7034_s25, %s8821_s4 }
  0x19   :  { %p7040_p10 = pnand %p7038_p9, %p7035_p8 }
  0x1b   :  { %7043 = shalt.err (!%p7040_p10)
}
  0x1c   :  { %s7044_s1 = scalar_lea.vmem %s61_s20, 16384  ;;  %p7049_p12 = scmp.lt.s32.totalorder %s61_s20, %s61_s20 }
  0x1d   :  { %p7045_p11 = scmp.ne.s32.totalorder %s61_s20, %s7044_s1  ;;  %p7050_p13 = scmp.lt.s32.totalorder %s7044_s1, %s7044_s1 }
  0x1f   :  { %p7051_p0 = por %p7050_p13, %p7049_p12 }
  0x21   :  { %p7052_p1 = pnand %p7051_p0, %p7045_p11 }
  0x23   :  { %7055 = shalt.err (!%p7052_p1)
}
  0x24   :  { %66 = dma.hbm_to_vmem [thread:$0]  %s8821_s4, 16384, %s61_s20, [#allocation10], %s7153_s15, %s7153_s15, %s7154_s16  }
  0x25   :  { %s7056_s12 = scalar_lea.hbm %s8817_s0, 2048 }
  0x26   :  { %p7057_p2 = scmp.ne.s32.totalorder %s8817_s0, %s7056_s12  ;;  %p7060_p3 = scmp.lt.u32.totalorder %s7056_s12, %s8817_s0 }
  0x28   :  { %p7062_p4 = pnand %p7060_p3, %p7057_p2 }
  0x2a   :  { %7065 = shalt.err (!%p7062_p4)
}
  0x2b   :  { %s7066_s19 = scalar_lea.vmem %s23_s22, 2048  ;;  %p7071_p6 = scmp.lt.s32.totalorder %s23_s22, %s23_s22 }
  0x2c   :  { %p7067_p5 = scmp.ne.s32.totalorder %s23_s22, %s7066_s19  ;;  %p7072_p7 = scmp.lt.s32.totalorder %s7066_s19, %s7066_s19 }
  0x2e   :  { %p7073_p8 = por %p7072_p7, %p7071_p6 }
  0x30   :  { %p7074_p9 = pnand %p7073_p8, %p7067_p5 }
  0x32   :  { %7077 = shalt.err (!%p7074_p9)
}
  0x33   :  { %s7157_s4 = smov 128   ;;  %s7158_s20 = smov 8  }
  0x34   :  { %28 = dma.hbm_to_vmem [thread:$0]  %s8817_s0, 2048, %s23_s22, [#allocation4], %s7157_s4, %s7157_s4, %s7158_s20  }
  0x35   :  { %s7159_s24 = smov [#allocation8]   ;;  %s7160_s26 = smov [#allocation11]  }
  0x36   :  { %s46_s25 = sshll.u32 %s7159_s24, 4  ;;  %s74_s27 = sshll.u32 %s7160_s26, 4  ;;  %s47_s25 = int_to_ptr.vmem [resolvable:$true] %s46_s25  ;;  %s75_s27 = int_to_ptr.vmem [resolvable:$true] %s74_s27 }
  0x37   :  { %s7078_s1 = scalar_lea.hbm %s8819_s2, 8192 }
  0x38   :  { %p7079_p10 = scmp.ne.s32.totalorder %s8819_s2, %s7078_s1  ;;  %p7082_p11 = scmp.lt.u32.totalorder %s7078_s1, %s8819_s2 }
  0x3a   :  { %p7084_p12 = pnand %p7082_p11, %p7079_p10 }
  0x3c   :  { %7087 = shalt.err (!%p7084_p12)
}
  0x3d   :  { %s7088_s0 = scalar_lea.vmem %s47_s25, 8192  ;;  %p7093_p0 = scmp.lt.s32.totalorder %s47_s25, %s47_s25 }
  0x3e   :  { %p7089_p13 = scmp.ne.s32.totalorder %s47_s25, %s7088_s0  ;;  %p7094_p1 = scmp.lt.s32.totalorder %s7088_s0, %s7088_s0 }
  0x40   :  { %p7095_p2 = por %p7094_p1, %p7093_p0 }
  0x42   :  { %p7096_p3 = pnand %p7095_p2, %p7089_p13 }
  0x44   :  { %7099 = shalt.err (!%p7096_p3)
}
  0x45   :  { %52 = dma.hbm_to_vmem [thread:$0]  %s8819_s2, 8192, %s47_s25, [#allocation7], %s7153_s15, %s7153_s15, %s7154_s16  }
  0x46   :  { %s7100_s17 = scalar_lea.hbm %s8823_s6, 2048 }
  0x47   :  { %p7101_p4 = scmp.ne.s32.totalorder %s8823_s6, %s7100_s17  ;;  %p7104_p5 = scmp.lt.u32.totalorder %s7100_s17, %s8823_s6 }
  0x49   :  { %p7106_p6 = pnand %p7104_p5, %p7101_p4 }
  0x4b   :  { %7109 = shalt.err (!%p7106_p6)
}
  0x4c   :  { %s7110_s24 = scalar_lea.vmem %s75_s27, 2048  ;;  %p7115_p8 = scmp.lt.s32.totalorder %s75_s27, %s75_s27 }
  0x4d   :  { %p7111_p7 = scmp.ne.s32.totalorder %s75_s27, %s7110_s24  ;;  %p7116_p9 = scmp.lt.s32.totalorder %s7110_s24, %s7110_s24 }
  0x4f   :  { %p7117_p10 = por %p7116_p9, %p7115_p8 }
  0x51   :  { %p7118_p11 = pnand %p7117_p10, %p7111_p7 }
  0x53   :  { %7121 = shalt.err (!%p7118_p11)
}
  0x54   :  { %80 = dma.hbm_to_vmem [thread:$0]  %s8823_s6, 2048, %s75_s27, [#allocation10], %s7157_s4, %s7157_s4, %s7158_s20  }
  0x55   :  { %7144 = dma.done.wait [#allocation4], 2048  }
  0x56   :  { %7145 = vsyncadd [#allocation4], 4294965248 }
  0x57   :  { %7146 = dma.done.wait [#allocation7], 9216  }
  0x58   :  { %7147 = vsyncadd [#allocation7], 4294958080 }
  0x59   :  { %7148 = dma.done.wait [#allocation10], 18432  }
  0x5a   :  { %7149 = vsyncadd [#allocation10], 4294948864  ;;  %v8826_v0 = vmov 0.0   ;;  %v7162_v1 = vmov 1983009808   ;;  %v119_v3 = vlaneseq  ;;  %v387_v8 = vld [vmem:[#allocation6 + $0x8] sm:$0xff] }
  0x5b   :  { %529 = vmatprep.mubr.f32.mxu0 %v8826_v0  ;;  %607 = vmatprep.mubr.f32.mxu1 %v8826_v0  ;;  %v117_v2 = vunpack.c.l.s4 %v7162_v1  ;;  %v7163_v6 = vmov 1934713408   ;;  %v391_v9 = vld [vmem:[#allocation6 + $0x28] sm:$0xff]  ;;  %v386_v10 = vld [vmem:[#allocation6] sm:$0xff]  ;;  %v389_v13 = vld [vmem:[#allocation6 + $0x18] sm:$0xff]  ;;  %vm416_vm0 = vcmask 130048  }
  0x5c   :  { %v7287_v5 = vshrl.u32 %v119_v3, 7  ;;  %v181_v7 = vunpack.c.l.s4 %v7163_v6  ;;  %v4757_v11 = vpack.c.bf16 %v391_v9, %v387_v8  ;;  %v390_v12 = vld [vmem:[#allocation6 + $0x20] sm:$0xff]  ;;  %v393_v14 = vld [vmem:[#allocation6 + $0x38] sm:$0xff]  ;;  %v388_v40 = vld [vmem:[#allocation6 + $0x10] sm:$0xff]  ;;  %s7164_s27 = smov [#allocation12]  }
  0x5d   :  { %v118_v4 = vunpack.c.0.s8 %v117_v2  ;;  %v4759_v15 = vpack.c.bf16 %v390_v12, %v386_v10  ;;  %v4761_v16 = vpack.c.bf16 %v393_v14, %v389_v13  ;;  %v6476_v19 = vld [vmem:[#allocation3] ss:$16 sps:$4 sm:$0xff]   ;;  %v6478_v20 = vld [vmem:[#allocation3 + $0x8] ss:$16 sps:$4 sm:$0xff]   ;;  %v6484_v28 = vld [vmem:[#allocation3 + $0x44] ss:$16 sps:$4 sm:$0xff]  }
  0x5e   :  { %6333 = vmatprep.subr.bf16.mxu1 %v4757_v11  ;;  %4758 = vmatprep.subr.bf16.mxu0 %v4757_v11  ;;  %v182_v18 = vunpack.c.0.s8 %v181_v7  ;;  %v6480_v21 = vld [vmem:[#allocation3 + $0x20] ss:$16 sps:$4 sm:$0xff]   ;;  %v6482_v22 = vld [vmem:[#allocation3 + $0x28] ss:$16 sps:$4 sm:$0xff]   ;;  %v6486_v31 = vld [vmem:[#allocation3 + $0x4c] ss:$16 sps:$4 sm:$0xff]  }
  0x5f   :  { %v121_v17 = vsub.s32 %v118_v4, %v7287_v5  ;;  %6334 = vmatpush1.bf16.msra.mxu1 %v4759_v15  ;;  %4760 = vmatpush1.bf16.msra.mxu0 %v4759_v15  ;;  %v6488_v32 = vld [vmem:[#allocation3 + $0x64] ss:$16 sps:$4 sm:$0xff]   ;;  %v6490_v33 = vld [vmem:[#allocation3 + $0x6c] ss:$16 sps:$4 sm:$0xff]   ;;  %v6492_v35 = vld [vmem:[#allocation3 + $0x40] ss:$16 sps:$4 sm:$0xff]  }
  0x60   :  { %4762 = vmatprep.subr.bf16.mxu1 %v4761_v16  ;;  %v7299_v27 = vsub.s32 %v182_v18, %v7287_v5  ;;  %v6493_v41 = vld [vmem:[#allocation3 + $0x48] ss:$16 sps:$4 sm:$0xff]   ;;  %v6494_v42 = vld [vmem:[#allocation3 + $0x60] ss:$16 sps:$4 sm:$0xff]   ;;  %v6496_v46 = vld [vmem:[#allocation3 + $0x4] ss:$16 sps:$4 sm:$0xff]  }
  0x61   :  { %v7290_v23 = vrot.slane %v6476_v19, %v121_v17  ;;  %v7292_v24 = vrot.slane %v6478_v20, %v121_v17  ;;  %v7294_v25 = vrot.slane %v6480_v21, %v121_v17  ;;  %v7296_v26 = vrot.slane %v6482_v22, %v121_v17  ;;  %v6495_v43 = vld [vmem:[#allocation3 + $0x68] ss:$16 sps:$4 sm:$0xff]   ;;  %v6497_v47 = vld [vmem:[#allocation3 + $0xc] ss:$16 sps:$4 sm:$0xff]   ;;  %v6498_v48 = vld [vmem:[#allocation3 + $0x24] ss:$16 sps:$4 sm:$0xff]  }
  0x62   :  { %v7305_v34 = vrot.slane %v6484_v28, %v121_v17  ;;  %v7313_v38 = vrot.slane %v6486_v31, %v121_v17  ;;  %v7315_v39 = vrot.slane %v6488_v32, %v121_v17  ;;  %v7317_v44 = vrot.slane %v6490_v33, %v121_v17  ;;  %v392_v51 = vld [vmem:[#allocation6 + $0x30] sm:$0xff]  ;;  %v6499_v54 = vld [vmem:[#allocation3 + $0x2c] ss:$16 sps:$4 sm:$0xff]   ;;  %v851_v61 = vld [vmem:[#allocation8] sm:$0xff]  ;;  %s4554_s29 = sshll.u32 %s7164_s27, 4  ;;  %s4555_s29 = int_to_ptr.vmem [resolvable:$true] %s4554_s29 }
  0x63   :  { %v178_v29 = vcombine.low %v7290_v23, %v7292_v24  ;;  %v210_v30 = vcombine.low %v7294_v25, %v7296_v26  ;;  %v7319_v45 = vrot.slane %v6492_v35, %v121_v17  ;;  %v7327_v52 = vrot.slane %v6493_v41, %v121_v17  ;;  %v852_v55 = vld [vmem:[#allocation8 + $0x8] sm:$0xff]  ;;  %v855_v62 = vld [vmem:[#allocation8 + $0x20] sm:$0xff]  ;;  %v854_v4 = vld [vmem:[#allocation8 + $0x18] sm:$0xff]  ;;  %s7122_s30 = scalar_lea.vmem %s4555_s29, 256  ;;  %p7127_p13 = scmp.lt.s32.totalorder %s4555_s29, %s4555_s29 }
  0x64   :  { %v331_v50 = vcombine.high %v7305_v34, %v7313_v38  ;;  %v7329_v53 = vrot.slane %v6494_v42, %v121_v17  ;;  %v363_v56 = vcombine.high %v7315_v39, %v7317_v44  ;;  %v7333_v57 = vrot.slane %v6495_v43, %v121_v17  ;;  %v856_v60 = vld [vmem:[#allocation8 + $0x28] sm:$0xff]  ;;  %v858_v10 = vld [vmem:[#allocation8 + $0x38] sm:$0xff]  ;;  %v859_v20 = vld [vmem:[#allocation8 + $0x40] sm:$0xff]  ;;  %p7123_p12 = scmp.ne.s32.totalorder %s4555_s29, %s7122_s30  ;;  %p7128_p0 = scmp.lt.s32.totalorder %s7122_s30, %s7122_s30 }
  0x65   :  { %v7308_v36 = vrot.slane %v178_v29, %v7299_v27  ;;  %v7311_v37 = vrot.slane %v210_v30, %v7299_v27  ;;  %v7335_v58 = vrot.slane %v6496_v46, %v121_v17  ;;  %v7337_v59 = vrot.slane %v6497_v47, %v121_v17  ;;  %v860_v11 = vld [vmem:[#allocation8 + $0x48] sm:$0xff]  ;;  %v863_v21 = vld [vmem:[#allocation8 + $0x60] sm:$0xff] }
  0x66   :  { %v345_v63 = vrot.slane %v331_v50, %v7299_v27  ;;  %v314_v1 = vcombine.low %v7319_v45, %v7327_v52  ;;  %v7344_v2 = vrot.slane %v6498_v48, %v121_v17  ;;  %v7346_v3 = vrot.slane %v6499_v54, %v121_v17  ;;  %v864_v12 = vld [vmem:[#allocation8 + $0x68] sm:$0xff]  ;;  %v867_v41 = vld [vmem:[#allocation8 + $0x80] sm:$0xff]  ;;  %v853_v54 = vld [vmem:[#allocation8 + $0x10] sm:$0xff]  ;;  %p7129_p1 = por %p7128_p0, %p7127_p13 }
  0x67   :  { %v7323_v49 = vcombine.low %v7308_v36, %v7311_v37  ;;  %v377_v6 = vrot.slane %v363_v56, %v7299_v27  ;;  %v4763_v7 = vpack.c.bf16 %v392_v51, %v388_v40  ;;  %v346_v8 = vcombine.low %v7329_v53, %v7333_v57  ;;  %v868_v31 = vld [vmem:[#allocation8 + $0x88] sm:$0xff]  ;;  %v871_v42 = vld [vmem:[#allocation8 + $0xa0] sm:$0xff] }
  0x68   :  { %v195_v9 = vcombine.high %v7335_v58, %v7337_v59  ;;  %v322_v13 = vrot.slane %v314_v1, %v7299_v27  ;;  %v227_v14 = vcombine.high %v7344_v2, %v7346_v3  ;;  %v7357_v15 = vpack.c.bf16 %v856_v60, %v852_v55  ;;  %v872_v32 = vld [vmem:[#allocation8 + $0xa8] sm:$0xff]  ;;  %v879_v50 = vld [vmem:[#allocation8 + $0xe0] sm:$0xff]  ;;  %v857_v55 = vld [vmem:[#allocation8 + $0x30] sm:$0xff]  ;;  %p7130_p2 = pnand %p7129_p1, %p7123_p12 }
  0x69   :  { %4575 = vmatmul.mubr.msk.f32.vlgmr.msra.gmra.mrb[0].mxu0 %vm416_vm0, %v7323_v49  ;;  %v7359_v16 = vpack.c.bf16 %v855_v62, %v851_v61  ;;  %v7361_v17 = vcombine.low %v345_v63, %v377_v6  ;;  %v354_v18 = vrot.slane %v346_v8, %v7299_v27  ;;  %v7371_v28 = vpack.c.bf16 %v858_v10, %v854_v4  ;;  %v876_v47 = vld [vmem:[#allocation8 + $0xc8] sm:$0xff]  ;;  %v862_v62 = vld [vmem:[#allocation8 + $0x58] sm:$0xff]  ;;  %v861_v10 = vld [vmem:[#allocation8 + $0x50] sm:$0xff] }
  0x6a   :  { %535 = vmatprep.mubr.f32.mxu0 %v8826_v0  ;;  %8984 = vst [vmem:[#allocation17_spill] sm:$0xff] %v7357_v15  ;;  %v7365_v19 = vrot.slane %v195_v9, %v7299_v27  ;;  %v7368_v22 = vrot.slane %v227_v14, %v7299_v27  ;;  %4766 = vmatprep.subr.bf16.mxu0 %v7357_v15  ;;  %v880_v48 = vld [vmem:[#allocation8 + $0xe8] sm:$0xff] }
  0x6b   :  { %8985 = vst [vmem:[#allocation18_spill] sm:$0xff] %v7371_v28  ;;  %v7373_v29 = vpack.c.bf16 %v864_v12, %v860_v11  ;;  %4588 = vmatmul.mubr.msk.f32.vlgmr.msra.gmra.mrb[0].mxu1 %vm416_vm0, %v7361_v17  ;;  %v7377_v30 = vcombine.low %v322_v13, %v354_v18  ;;  %4768 = vmatpush1.bf16.msra.mxu0 %v7359_v16  ;;  %v884_v4 = vld [vmem:[#allocation8 + $0x108] sm:$0xff]  ;;  %v865_v11 = vld [vmem:[#allocation8 + $0x70] sm:$0xff]  ;;  %v870_v12 = vld [vmem:[#allocation8 + $0x98] sm:$0xff] }
  0x6c   :  { %4764 = vmatpush1.bf16.msra.mxu1 %v4763_v7  ;;  %613 = vmatprep.mubr.f32.mxu1 %v8826_v0  ;;  %v7383_v33 = vcombine.high %v7365_v19, %v7368_v22  ;;  %v179_v35 = vcombine.high %v7290_v23, %v7292_v24  ;;  %v7387_v40 = vpack.c.bf16 %v863_v21, %v859_v20  ;;  %v892_v20 = vld [vmem:[#allocation8 + $0x148] sm:$0xff] }
  0x6d   :  { %4576 = vmatmul.mubr.msk.f32.gmra.mrb[2].mxu0 %vm416_vm0, %v7377_v30  ;;  %v7393_v43 = vcombine.high %v7308_v36, %v7311_v37  ;;  %4798 = vmatprep.subr.bf16.mxu1 %v7371_v28  ;;  %v211_v46 = vcombine.high %v7294_v25, %v7296_v26  ;;  %v7400_v23 = vpack.c.bf16 %v872_v32, %v868_v31  ;;  %v875_v37 = vld [vmem:[#allocation8 + $0xc0] sm:$0xff]  ;;  %v896_v21 = vld [vmem:[#allocation8 + $0x168] sm:$0xff] }
  0x6e   :  { %541 = vmatprep.mubr.f32.mxu0 %v8826_v0  ;;  %4770 = vmatprep.subr.bf16.mxu0 %v7373_v29  ;;  %v7404_v24 = vcombine.high %v345_v63, %v377_v6  ;;  %v7407_v36 = vpack.c.bf16 %v871_v42, %v867_v41  ;;  %v7411_v25 = vrot.slane %v179_v35, %v7299_v27  ;;  %v866_v63 = vld [vmem:[#allocation8 + $0x78] sm:$0xff]  ;;  %v888_v6 = vld [vmem:[#allocation8 + $0x128] sm:$0xff]  ;;  %v891_v32 = vld [vmem:[#allocation8 + $0x140] sm:$0xff] }
  0x6f   :  { %4589 = vmatmul.mubr.msk.f32.gmra.mrb[2].mxu1 %vm416_vm0, %v7383_v33  ;;  %4772 = vmatpush1.bf16.msra.mxu0 %v7387_v40  ;;  %v7414_v26 = vpack.c.bf16 %v880_v48, %v876_v47  ;;  %v7418_v51 = vcombine.high %v322_v13, %v354_v18  ;;  %v225_v56 = vrot.slane %v211_v46, %v7299_v27  ;;  %v874_v13 = vld [vmem:[#allocation8 + $0xb8] sm:$0xff]  ;;  %v895_v35 = vld [vmem:[#allocation8 + $0x160] sm:$0xff]  ;;  %v869_v42 = vld [vmem:[#allocation8 + $0x90] sm:$0xff] }
  0x70   :  { %619 = vmatprep.mubr.f32.mxu1 %v8826_v0  ;;  %4774 = vmatprep.subr.bf16.mxu0 %v7400_v23  ;;  %v315_v60 = vcombine.high %v7319_v45, %v7327_v52  ;;  %v347_v61 = vcombine.high %v7329_v53, %v7333_v57  ;;  %v7429_v1 = vpack.c.bf16 %v879_v50, %v875_v37  ;;  %v883_v45 = vld [vmem:[#allocation8 + $0x100] sm:$0xff]  ;;  %v873_v46 = vld [vmem:[#allocation8 + $0xb0] sm:$0xff]  ;;  %v878_v47 = vld [vmem:[#allocation8 + $0xd8] sm:$0xff] }
  0x71   :  { %4577 = vmatmul.mubr.msk.f32.gmra.mrb[4].mxu0 %vm416_vm0, %v7393_v43  ;;  %v7432_v7 = vpack.c.bf16 %v857_v55, %v853_v54  ;;  %v887_v52 = vld [vmem:[#allocation8 + $0x120] sm:$0xff]  ;;  %v7438_v53 = vcombine.low %v7411_v25, %v225_v56  ;;  %v7440_v57 = vpack.c.bf16 %v866_v63, %v862_v62  ;;  %v7445_v14 = vpack.c.bf16 %v888_v6, %v884_v4  ;;  %v882_v48 = vld [vmem:[#allocation8 + $0xf8] sm:$0xff]  ;;  %v900_v54 = vld [vmem:[#allocation8 + $0x188] sm:$0xff] }
  0x72   :  { %547 = vmatprep.mubr.f32.mxu0 %v8826_v0  ;;  %v329_v8 = vrot.slane %v315_v60, %v7299_v27  ;;  %v361_v9 = vrot.slane %v347_v61, %v7299_v27  ;;  %v7450_v18 = vpack.c.bf16 %v887_v52, %v883_v45  ;;  %v7454_v31 = vpack.c.bf16 %v865_v11, %v861_v10  ;;  %v904_v55 = vld [vmem:[#allocation8 + $0x1a8] sm:$0xff]  ;;  %v899_v62 = vld [vmem:[#allocation8 + $0x180] sm:$0xff]  ;;  %v877_v45 = vld [vmem:[#allocation8 + $0xd0] sm:$0xff] }
  0x73   :  { %4590 = vmatmul.mubr.msk.f32.gmra.mrb[4].mxu1 %vm416_vm0, %v7404_v24  ;;  %4776 = vmatpush1.bf16.msra.mxu0 %v7407_v36  ;;  %v7461_v41 = vpack.c.bf16 %v874_v13, %v870_v12  ;;  %v7465_v37 = vpack.c.bf16 %v896_v21, %v892_v20  ;;  %v7470_v50 = vpack.c.bf16 %v895_v35, %v891_v32  ;;  %v903_v63 = vld [vmem:[#allocation8 + $0x1a0] sm:$0xff]  ;;  %v881_v52 = vld [vmem:[#allocation8 + $0xf0] sm:$0xff] }
  0x74   :  { %690 = vmatprep.mubr.f32.mxu1 %v8826_v0  ;;  %4778 = vmatprep.subr.bf16.mxu0 %v7414_v26  ;;  %v7474_v60 = vpack.c.bf16 %v873_v46, %v869_v42  ;;  %v194_v61 = vcombine.low %v7335_v58, %v7337_v59  ;;  %v226_v4 = vcombine.low %v7344_v2, %v7346_v3  ;;  %v886_v58 = vld [vmem:[#allocation8 + $0x118] sm:$0xff]  ;;  %v908_v3 = vld [vmem:[#allocation8 + $0x1c8] sm:$0xff]  ;;  %v885_v32 = vld [vmem:[#allocation8 + $0x110] sm:$0xff] }
  0x75   :  { %4578 = vmatmul.mubr.msk.f32.gmra.mrb[6].mxu0 %vm416_vm0, %v7418_v51  ;;  %v7486_v6 = vpack.c.bf16 %v882_v48, %v878_v47  ;;  %v890_v59 = vld [vmem:[#allocation8 + $0x138] sm:$0xff]  ;;  %v7490_v10 = vpack.c.bf16 %v904_v55, %v900_v54  ;;  %v7497_v2 = vpack.c.bf16 %v903_v63, %v899_v62  ;;  %v330_v12 = vcombine.low %v7305_v34, %v7313_v38  ;;  %v889_v35 = vld [vmem:[#allocation8 + $0x130] sm:$0xff] }
  0x76   :  { %553 = vmatprep.mubr.f32.mxu0 %v8826_v0  ;;  %v202_v11 = vrot.slane %v194_v61, %v7299_v27  ;;  %v7504_v13 = vpack.c.bf16 %v881_v52, %v877_v45  ;;  %v362_v20 = vcombine.low %v7315_v39, %v7317_v44  ;;  %v7512_v21 = vpack.c.bf16 %v890_v59, %v886_v58  ;;  %v894_v38 = vld [vmem:[#allocation8 + $0x158] sm:$0xff]  ;;  %v893_v54 = vld [vmem:[#allocation8 + $0x150] sm:$0xff] }
  0x77   :  { %4591 = vmatmul.mubr.msk.f32.vlgmr.msra.gmra.mrb[6].mxu1 %vm416_vm0, %v7323_v49  ;;  %4780 = vmatpush1.bf16.msra.mxu0 %v7429_v1  ;;  %v7459_v49 = vcombine.low %v329_v8, %v361_v9  ;;  %v898_v42 = vld [vmem:[#allocation8 + $0x178] sm:$0xff]  ;;  %v338_v39 = vrot.slane %v330_v12, %v7299_v27  ;;  %v7526_v44 = vpack.c.bf16 %v889_v35, %v885_v32  ;;  %v897_v55 = vld [vmem:[#allocation8 + $0x170] sm:$0xff] }
  0x78   :  { %4800 = vmatpush1.bf16.msra.mxu1 %v7432_v7  ;;  %696 = vmatprep.mubr.f32.mxu1 %v8826_v0  ;;  %v370_v48 = vrot.slane %v362_v20, %v7299_v27  ;;  %v902_v61 = vld [vmem:[#allocation8 + $0x198] sm:$0xff]  ;;  %v901_v45 = vld [vmem:[#allocation8 + $0x190] sm:$0xff] }
  0x79   :  { %4579 = vmatmul.mubr.msk.f32.gmra.mrb[8].mxu0 %vm416_vm0, %v7438_v53  ;;  %4802 = vmatprep.subr.bf16.mxu1 %v7440_v57  ;;  %v906_v62 = vld [vmem:[#allocation8 + $0x1b8] sm:$0xff]  ;;  %v905_v52 = vld [vmem:[#allocation8 + $0x1b0] sm:$0xff] }
  0x7a   :  { %559 = vmatprep.mubr.f32.mxu0 %v8826_v0  ;;  %4782 = vmatprep.subr.bf16.mxu0 %v7445_v14  ;;  %v382_v63 = vcombine.low %v338_v39, %v370_v48  ;;  %v914_v58 = vld [vmem:[#allocation8 + $0x1f8] sm:$0xff]  ;;  %v7552_v59 = vpack.c.bf16 %v905_v52, %v901_v45  ;;  %v909_v12 = vld [vmem:[#allocation8 + $0x1d0] sm:$0xff] }
  0x7b   :  { %4592 = vmatmul.mubr.msk.f32.gmra.mrb[8].mxu1 %vm416_vm0, %v7377_v30  ;;  %4784 = vmatpush1.bf16.msra.mxu0 %v7450_v18  ;;  %v7481_v30 = vcombine.high %v7411_v25, %v225_v56  ;;  %v7494_v25 = vcombine.high %v329_v8, %v361_v9  ;;  %v912_v56 = vld [vmem:[#allocation8 + $0x1e8] sm:$0xff]  ;;  %v911_v8 = vld [vmem:[#allocation8 + $0x1e0] sm:$0xff]  ;;  %v234_v9 = vrot.slane %v226_v4, %v7299_v27  ;;  %v917_v32 = vld [vmem:[#allocation9 + $0x10] sm:$0xff] }
  0x7c   :  { %702 = vmatprep.mubr.f32.mxu1 %v8826_v0  ;;  %4804 = vmatpush1.bf16.msra.mxu1 %v7454_v31  ;;  %v7516_v34 = vpack.c.bf16 %v912_v56, %v908_v3  ;;  %v7541_v27 = vpack.c.bf16 %v897_v55, %v893_v54  ;;  %v7545_v4 = vpack.c.bf16 %v906_v62, %v902_v61  ;;  %v921_v35 = vld [vmem:[#allocation9 + $0x30] sm:$0xff]  ;;  %v923_v61 = vld [vmem:[#allocation9 + $0x40] sm:$0xff] }
  0x7d   :  { %4580 = vmatmul.mubr.msk.f32.gmra.mrb[10].mxu0 %vm416_vm0, %v7459_v49  ;;  %4806 = vmatprep.subr.bf16.mxu1 %v7461_v41  ;;  %v246_v47 = vcombine.low %v202_v11, %v234_v9  ;;  %v247_v3 = vcombine.high %v202_v11, %v234_v9  ;;  %v383_v11 = vcombine.high %v338_v39, %v370_v48  ;;  %v919_v9 = vld [vmem:[#allocation9 + $0x20] sm:$0xff]  ;;  %v928_v39 = vld [vmem:[#allocation9 + $0x68] sm:$0xff]  ;;  %v930_v48 = vld [vmem:[#allocation9 + $0x78] sm:$0xff] }
  0x7e   :  { %565 = vmatprep.mubr.f32.mxu0 %v8826_v0  ;;  %4786 = vmatprep.subr.bf16.mxu0 %v7465_v37  ;;  %v927_v62 = vld [vmem:[#allocation9 + $0x60] sm:$0xff]  ;;  %v929_v52 = vld [vmem:[#allocation9 + $0x70] sm:$0xff] }
  0x7f   :  { %4593 = vmatmul.mubr.msk.f32.gmra.mrb[10].mxu1 %vm416_vm0, %v7393_v43  ;;  %4788 = vmatpush1.bf16.msra.mxu0 %v7470_v50  ;;  %v907_v43 = vld [vmem:[#allocation8 + $0x1c0] sm:$0xff]  ;;  %v7621_v45 = vpack.c.bf16 %v927_v62, %v923_v61 }
  0x80   :  { %708 = vmatprep.mubr.f32.mxu1 %v8826_v0  ;;  %4808 = vmatpush1.bf16.msra.mxu1 %v7474_v60  ;;  %v7521_v46 = vpack.c.bf16 %v911_v8, %v907_v43  ;;  %v913_v43 = vld [vmem:[#allocation8 + $0x1f0] sm:$0xff]  ;;  %v915_v8 = vld [vmem:[#allocation9] sm:$0xff] }
  0x81   :  { %4581 = vmatmul.mubr.msk.f32.gmra.mrb[12].mxu0 %vm416_vm0, %v7481_v30  ;;  %4810 = vmatprep.subr.bf16.mxu1 %v7486_v6  ;;  %8989 = vst [vmem:[#allocation22_spill] sm:$0xff] %v7621_v45  ;;  %v943_v61 = vld [vmem:[#allocation9 + $0xe0] sm:$0xff] }
  0x82   :  { %571 = vmatprep.mubr.f32.mxu0 %v8826_v0  ;;  %4790 = vmatprep.subr.bf16.mxu0 %v7490_v10 }
  0x83   :  { %4594 = vmatmul.mubr.msk.f32.gmra.mrb[12].mxu1 %vm416_vm0, %v7418_v51  ;;  %4792 = vmatpush1.bf16.msra.mxu0 %v7497_v2  ;;  %v7532_v51 = vpack.c.bf16 %v898_v42, %v894_v38  ;;  %v924_v38 = vld [vmem:[#allocation9 + $0x48] sm:$0xff]  ;;  %v7612_v42 = vpack.c.bf16 %v921_v35, %v917_v32 }
  0x84   :  { %714 = vmatprep.mubr.f32.mxu1 %v8826_v0  ;;  %4812 = vmatpush1.bf16.msra.mxu1 %v7504_v13  ;;  %v7616_v54 = vpack.c.bf16 %v928_v39, %v924_v38  ;;  %v940_v32 = vld [vmem:[#allocation9 + $0xc8] sm:$0xff]  ;;  %v942_v38 = vld [vmem:[#allocation9 + $0xd8] sm:$0xff] }
  0x85   :  { %4582 = vmatmul.mubr.msk.f32.gmra.mrb[14].mxu0 %vm416_vm0, %v7494_v25  ;;  %4814 = vmatprep.subr.bf16.mxu1 %v7512_v21  ;;  %8986 = vst [vmem:[#allocation19_spill] sm:$0xff] %v7612_v42  ;;  %v944_v35 = vld [vmem:[#allocation9 + $0xe8] sm:$0xff] }
  0x86   :  { %577 = vmatprep.mubr.f32.mxu0 %v8826_v0  ;;  %4794 = vmatprep.subr.bf16.mxu0 %v7516_v34  ;;  %8987 = vst [vmem:[#allocation20_spill] sm:$0xff] %v7616_v54  ;;  %v7641_v39 = vpack.c.bf16 %v944_v35, %v940_v32  ;;  %v951_v32 = vld [vmem:[#allocation9 + $0x120] sm:$0xff] }
  0x87   :  { %4595 = vmatmul.mubr.msk.f32.gmra.mrb[14].mxu1 %vm416_vm0, %v7438_v53  ;;  %4796 = vmatpush1.bf16.msra.mxu0 %v7521_v46  ;;  %v910_v53 = vld [vmem:[#allocation8 + $0x1d8] sm:$0xff] }
  0x88   :  { %720 = vmatprep.mubr.f32.mxu1 %v8826_v0  ;;  %4816 = vmatpush1.bf16.msra.mxu1 %v7526_v44  ;;  %v7556_v56 = vpack.c.bf16 %v914_v58, %v910_v53  ;;  %v932_v53 = vld [vmem:[#allocation9 + $0x88] sm:$0xff]  ;;  %8995 = vst [vmem:[#allocation28_spill] sm:$0xff] %v7641_v39 }
  0x89   :  { %4583 = vmatmul.mubr.msk.f32.gmra.mrb[16].mxu0 %vm416_vm0, %v246_v47  ;;  %4818 = vmatprep.subr.bf16.mxu1 %v7532_v51  ;;  %v936_v58 = vld [vmem:[#allocation9 + $0xa8] sm:$0xff] }
  0x8a   :  { %583 = vmatprep.mubr.f32.mxu0 %v8826_v0 }
  0x8b   :  { %4596 = vmatmul.mubr.msk.f32.gmra.mrb[16].mxu1 %vm416_vm0, %v7459_v49  ;;  %v7563_v49 = vpack.c.bf16 %v913_v43, %v909_v12  ;;  %v7627_v12 = vpack.c.bf16 %v936_v58, %v932_v53  ;;  %v934_v43 = vld [vmem:[#allocation9 + $0x98] sm:$0xff]  ;;  %v945_v53 = vld [vmem:[#allocation9 + $0xf0] sm:$0xff] }
  0x8c   :  { %726 = vmatprep.mubr.f32.mxu1 %v8826_v0  ;;  %4820 = vmatpush1.bf16.msra.mxu1 %v7541_v27 }
  0x8d   :  { %4584 = vmatmul.mubr.msk.f32.gmra.mrb[18].mxu0 %vm416_vm0, %v382_v63  ;;  %4822 = vmatprep.subr.bf16.mxu1 %v7545_v4  ;;  %8991 = vst [vmem:[#allocation24_spill] sm:$0xff] %v7627_v12 }
  0x8e   :  { %589 = vmatprep.mubr.f32.mxu0 %v8826_v0 }
  0x8f   :  { %4597 = vmatmul.mubr.msk.f32.gmra.mrb[18].mxu1 %vm416_vm0, %v7481_v30  ;;  %v248_v30 = vcombine.low %v7365_v19, %v7368_v22  ;;  %v920_v19 = vld [vmem:[#allocation9 + $0x28] sm:$0xff]  ;;  %v918_v22 = vld [vmem:[#allocation9 + $0x18] sm:$0xff] }
  0x90   :  { %732 = vmatprep.mubr.f32.mxu1 %v8826_v0  ;;  %4824 = vmatpush1.bf16.msra.mxu1 %v7552_v59 }
  0x91   :  { %4585 = vmatmul.mubr.msk.f32.gmra.mrb[20].mxu0 %vm416_vm0, %v247_v3  ;;  %4826 = vmatprep.subr.bf16.mxu1 %v7556_v56 }
  0x92   :  { %595 = vmatprep.mubr.f32.mxu0 %v8826_v0 }
  0x93   :  { %4598 = vmatmul.mubr.msk.f32.gmra.mrb[20].mxu1 %vm416_vm0, %v7494_v25 }
  0x94   :  { %738 = vmatprep.mubr.f32.mxu1 %v8826_v0  ;;  %4828 = vmatpush1.bf16.msra.mxu1 %v7563_v49 }
  0x95   :  { %4586 = vmatmul.mubr.msk.f32.gmra.mrb[22].mxu0 %vm416_vm0, %v383_v11 }
  0x96   :  { %601 = vmatprep.mubr.f32.mxu0 %v8826_v0 }
  0x97   :  { %4599 = vmatmul.mubr.msk.f32.gmra.mrb[22].mxu1 %vm416_vm0, %v246_v47  ;;  %v926_v47 = vld [vmem:[#allocation9 + $0x58] sm:$0xff] }
  0x98   :  { %744 = vmatprep.mubr.f32.mxu1 %v8826_v0  ;;  %v7618_v55 = vpack.c.bf16 %v930_v48, %v926_v47  ;;  %v946_v47 = vld [vmem:[#allocation9 + $0xf8] sm:$0xff]  ;;  %v939_v48 = vld [vmem:[#allocation9 + $0xc0] sm:$0xff] }
  0x99   :  { %4587 = vmatmul.mubr.msk.f32.gmra.mrb[24].mxu0 %vm416_vm0, %v248_v30  ;;  %v7643_v62 = vpack.c.bf16 %v946_v47, %v942_v38  ;;  %v949_v47 = vld [vmem:[#allocation9 + $0x110] sm:$0xff] }
  0x9a   :  { %1140 = vmatprep.mubr.f32.mxu0 %v8826_v0  ;;  %8988 = vst [vmem:[#allocation21_spill] sm:$0xff] %v7618_v55 }
  0x9b   :  { %4600 = vmatmul.mubr.msk.f32.gmra.mrb[24].mxu1 %vm416_vm0, %v382_v63  ;;  %v925_v63 = vld [vmem:[#allocation9 + $0x50] sm:$0xff]  ;;  %8996 = vst [vmem:[#allocation29_spill] sm:$0xff] %v7643_v62 }
  0x9c   :  { %750 = vmatprep.mubr.f32.mxu1 %v8826_v0 }
  0x9d   :  { %1141 = vmatmul.mubr.f32.vlgmr.msra.gmra.mrb[0].mxu0 %v8826_v0 }
  0x9e   :  { %1146 = vmatprep.mubr.f32.mxu0 %v8826_v0 }
  0x9f   :  { %4601 = vmatmul.mubr.msk.f32.gmra.mrb[26].mxu1 %vm416_vm0, %v247_v3  ;;  %v7625_v3 = vpack.c.bf16 %v929_v52, %v925_v63  ;;  %v7645_v63 = vpack.c.bf16 %v943_v61, %v939_v48  ;;  %v941_v52 = vld [vmem:[#allocation9 + $0xd0] sm:$0xff] }
  0xa0   :  { %756 = vmatprep.mubr.f32.mxu1 %v8826_v0  ;;  %v7648_v58 = vpack.c.bf16 %v945_v53, %v941_v52  ;;  %v953_v48 = vld [vmem:[#allocation9 + $0x130] sm:$0xff]  ;;  %v956_v52 = vld [vmem:[#allocation9 + $0x148] sm:$0xff] }
  0xa1   :  { %1147 = vmatmul.mubr.f32.gmra.mrb[2].mxu0 %v8826_v0  ;;  %8990 = vst [vmem:[#allocation23_spill] sm:$0xff] %v7625_v3  ;;  %8997 = vst [vmem:[#allocation30_spill] sm:$0xff] %v7645_v63  ;;  %v7660_v61 = vpack.c.bf16 %v953_v48, %v949_v47  ;;  %v960_v53 = vld [vmem:[#allocation9 + $0x168] sm:$0xff]  ;;  %v957_v47 = vld [vmem:[#allocation9 + $0x150] sm:$0xff] }
  0xa2   :  { %1350 = vmatprep.mubr.f32.mxu0 %v8826_v0  ;;  %8998 = vst [vmem:[#allocation31_spill] sm:$0xff] %v7648_v58  ;;  %v961_v48 = vld [vmem:[#allocation9 + $0x170] sm:$0xff] }
  0xa3   :  { %4602 = vmatmul.mubr.msk.f32.gmra.mrb[28].mxu1 %vm416_vm0, %v383_v11  ;;  %v938_v11 = vld [vmem:[#allocation9 + $0xb8] sm:$0xff]  ;;  %9002 = vst [vmem:[#allocation35_spill] sm:$0xff] %v7660_v61 }
  0xa4   :  { %762 = vmatprep.mubr.f32.mxu1 %v8826_v0 }
  0xa7   :  { %4603 = vmatmul.mubr.msk.f32.gmra.mrb[30].mxu1 %vm416_vm0, %v248_v30  ;;  %v7629_v30 = vpack.c.bf16 %v938_v11, %v934_v43  ;;  %v948_v43 = vld [vmem:[#allocation9 + $0x108] sm:$0xff] }
  0xa8   :  { %768 = vmatprep.mubr.f32.mxu1 %v8826_v0  ;;  %v952_v11 = vld [vmem:[#allocation9 + $0x128] sm:$0xff] }
  0xa9   :  { %8992 = vst [vmem:[#allocation25_spill] sm:$0xff] %v7629_v30 }
  0xab   :  { %4604 = vmatmul.mubr.msk.f32.gmra.mrb[32].mxu1 %vm416_vm0, %v7361_v17  ;;  %v916_v17 = vld [vmem:[#allocation9 + $0x8] sm:$0xff] }
  0xac   :  { %774 = vmatprep.mubr.f32.mxu1 %v8826_v0  ;;  %v7605_v25 = vpack.c.bf16 %v920_v19, %v916_v17  ;;  %v931_v17 = vld [vmem:[#allocation9 + $0x80] sm:$0xff] }
  0xad   :  { %v935_v19 = vld [vmem:[#allocation9 + $0xa0] sm:$0xff] }
  0xae   :  { %4830 = vmatprep.subr.bf16.mxu0 %v7605_v25 }
  0xaf   :  { %4605 = vmatmul.mubr.msk.f32.gmra.mrb[34].mxu1 %vm416_vm0, %v7383_v33  ;;  %v922_v33 = vld [vmem:[#allocation9 + $0x38] sm:$0xff] }
  0xb0   :  { %780 = vmatprep.mubr.f32.mxu1 %v8826_v0  ;;  %v7607_v20 = vpack.c.bf16 %v922_v33, %v918_v22  ;;  %v933_v22 = vld [vmem:[#allocation9 + $0x90] sm:$0xff]  ;;  %v7635_v33 = vpack.c.bf16 %v935_v19, %v931_v17  ;;  %v950_v17 = vld [vmem:[#allocation9 + $0x118] sm:$0xff]  ;;  %v7653_v19 = vpack.c.bf16 %v952_v11, %v948_v43  ;;  %v7665_v11 = vpack.c.bf16 %v960_v53, %v956_v52  ;;  %v968_v52 = vld [vmem:[#allocation9 + $0x1a8] sm:$0xff] }
  0xb1   :  { %v958_v43 = vld [vmem:[#allocation9 + $0x158] sm:$0xff] }
  0xb2   :  { %4894 = vmatprep.subr.bf16.mxu1 %v7607_v20  ;;  %8993 = vst [vmem:[#allocation26_spill] sm:$0xff] %v7635_v33  ;;  %8999 = vst [vmem:[#allocation32_spill] sm:$0xff] %v7653_v19  ;;  %v966_v53 = vld [vmem:[#allocation9 + $0x198] sm:$0xff] }
  0xb3   :  { %4606 = vmatmul.mubr.msk.f32.gmra.mrb[36].mxu1 %vm416_vm0, %v7404_v24  ;;  %v7609_v24 = vpack.c.bf16 %v919_v9, %v915_v8  ;;  %v937_v8 = vld [vmem:[#allocation9 + $0xb0] sm:$0xff]  ;;  %9003 = vst [vmem:[#allocation36_spill] sm:$0xff] %v7665_v11 }
  0xb4   :  { %1217 = vmatprep.mubr.f32.mxu1 %v8826_v0  ;;  %v7637_v9 = vpack.c.bf16 %v937_v8, %v933_v22  ;;  %v954_v22 = vld [vmem:[#allocation9 + $0x138] sm:$0xff]  ;;  %v947_v8 = vld [vmem:[#allocation9 + $0x100] sm:$0xff] }
  0xb5   :  { %4832 = vmatpush1.bf16.msra.mxu0 %v7609_v24  ;;  %v7655_v35 = vpack.c.bf16 %v954_v22, %v950_v17  ;;  %v7657_v38 = vpack.c.bf16 %v951_v32, %v947_v8  ;;  %v962_v17 = vld [vmem:[#allocation9 + $0x178] sm:$0xff]  ;;  %v955_v22 = vld [vmem:[#allocation9 + $0x140] sm:$0xff] }
  0xb6   :  { %4834 = vmatprep.subr.bf16.mxu0 %v7616_v54  ;;  %8994 = vst [vmem:[#allocation27_spill] sm:$0xff] %v7637_v9  ;;  %v959_v8 = vld [vmem:[#allocation9 + $0x160] sm:$0xff]  ;;  %v7667_v32 = vpack.c.bf16 %v962_v17, %v958_v43  ;;  %v970_v43 = vld [vmem:[#allocation9 + $0x1b8] sm:$0xff] }
  0xb7   :  { %1218 = vmatmul.mubr.f32.vlgmr.msra.gmra.mrb[6].mxu1 %v8826_v0  ;;  %9000 = vst [vmem:[#allocation33_spill] sm:$0xff] %v7655_v35  ;;  %9001 = vst [vmem:[#allocation34_spill] sm:$0xff] %v7657_v38  ;;  %v963_v17 = vld [vmem:[#allocation9 + $0x180] sm:$0xff] }
  0xb8   :  { %1223 = vmatprep.mubr.f32.mxu1 %v8826_v0  ;;  %4896 = vmatpush1.bf16.msra.mxu1 %v7612_v42  ;;  %9004 = vst [vmem:[#allocation37_spill] sm:$0xff] %v7667_v32 }
  0xb9   :  { %4898 = vmatprep.subr.bf16.mxu1 %v7618_v55  ;;  %4836 = vmatpush1.bf16.msra.mxu0 %v7621_v45 }
  0xba   :  { %4838 = vmatprep.subr.bf16.mxu0 %v7627_v12 }
  0xbb   :  { %1224 = vmatmul.mubr.f32.gmra.mrb[8].mxu1 %v8826_v0 }
  0xbc   :  { %1427 = vmatprep.mubr.f32.mxu1 %v8826_v0  ;;  %4900 = vmatpush1.bf16.msra.mxu1 %v7625_v3  ;;  %v7669_v0 = vpack.c.bf16 %v959_v8, %v955_v22  ;;  %v967_v22 = vld [vmem:[#allocation9 + $0x1a0] sm:$0xff]  ;;  %v7679_v8 = vpack.c.bf16 %v970_v43, %v966_v53  ;;  %v978_v53 = vld [vmem:[#allocation9 + $0x1f8] sm:$0xff] }
  0xbd   :  { %4902 = vmatprep.subr.bf16.mxu1 %v7629_v30  ;;  %4840 = vmatpush1.bf16.msra.mxu0 %v7635_v33  ;;  %v971_v43 = vld [vmem:[#allocation9 + $0x1c0] sm:$0xff] }
  0xbe   :  { %4842 = vmatprep.subr.bf16.mxu0 %v7641_v39  ;;  %9005 = vst [vmem:[#allocation38_spill] sm:$0xff] %v7669_v0  ;;  %9008 = vst [vmem:[#allocation41_spill] sm:$0xff] %v7679_v8 }
  0xc0   :  { %4904 = vmatpush1.bf16.msra.mxu1 %v7637_v9 }
  0xc1   :  { %4906 = vmatprep.subr.bf16.mxu1 %v7643_v62  ;;  %4844 = vmatpush1.bf16.msra.mxu0 %v7645_v63 }
  0xc2   :  { %4846 = vmatprep.subr.bf16.mxu0 %v7653_v19  ;;  %v7681_v19 = vpack.c.bf16 %v967_v22, %v963_v17  ;;  %v975_v17 = vld [vmem:[#allocation9 + $0x1e0] sm:$0xff] }
  0xc4   :  { %4908 = vmatpush1.bf16.msra.mxu1 %v7648_v58  ;;  %9009 = vst [vmem:[#allocation42_spill] sm:$0xff] %v7681_v19  ;;  %v1038_v58 = vld [vmem:[#allocation9 + $0x3d8] sm:$0xff] }
  0xc5   :  { %4910 = vmatprep.subr.bf16.mxu1 %v7655_v35  ;;  %4848 = vmatpush1.bf16.msra.mxu0 %v7657_v38  ;;  %v7672_v35 = vpack.c.bf16 %v961_v48, %v957_v47  ;;  %v965_v47 = vld [vmem:[#allocation9 + $0x190] sm:$0xff] }
  0xc6   :  { %4850 = vmatprep.subr.bf16.mxu0 %v7665_v11  ;;  %v969_v48 = vld [vmem:[#allocation9 + $0x1b0] sm:$0xff]  ;;  %v7693_v11 = vpack.c.bf16 %v975_v17, %v971_v43  ;;  %v983_v43 = vld [vmem:[#allocation9 + $0x220] sm:$0xff] }
  0xc7   :  { %9006 = vst [vmem:[#allocation39_spill] sm:$0xff] %v7672_v35 }
  0xc8   :  { %4912 = vmatpush1.bf16.msra.mxu1 %v7660_v61  ;;  %v964_v61 = vld [vmem:[#allocation9 + $0x188] sm:$0xff]  ;;  %9013 = vst [vmem:[#allocation46_spill] sm:$0xff] %v7693_v11 }
  0xc9   :  { %4914 = vmatprep.subr.bf16.mxu1 %v7667_v32  ;;  %4852 = vmatpush1.bf16.msra.mxu0 %v7669_v0  ;;  %v7677_v38 = vpack.c.bf16 %v968_v52, %v964_v61  ;;  %v7684_v32 = vpack.c.bf16 %v969_v48, %v965_v47  ;;  %v976_v61 = vld [vmem:[#allocation9 + $0x1e8] sm:$0xff]  ;;  %v974_v52 = vld [vmem:[#allocation9 + $0x1d8] sm:$0xff]  ;;  %v973_v47 = vld [vmem:[#allocation9 + $0x1d0] sm:$0xff] }
  0xca   :  { %v7691_v22 = vpack.c.bf16 %v978_v53, %v974_v52  ;;  %v977_v48 = vld [vmem:[#allocation9 + $0x1f0] sm:$0xff]  ;;  %v986_v52 = vld [vmem:[#allocation9 + $0x238] sm:$0xff]  ;;  %v979_v53 = vld [vmem:[#allocation9 + $0x200] sm:$0xff] }
  0xcb   :  { %9007 = vst [vmem:[#allocation40_spill] sm:$0xff] %v7677_v38  ;;  %4854 = vmatprep.subr.bf16.mxu0 %v7677_v38  ;;  %9010 = vst [vmem:[#allocation43_spill] sm:$0xff] %v7684_v32  ;;  %v7705_v38 = vpack.c.bf16 %v983_v43, %v979_v53  ;;  %v991_v53 = vld [vmem:[#allocation9 + $0x260] sm:$0xff] }
  0xcc   :  { %4916 = vmatpush1.bf16.msra.mxu1 %v7672_v35  ;;  %v972_v35 = vld [vmem:[#allocation9 + $0x1c8] sm:$0xff]  ;;  %9012 = vst [vmem:[#allocation45_spill] sm:$0xff] %v7691_v22 }
  0xcd   :  { %4918 = vmatprep.subr.bf16.mxu1 %v7679_v8  ;;  %4856 = vmatpush1.bf16.msra.mxu0 %v7681_v19  ;;  %v7689_v0 = vpack.c.bf16 %v976_v61, %v972_v35  ;;  %v7696_v8 = vpack.c.bf16 %v977_v48, %v973_v47  ;;  %v984_v35 = vld [vmem:[#allocation9 + $0x228] sm:$0xff]  ;;  %v982_v61 = vld [vmem:[#allocation9 + $0x218] sm:$0xff]  ;;  %9017 = vst [vmem:[#allocation50_spill] sm:$0xff] %v7705_v38  ;;  %v981_v47 = vld [vmem:[#allocation9 + $0x210] sm:$0xff] }
  0xce   :  { %v7703_v17 = vpack.c.bf16 %v986_v52, %v982_v61  ;;  %v985_v48 = vld [vmem:[#allocation9 + $0x230] sm:$0xff]  ;;  %v994_v61 = vld [vmem:[#allocation9 + $0x278] sm:$0xff]  ;;  %v987_v52 = vld [vmem:[#allocation9 + $0x240] sm:$0xff] }
  0xcf   :  { %9011 = vst [vmem:[#allocation44_spill] sm:$0xff] %v7689_v0  ;;  %4858 = vmatprep.subr.bf16.mxu0 %v7689_v0  ;;  %9014 = vst [vmem:[#allocation47_spill] sm:$0xff] %v7696_v8  ;;  %v7717_v0 = vpack.c.bf16 %v991_v53, %v987_v52  ;;  %v999_v52 = vld [vmem:[#allocation9 + $0x2a0] sm:$0xff] }
  0xd0   :  { %4920 = vmatpush1.bf16.msra.mxu1 %v7684_v32  ;;  %v980_v32 = vld [vmem:[#allocation9 + $0x208] sm:$0xff]  ;;  %9016 = vst [vmem:[#allocation49_spill] sm:$0xff] %v7703_v17 }
  0xd1   :  { %4922 = vmatprep.subr.bf16.mxu1 %v7691_v22  ;;  %4860 = vmatpush1.bf16.msra.mxu0 %v7693_v11  ;;  %v7701_v19 = vpack.c.bf16 %v984_v35, %v980_v32  ;;  %v7708_v22 = vpack.c.bf16 %v985_v48, %v981_v47  ;;  %v992_v32 = vld [vmem:[#allocation9 + $0x268] sm:$0xff]  ;;  %v990_v35 = vld [vmem:[#allocation9 + $0x258] sm:$0xff]  ;;  %9021 = vst [vmem:[#allocation54_spill] sm:$0xff] %v7717_v0  ;;  %v989_v47 = vld [vmem:[#allocation9 + $0x250] sm:$0xff] }
  0xd2   :  { %v7715_v43 = vpack.c.bf16 %v994_v61, %v990_v35  ;;  %v993_v48 = vld [vmem:[#allocation9 + $0x270] sm:$0xff]  ;;  %v1002_v35 = vld [vmem:[#allocation9 + $0x2b8] sm:$0xff]  ;;  %v995_v61 = vld [vmem:[#allocation9 + $0x280] sm:$0xff] }
  0xd3   :  { %9015 = vst [vmem:[#allocation48_spill] sm:$0xff] %v7701_v19  ;;  %4862 = vmatprep.subr.bf16.mxu0 %v7701_v19  ;;  %9018 = vst [vmem:[#allocation51_spill] sm:$0xff] %v7708_v22  ;;  %v7729_v19 = vpack.c.bf16 %v999_v52, %v995_v61  ;;  %v1007_v61 = vld [vmem:[#allocation9 + $0x2e0] sm:$0xff] }
  0xd4   :  { %4924 = vmatpush1.bf16.msra.mxu1 %v7696_v8  ;;  %v988_v8 = vld [vmem:[#allocation9 + $0x248] sm:$0xff]  ;;  %9020 = vst [vmem:[#allocation53_spill] sm:$0xff] %v7715_v43 }
  0xd5   :  { %4926 = vmatprep.subr.bf16.mxu1 %v7703_v17  ;;  %4864 = vmatpush1.bf16.msra.mxu0 %v7705_v38  ;;  %v7713_v11 = vpack.c.bf16 %v992_v32, %v988_v8  ;;  %v7720_v17 = vpack.c.bf16 %v993_v48, %v989_v47  ;;  %v1000_v8 = vld [vmem:[#allocation9 + $0x2a8] sm:$0xff]  ;;  %v998_v32 = vld [vmem:[#allocation9 + $0x298] sm:$0xff]  ;;  %9025 = vst [vmem:[#allocation58_spill] sm:$0xff] %v7729_v19  ;;  %v997_v47 = vld [vmem:[#allocation9 + $0x290] sm:$0xff] }
  0xd6   :  { %v7727_v53 = vpack.c.bf16 %v1002_v35, %v998_v32  ;;  %v1001_v48 = vld [vmem:[#allocation9 + $0x2b0] sm:$0xff]  ;;  %v1010_v32 = vld [vmem:[#allocation9 + $0x2f8] sm:$0xff]  ;;  %v1003_v35 = vld [vmem:[#allocation9 + $0x2c0] sm:$0xff] }
  0xd7   :  { %9019 = vst [vmem:[#allocation52_spill] sm:$0xff] %v7713_v11  ;;  %4866 = vmatprep.subr.bf16.mxu0 %v7713_v11  ;;  %9022 = vst [vmem:[#allocation55_spill] sm:$0xff] %v7720_v17  ;;  %v7741_v11 = vpack.c.bf16 %v1007_v61, %v1003_v35  ;;  %v1015_v35 = vld [vmem:[#allocation9 + $0x320] sm:$0xff] }
  0xd8   :  { %4928 = vmatpush1.bf16.msra.mxu1 %v7708_v22  ;;  %v996_v22 = vld [vmem:[#allocation9 + $0x288] sm:$0xff]  ;;  %9024 = vst [vmem:[#allocation57_spill] sm:$0xff] %v7727_v53 }
  0xd9   :  { %4930 = vmatprep.subr.bf16.mxu1 %v7715_v43  ;;  %4868 = vmatpush1.bf16.msra.mxu0 %v7717_v0  ;;  %v7725_v38 = vpack.c.bf16 %v1000_v8, %v996_v22  ;;  %v7732_v43 = vpack.c.bf16 %v1001_v48, %v997_v47  ;;  %v1008_v22 = vld [vmem:[#allocation9 + $0x2e8] sm:$0xff]  ;;  %v1006_v8 = vld [vmem:[#allocation9 + $0x2d8] sm:$0xff]  ;;  %9029 = vst [vmem:[#allocation62_spill] sm:$0xff] %v7741_v11  ;;  %v1005_v47 = vld [vmem:[#allocation9 + $0x2d0] sm:$0xff] }
  0xda   :  { %v7739_v52 = vpack.c.bf16 %v1010_v32, %v1006_v8  ;;  %v1009_v48 = vld [vmem:[#allocation9 + $0x2f0] sm:$0xff]  ;;  %v1018_v8 = vld [vmem:[#allocation9 + $0x338] sm:$0xff]  ;;  %v1011_v32 = vld [vmem:[#allocation9 + $0x300] sm:$0xff] }
  0xdb   :  { %9023 = vst [vmem:[#allocation56_spill] sm:$0xff] %v7725_v38  ;;  %4870 = vmatprep.subr.bf16.mxu0 %v7725_v38  ;;  %9026 = vst [vmem:[#allocation59_spill] sm:$0xff] %v7732_v43  ;;  %v7753_v38 = vpack.c.bf16 %v1015_v35, %v1011_v32  ;;  %v1023_v32 = vld [vmem:[#allocation9 + $0x360] sm:$0xff] }
  0xdc   :  { %4932 = vmatpush1.bf16.msra.mxu1 %v7720_v17  ;;  %v1004_v17 = vld [vmem:[#allocation9 + $0x2c8] sm:$0xff]  ;;  %9028 = vst [vmem:[#allocation61_spill] sm:$0xff] %v7739_v52 }
  0xdd   :  { %4934 = vmatprep.subr.bf16.mxu1 %v7727_v53  ;;  %4872 = vmatpush1.bf16.msra.mxu0 %v7729_v19  ;;  %v7737_v0 = vpack.c.bf16 %v1008_v22, %v1004_v17  ;;  %v7744_v53 = vpack.c.bf16 %v1009_v48, %v1005_v47  ;;  %v1016_v17 = vld [vmem:[#allocation9 + $0x328] sm:$0xff]  ;;  %v1014_v22 = vld [vmem:[#allocation9 + $0x318] sm:$0xff]  ;;  %9033 = vst [vmem:[#allocation66_spill] sm:$0xff] %v7753_v38  ;;  %v1013_v47 = vld [vmem:[#allocation9 + $0x310] sm:$0xff] }
  0xde   :  { %v7751_v61 = vpack.c.bf16 %v1018_v8, %v1014_v22  ;;  %v1017_v48 = vld [vmem:[#allocation9 + $0x330] sm:$0xff]  ;;  %v1026_v22 = vld [vmem:[#allocation9 + $0x378] sm:$0xff]  ;;  %v1019_v8 = vld [vmem:[#allocation9 + $0x340] sm:$0xff] }
  0xdf   :  { %9027 = vst [vmem:[#allocation60_spill] sm:$0xff] %v7737_v0  ;;  %4874 = vmatprep.subr.bf16.mxu0 %v7737_v0  ;;  %9030 = vst [vmem:[#allocation63_spill] sm:$0xff] %v7744_v53  ;;  %v7765_v0 = vpack.c.bf16 %v1023_v32, %v1019_v8  ;;  %v1031_v8 = vld [vmem:[#allocation9 + $0x3a0] sm:$0xff] }
  0xe0   :  { %4936 = vmatpush1.bf16.msra.mxu1 %v7732_v43  ;;  %v1012_v43 = vld [vmem:[#allocation9 + $0x308] sm:$0xff]  ;;  %9032 = vst [vmem:[#allocation65_spill] sm:$0xff] %v7751_v61 }
  0xe1   :  { %4938 = vmatprep.subr.bf16.mxu1 %v7739_v52  ;;  %4876 = vmatpush1.bf16.msra.mxu0 %v7741_v11  ;;  %v7749_v19 = vpack.c.bf16 %v1016_v17, %v1012_v43  ;;  %v7756_v52 = vpack.c.bf16 %v1017_v48, %v1013_v47  ;;  %v1024_v43 = vld [vmem:[#allocation9 + $0x368] sm:$0xff]  ;;  %v1022_v17 = vld [vmem:[#allocation9 + $0x358] sm:$0xff]  ;;  %9037 = vst [vmem:[#allocation70_spill] sm:$0xff] %v7765_v0  ;;  %v1021_v47 = vld [vmem:[#allocation9 + $0x350] sm:$0xff] }
  0xe2   :  { %v7763_v35 = vpack.c.bf16 %v1026_v22, %v1022_v17  ;;  %v1025_v48 = vld [vmem:[#allocation9 + $0x370] sm:$0xff]  ;;  %v1034_v17 = vld [vmem:[#allocation9 + $0x3b8] sm:$0xff]  ;;  %v1027_v22 = vld [vmem:[#allocation9 + $0x380] sm:$0xff] }
  0xe3   :  { %9031 = vst [vmem:[#allocation64_spill] sm:$0xff] %v7749_v19  ;;  %4878 = vmatprep.subr.bf16.mxu0 %v7749_v19  ;;  %9034 = vst [vmem:[#allocation67_spill] sm:$0xff] %v7756_v52  ;;  %v7777_v19 = vpack.c.bf16 %v1031_v8, %v1027_v22 }
  0xe4   :  { %4940 = vmatpush1.bf16.msra.mxu1 %v7744_v53  ;;  %v1020_v53 = vld [vmem:[#allocation9 + $0x348] sm:$0xff]  ;;  %9036 = vst [vmem:[#allocation69_spill] sm:$0xff] %v7763_v35 }
  0xe5   :  { %4942 = vmatprep.subr.bf16.mxu1 %v7751_v61  ;;  %4880 = vmatpush1.bf16.msra.mxu0 %v7753_v38  ;;  %v7761_v11 = vpack.c.bf16 %v1024_v43, %v1020_v53  ;;  %v7768_v61 = vpack.c.bf16 %v1025_v48, %v1021_v47  ;;  %v1032_v53 = vld [vmem:[#allocation9 + $0x3a8] sm:$0xff]  ;;  %v1030_v43 = vld [vmem:[#allocation9 + $0x398] sm:$0xff]  ;;  %9041 = vst [vmem:[#allocation74_spill] sm:$0xff] %v7777_v19  ;;  %v1029_v47 = vld [vmem:[#allocation9 + $0x390] sm:$0xff] }
  0xe6   :  { %v7775_v32 = vpack.c.bf16 %v1034_v17, %v1030_v43  ;;  %v1033_v48 = vld [vmem:[#allocation9 + $0x3b0] sm:$0xff]  ;;  %v1035_v43 = vld [vmem:[#allocation9 + $0x3c0] sm:$0xff] }
  0xe7   :  { %9035 = vst [vmem:[#allocation68_spill] sm:$0xff] %v7761_v11  ;;  %4882 = vmatprep.subr.bf16.mxu0 %v7761_v11  ;;  %9038 = vst [vmem:[#allocation71_spill] sm:$0xff] %v7768_v61  ;;  %v1040_v11 = vld [vmem:[#allocation9 + $0x3e8] sm:$0xff]  ;;  %v1039_v17 = vld [vmem:[#allocation9 + $0x3e0] sm:$0xff] }
  0xe8   :  { %4944 = vmatpush1.bf16.msra.mxu1 %v7756_v52  ;;  %v1028_v52 = vld [vmem:[#allocation9 + $0x388] sm:$0xff]  ;;  %9040 = vst [vmem:[#allocation73_spill] sm:$0xff] %v7775_v32  ;;  %v7789_v8 = vpack.c.bf16 %v1039_v17, %v1035_v43 }
  0xe9   :  { %4946 = vmatprep.subr.bf16.mxu1 %v7763_v35  ;;  %4884 = vmatpush1.bf16.msra.mxu0 %v7765_v0  ;;  %v7773_v38 = vpack.c.bf16 %v1032_v53, %v1028_v52  ;;  %v7780_v35 = vpack.c.bf16 %v1033_v48, %v1029_v47  ;;  %v1036_v0 = vld [vmem:[#allocation9 + $0x3c8] sm:$0xff]  ;;  %v1042_v53 = vld [vmem:[#allocation9 + $0x3f8] sm:$0xff]  ;;  %v1037_v47 = vld [vmem:[#allocation9 + $0x3d0] sm:$0xff] }
  0xea   :  { %v7784_v52 = vpack.c.bf16 %v1040_v11, %v1036_v0  ;;  %v7787_v22 = vpack.c.bf16 %v1042_v53, %v1038_v58  ;;  %9045 = vst [vmem:[#allocation78_spill] sm:$0xff] %v7789_v8  ;;  %v1041_v48 = vld [vmem:[#allocation9 + $0x3f0] sm:$0xff] }
  0xeb   :  { %9039 = vst [vmem:[#allocation72_spill] sm:$0xff] %v7773_v38  ;;  %4886 = vmatprep.subr.bf16.mxu0 %v7773_v38  ;;  %9042 = vst [vmem:[#allocation75_spill] sm:$0xff] %v7780_v35  ;;  %v7792_v38 = vpack.c.bf16 %v1041_v48, %v1037_v47  ;;  %v8924_v47 = vsub.s32 1, %v7287_v5  ;;  %v394_v48 = vld [vmem:[%s8820_s3] sm:$0xf] }
  0xec   :  { %4948 = vmatpush1.bf16.msra.mxu1 %v7768_v61  ;;  %9043 = vst [vmem:[#allocation76_spill] sm:$0xff] %v7784_v52  ;;  %9044 = vst [vmem:[#allocation77_spill] sm:$0xff] %v7787_v22 }
  0xed   :  { %4950 = vmatprep.subr.bf16.mxu1 %v7775_v32  ;;  %4888 = vmatpush1.bf16.msra.mxu0 %v7777_v19  ;;  %9046 = vst [vmem:[#allocation79_spill] sm:$0xff] %v7792_v38 }
  0xee   :  { %4890 = vmatprep.subr.bf16.mxu0 %v7784_v52 }
  0xf0   :  { %4952 = vmatpush1.bf16.msra.mxu1 %v7780_v35 }
  0xf1   :  { %4954 = vmatprep.subr.bf16.mxu1 %v7787_v22  ;;  %4892 = vmatpush1.bf16.msra.mxu0 %v7789_v8 }
  0xf2   :  { %4958 = vmatprep.subr.bf16.mxu0 %v7357_v15 }
  0xf4   :  { %4956 = vmatpush1.bf16.msra.mxu1 %v7792_v38 }
  0xf5   :  { %4990 = vmatprep.subr.bf16.mxu1 %v7371_v28  ;;  %v8927_v28 = vsub.s32 0, %v7287_v5 }
 0x13e   :  { %v7799_v0 = vpop.f32.mrb[0].mxu1 }
 0x13f   :  { %9047 = vst [vmem:[#allocation80_spill] sm:$0xff] %v7799_v0  ;;  %v7801_v58 = vpop.f32.mrb[1].mxu1  ;;  %v7818_v0 = vrot.slane %v394_v48, %v8924_v47 }
 0x140   :  { %9048 = vst [vmem:[#allocation81_spill] sm:$0xff] %v7801_v58 }
 0x141   :  { %9053 = vst [vmem:[#allocation86_spill] sm:$0xff] %v7818_v0 }
 0x142   :  { %v7803_v11 = vpop.f32.mrb[2].mxu1 }
 0x143   :  { %9049 = vst [vmem:[#allocation82_spill] sm:$0xff] %v7803_v11  ;;  %v7805_v53 = vpop.f32.mrb[3].mxu1 }
 0x144   :  { %9050 = vst [vmem:[#allocation83_spill] sm:$0xff] %v7805_v53  ;;  %v7822_v53 = vrot.slane %v394_v48, %v8927_v28  ;;  %v8934_v28 = vsub.s32 2, %v7287_v5 }
 0x146   :  { %v7807_v43 = vpop.f32.mrb[4].mxu1  ;;  %9054 = vst [vmem:[#allocation87_spill] sm:$0xff] %v7822_v53 }
 0x147   :  { %9051 = vst [vmem:[#allocation84_spill] sm:$0xff] %v7807_v43  ;;  %v7809_v17 = vpop.f32.mrb[5].mxu1 }
 0x148   :  { %9052 = vst [vmem:[#allocation85_spill] sm:$0xff] %v7809_v17 }
 0x170   :  { %v1142_v58 = vpop.f32.mrb[0].mxu0 }
 0x171   :  { %v1144_v43 = vpop.f32.mrb[1].mxu0  ;;  %v6335_v11 = vadd.f32 %v1142_v58, %v7822_v53 }
 0x172   :  { %v6336_v17 = vadd.f32 %v1144_v43, %v7818_v0  ;;  %v8937_v43 = vsub.s32 3, %v7287_v5 }
 0x173   :  { %v4607_v35 = vmul.f32 -1.442695, %v6335_v11 }
 0x174   :  { %v1148_v15 = vpop.f32.mrb[2].mxu0  ;;  %v4609_v22 = vmul.f32 -1.442695, %v6336_v17 }
 0x175   :  { %v6337_v38 = vadd.f32 %v1148_v15, %v7822_v53  ;;  %v1150_v8 = vpop.f32.mrb[3].mxu0  ;;  %v7832_v15 = vrot.slane %v394_v48, %v8934_v28 }
 0x176   :  { %v6338_v52 = vadd.f32 %v1150_v8, %v7818_v0  ;;  %6500 = vpow2.f32 %v4609_v22 }
 0x177   :  { %v4608_v47 = vmul.f32 -1.442695, %v6337_v38  ;;  %6502 = vpow2.f32 %v4607_v35  ;;  %v7836_v38 = vrot.slane %v394_v48, %v8937_v43 }
 0x178   :  { %v4610_v19 = vmul.f32 -1.442695, %v6338_v52 }
 0x179   :  { %6504 = vpow2.f32 %v4608_v47 }
 0x17a   :  { %6506 = vpow2.f32 %v4610_v19 }
 0x180   :  { %v6501_v32 = vpop.eup %6500 }
 0x181   :  { %v6503_v58 = vpop.eup %6502  ;;  %v1256_v63 = vadd.f32 1.0, %v6501_v32 }
 0x182   :  { %v1244_v11 = vadd.f32 1.0, %v6503_v58 }
 0x183   :  { %v6505_v61 = vpop.eup %6504  ;;  %6508 = vrcp.f32 %v1256_v63 }
 0x184   :  { %v6507_v8 = vpop.eup %6506  ;;  %v1245_v35 = vadd.f32 1.0, %v6505_v61  ;;  %6510 = vrcp.f32 %v1244_v11 }
 0x185   :  { %v1257_v52 = vadd.f32 1.0, %v6507_v8 }
 0x18a   :  { %v1219_v19 = vpop.f32.mrb[6].mxu1 }
 0x18b   :  { %v6373_v22 = vadd.f32 %v1219_v19, %v7832_v15  ;;  %v1221_v17 = vpop.f32.mrb[7].mxu1 }
 0x18c   :  { %v6374_v32 = vadd.f32 %v1221_v17, %v7836_v38 }
 0x18d   :  { %6512 = vtanh.f32 %v6373_v22  ;;  %v6509_v48 = vpop.eup %6508 }
 0x18e   :  { %6514 = vrcp.f32 %v1245_v35  ;;  %v4611_v47 = vmul.f32 -1.442695, %v6374_v32  ;;  %v1225_v28 = vpop.f32.mrb[8].mxu1  ;;  %v6511_v8 = vpop.eup %6510  ;;  %v1276_v43 = vmul.f32 0.0, %v6509_v48 }
 0x18f   :  { %6516 = vrcp.f32 %v1257_v52  ;;  %v6375_v58 = vadd.f32 %v1225_v28, %v7832_v15  ;;  %v1227_v0 = vpop.f32.mrb[9].mxu1 }
 0x190   :  { %6518 = vpow2.f32 %v4611_v47  ;;  %v6376_v61 = vadd.f32 %v1227_v0, %v7836_v38 }
 0x191   :  { %6520 = vtanh.f32 %v6375_v58 }
 0x192   :  { %v4612_v63 = vmul.f32 -1.442695, %v6376_v61 }
 0x194   :  { %6522 = vpow2.f32 %v4612_v63 }
 0x197   :  { %v6513_v19 = vpop.eup %6512 }
 0x198   :  { %v6515_v11 = vpop.eup %6514  ;;  %v1278_v17 = vmul.f32 %v6513_v19, %v6511_v8 }
 0x199   :  { %v6517_v22 = vpop.eup %6516 }
 0x19a   :  { %v6519_v35 = vpop.eup %6518  ;;  %v7842_v32 = vadd.f32 %v1278_v17, %v1276_v43  ;;  %v1277_v28 = vmul.f32 0.0, %v6517_v22  ;;  %v9056_v17 = vld [vmem:[#allocation30_spill] sm:$0xff]  ;;  %v9057_v22 = vld [vmem:[#allocation31_spill] sm:$0xff] }
 0x19b   :  { %v6521_v52 = vpop.eup %6520  ;;  %v1270_v53 = vadd.f32 1.0, %v6519_v35  ;;  %v9058_v35 = vld [vmem:[#allocation32_spill] sm:$0xff] }
 0x19c   :  { %6524 = vtanh.f32 %v7842_v32  ;;  %v1279_v47 = vmul.f32 %v6521_v52, %v6515_v11  ;;  %v9055_v11 = vmov 0.0   ;;  %v9059_v52 = vld [vmem:[#allocation33_spill] sm:$0xff] }
 0x19d   :  { %6526 = vrcp.f32 %v1270_v53 }
 0x19e   :  { %v6523_v0 = vpop.eup %6522  ;;  %v7845_v58 = vadd.f32 %v1279_v47, %v1277_v28  ;;  %v9060_v28 = vld [vmem:[#allocation34_spill] sm:$0xff]  ;;  %v9061_v47 = vld [vmem:[#allocation35_spill] sm:$0xff] }
 0x19f   :  { %v1271_v61 = vadd.f32 1.0, %v6523_v0  ;;  %v9062_v0 = vld [vmem:[#allocation36_spill] sm:$0xff] }
 0x1a0   :  { %6528 = vtanh.f32 %v7845_v58 }
 0x1a1   :  { %6530 = vrcp.f32 %v1271_v61  ;;  %v9063_v61 = vld [vmem:[#allocation37_spill] sm:$0xff] }
 0x1a6   :  { %v6525_v63 = vpop.eup %6524 }
 0x1a7   :  { %v6527_v48 = vpop.eup %6526 }
 0x1a8   :  { %v1284_v8 = vmul.f32 %v6527_v48, %v6525_v63  ;;  %v9064_v63 = vld [vmem:[#allocation38_spill] sm:$0xff]  ;;  %v9065_v48 = vld [vmem:[#allocation39_spill] sm:$0xff] }
 0x1aa   :  { %v6529_v19 = vpop.eup %6528  ;;  %1351 = vmatmul.mubr.f32.vlgmr.msra.gmra.mrb[26].mxu0 %v1284_v8  ;;  %1428 = vmatmul.mubr.f32.vlgmr.msra.gmra.mrb[38].mxu1 %v1284_v8 }
 0x1ab   :  { %v6531_v43 = vpop.eup %6530  ;;  %4960 = vmatpush1.bf16.msra.mxu0 %v7359_v16  ;;  %4992 = vmatpush1.bf16.msra.mxu1 %v7432_v7 }
 0x1ac   :  { %1356 = vmatprep.mubr.f32.mxu0 %v9055_v11  ;;  %1433 = vmatprep.mubr.f32.mxu1 %v9055_v11  ;;  %v1285_v53 = vmul.f32 %v6531_v43, %v6529_v19  ;;  %v9067_v19 = vld [vmem:[#allocation41_spill] sm:$0xff]  ;;  %v9068_v43 = vld [vmem:[#allocation42_spill] sm:$0xff] }
 0x1ad   :  { %4962 = vmatprep.subr.bf16.mxu0 %v7373_v29  ;;  %4994 = vmatprep.subr.bf16.mxu1 %v7440_v57 }
 0x1ae   :  { %1357 = vmatmul.mubr.f32.gmra.mrb[28].mxu0 %v1285_v53  ;;  %1434 = vmatmul.mubr.f32.gmra.mrb[40].mxu1 %v1285_v53 }
 0x1af   :  { %4964 = vmatpush1.bf16.msra.mxu0 %v7387_v40  ;;  %4996 = vmatpush1.bf16.msra.mxu1 %v7454_v31 }
 0x1b0   :  { %4966 = vmatprep.subr.bf16.mxu0 %v7400_v23  ;;  %4998 = vmatprep.subr.bf16.mxu1 %v7461_v41 }
 0x1b1   :  { %1563 = vmatprep.mubr.f32.mxu0 %v9055_v11  ;;  %1640 = vmatprep.mubr.f32.mxu1 %v9055_v11 }
 0x1b3   :  { %4968 = vmatpush1.bf16.msra.mxu0 %v7407_v36  ;;  %5000 = vmatpush1.bf16.msra.mxu1 %v7474_v60 }
 0x1b4   :  { %4970 = vmatprep.subr.bf16.mxu0 %v7414_v26  ;;  %5002 = vmatprep.subr.bf16.mxu1 %v7486_v6 }
 0x1b7   :  { %4972 = vmatpush1.bf16.msra.mxu0 %v7429_v1  ;;  %5004 = vmatpush1.bf16.msra.mxu1 %v7504_v13 }
 0x1b8   :  { %4974 = vmatprep.subr.bf16.mxu0 %v7445_v14  ;;  %5006 = vmatprep.subr.bf16.mxu1 %v7512_v21 }
 0x1bb   :  { %4976 = vmatpush1.bf16.msra.mxu0 %v7450_v18  ;;  %5008 = vmatpush1.bf16.msra.mxu1 %v7526_v44 }
 0x1bc   :  { %4978 = vmatprep.subr.bf16.mxu0 %v7465_v37  ;;  %5010 = vmatprep.subr.bf16.mxu1 %v7532_v51 }
 0x1bf   :  { %4980 = vmatpush1.bf16.msra.mxu0 %v7470_v50  ;;  %5012 = vmatpush1.bf16.msra.mxu1 %v7541_v27 }
 0x1c0   :  { %4982 = vmatprep.subr.bf16.mxu0 %v7490_v10  ;;  %5014 = vmatprep.subr.bf16.mxu1 %v7545_v4 }
 0x1c3   :  { %4984 = vmatpush1.bf16.msra.mxu0 %v7497_v2  ;;  %5016 = vmatpush1.bf16.msra.mxu1 %v7552_v59 }
 0x1c4   :  { %4986 = vmatprep.subr.bf16.mxu0 %v7516_v34  ;;  %5018 = vmatprep.subr.bf16.mxu1 %v7556_v56 }
 0x1c7   :  { %4988 = vmatpush1.bf16.msra.mxu0 %v7521_v46  ;;  %5020 = vmatpush1.bf16.msra.mxu1 %v7563_v49 }
 0x1c8   :  { %5022 = vmatprep.subr.bf16.mxu0 %v7605_v25  ;;  %5086 = vmatprep.subr.bf16.mxu1 %v7607_v20 }
 0x1ca   :  { %1564 = vmatmul.mubr.f32.vlgmr.msra.gmra.mrb[4].mxu0 %v1284_v8  ;;  %1641 = vmatmul.mubr.f32.vlgmr.msra.gmra.mrb[10].mxu1 %v1284_v8  ;;  %v9066_v8 = vld [vmem:[#allocation40_spill] sm:$0xff] }
 0x1cb   :  { %1569 = vmatprep.mubr.f32.mxu0 %v9055_v11  ;;  %1646 = vmatprep.mubr.f32.mxu1 %v9055_v11 }
 0x1cc   :  { %5024 = vmatpush1.bf16.msra.mxu0 %v7609_v24  ;;  %5088 = vmatpush1.bf16.msra.mxu1 %v7612_v42 }
 0x1cd   :  { %5026 = vmatprep.subr.bf16.mxu0 %v7616_v54  ;;  %5090 = vmatprep.subr.bf16.mxu1 %v7618_v55 }
 0x1ce   :  { %1570 = vmatmul.mubr.f32.gmra.mrb[6].mxu0 %v1285_v53  ;;  %1647 = vmatmul.mubr.f32.gmra.mrb[12].mxu1 %v1285_v53  ;;  %v9069_v53 = vld [vmem:[#allocation43_spill] sm:$0xff] }
 0x1d0   :  { %5028 = vmatpush1.bf16.msra.mxu0 %v7621_v45  ;;  %5092 = vmatpush1.bf16.msra.mxu1 %v7625_v3 }
 0x1d1   :  { %5030 = vmatprep.subr.bf16.mxu0 %v7627_v12  ;;  %5094 = vmatprep.subr.bf16.mxu1 %v7629_v30 }
 0x1d4   :  { %5032 = vmatpush1.bf16.msra.mxu0 %v7635_v33  ;;  %5096 = vmatpush1.bf16.msra.mxu1 %v7637_v9 }
 0x1d5   :  { %5034 = vmatprep.subr.bf16.mxu0 %v7641_v39  ;;  %5098 = vmatprep.subr.bf16.mxu1 %v7643_v62 }
 0x1d8   :  { %5036 = vmatpush1.bf16.msra.mxu0 %v9056_v17  ;;  %5100 = vmatpush1.bf16.msra.mxu1 %v9057_v22  ;;  %v9112_v17 = vsub.s32 3, %v7287_v5 }
 0x1d9   :  { %5038 = vmatprep.subr.bf16.mxu0 %v9058_v35  ;;  %5102 = vmatprep.subr.bf16.mxu1 %v9059_v52  ;;  %v9070_v52 = vld [vmem:[#allocation44_spill] sm:$0xff] }
 0x1dc   :  { %5040 = vmatpush1.bf16.msra.mxu0 %v9060_v28  ;;  %5104 = vmatpush1.bf16.msra.mxu1 %v9061_v47  ;;  %v9071_v28 = vld [vmem:[#allocation45_spill] sm:$0xff]  ;;  %v9072_v47 = vld [vmem:[#allocation46_spill] sm:$0xff] }
 0x1dd   :  { %5042 = vmatprep.subr.bf16.mxu0 %v9062_v0  ;;  %5106 = vmatprep.subr.bf16.mxu1 %v9063_v61  ;;  %v9073_v0 = vld [vmem:[#allocation47_spill] sm:$0xff]  ;;  %v9074_v61 = vld [vmem:[#allocation48_spill] sm:$0xff] }
 0x1e0   :  { %5044 = vmatpush1.bf16.msra.mxu0 %v9064_v63  ;;  %5108 = vmatpush1.bf16.msra.mxu1 %v9065_v48  ;;  %v9075_v63 = vld [vmem:[#allocation49_spill] sm:$0xff]  ;;  %v9076_v48 = vld [vmem:[#allocation50_spill] sm:$0xff] }
 0x1e1   :  { %5046 = vmatprep.subr.bf16.mxu0 %v9066_v8  ;;  %5110 = vmatprep.subr.bf16.mxu1 %v9067_v19  ;;  %v9077_v8 = vld [vmem:[#allocation51_spill] sm:$0xff]  ;;  %v9078_v19 = vld [vmem:[#allocation52_spill] sm:$0xff] }
 0x1e4   :  { %5048 = vmatpush1.bf16.msra.mxu0 %v9068_v43  ;;  %5112 = vmatpush1.bf16.msra.mxu1 %v9069_v53  ;;  %v9079_v43 = vld [vmem:[#allocation53_spill] sm:$0xff]  ;;  %v9080_v53 = vld [vmem:[#allocation54_spill] sm:$0xff] }
 0x1e5   :  { %5050 = vmatprep.subr.bf16.mxu0 %v9070_v52  ;;  %5114 = vmatprep.subr.bf16.mxu1 %v9071_v28  ;;  %v9081_v52 = vld [vmem:[#allocation55_spill] sm:$0xff]  ;;  %v9082_v28 = vld [vmem:[#allocation56_spill] sm:$0xff] }
 0x1e8   :  { %5052 = vmatpush1.bf16.msra.mxu0 %v9072_v47  ;;  %5116 = vmatpush1.bf16.msra.mxu1 %v9073_v0  ;;  %v9083_v47 = vld [vmem:[#allocation57_spill] sm:$0xff]  ;;  %v9084_v0 = vld [vmem:[#allocation58_spill] sm:$0xff] }
 0x1e9   :  { %5054 = vmatprep.subr.bf16.mxu0 %v9074_v61  ;;  %5118 = vmatprep.subr.bf16.mxu1 %v9075_v63  ;;  %v9085_v61 = vld [vmem:[#allocation59_spill] sm:$0xff]  ;;  %v9086_v63 = vld [vmem:[#allocation60_spill] sm:$0xff] }
 0x1ec   :  { %5056 = vmatpush1.bf16.msra.mxu0 %v9076_v48  ;;  %5120 = vmatpush1.bf16.msra.mxu1 %v9077_v8  ;;  %v9087_v48 = vld [vmem:[#allocation61_spill] sm:$0xff]  ;;  %v9088_v8 = vld [vmem:[#allocation62_spill] sm:$0xff] }
 0x1ed   :  { %5058 = vmatprep.subr.bf16.mxu0 %v9078_v19  ;;  %5122 = vmatprep.subr.bf16.mxu1 %v9079_v43  ;;  %v9089_v19 = vld [vmem:[#allocation63_spill] sm:$0xff]  ;;  %v9090_v43 = vld [vmem:[#allocation64_spill] sm:$0xff] }
 0x1f0   :  { %5060 = vmatpush1.bf16.msra.mxu0 %v9080_v53  ;;  %5124 = vmatpush1.bf16.msra.mxu1 %v9081_v52  ;;  %v9091_v53 = vld [vmem:[#allocation65_spill] sm:$0xff]  ;;  %v9092_v52 = vld [vmem:[#allocation66_spill] sm:$0xff] }
 0x1f1   :  { %5062 = vmatprep.subr.bf16.mxu0 %v9082_v28  ;;  %5126 = vmatprep.subr.bf16.mxu1 %v9083_v47  ;;  %v9093_v28 = vld [vmem:[#allocation67_spill] sm:$0xff]  ;;  %v9094_v47 = vld [vmem:[#allocation68_spill] sm:$0xff] }
 0x1f4   :  { %5064 = vmatpush1.bf16.msra.mxu0 %v9084_v0  ;;  %5128 = vmatpush1.bf16.msra.mxu1 %v9085_v61  ;;  %v9095_v0 = vld [vmem:[#allocation69_spill] sm:$0xff]  ;;  %v9096_v61 = vld [vmem:[#allocation70_spill] sm:$0xff] }
 0x1f5   :  { %5066 = vmatprep.subr.bf16.mxu0 %v9086_v63  ;;  %5130 = vmatprep.subr.bf16.mxu1 %v9087_v48  ;;  %v9097_v63 = vld [vmem:[#allocation71_spill] sm:$0xff]  ;;  %v9098_v48 = vld [vmem:[#allocation72_spill] sm:$0xff] }
 0x1f8   :  { %5068 = vmatpush1.bf16.msra.mxu0 %v9088_v8  ;;  %5132 = vmatpush1.bf16.msra.mxu1 %v9089_v19  ;;  %v9099_v8 = vld [vmem:[#allocation73_spill] sm:$0xff]  ;;  %v9100_v19 = vld [vmem:[#allocation74_spill] sm:$0xff] }
 0x1f9   :  { %5070 = vmatprep.subr.bf16.mxu0 %v9090_v43  ;;  %5134 = vmatprep.subr.bf16.mxu1 %v9091_v53  ;;  %v9101_v43 = vld [vmem:[#allocation75_spill] sm:$0xff]  ;;  %v9102_v53 = vld [vmem:[#allocation76_spill] sm:$0xff] }
 0x1fc   :  { %5072 = vmatpush1.bf16.msra.mxu0 %v9092_v52  ;;  %5136 = vmatpush1.bf16.msra.mxu1 %v9093_v28  ;;  %v9103_v52 = vld [vmem:[#allocation77_spill] sm:$0xff]  ;;  %v9104_v28 = vld [vmem:[#allocation78_spill] sm:$0xff] }
 0x1fd   :  { %5074 = vmatprep.subr.bf16.mxu0 %v9094_v47  ;;  %5138 = vmatprep.subr.bf16.mxu1 %v9095_v0  ;;  %v9105_v47 = vld [vmem:[#allocation79_spill] sm:$0xff]  ;;  %v9106_v0 = vld [vmem:[#allocation17_spill] sm:$0xff] }
 0x200   :  { %5076 = vmatpush1.bf16.msra.mxu0 %v9096_v61  ;;  %5140 = vmatpush1.bf16.msra.mxu1 %v9097_v63  ;;  %v9107_v61 = vld [vmem:[#allocation18_spill] sm:$0xff] }
 0x201   :  { %5078 = vmatprep.subr.bf16.mxu0 %v9098_v48  ;;  %5142 = vmatprep.subr.bf16.mxu1 %v9099_v8  ;;  %v1043_v8 = vld [vmem:[%s8822_s5] sm:$0xf] }
 0x202   :  { %v7965_v62 = vrot.slane %v1043_v8, %v9112_v17 }
 0x204   :  { %5080 = vmatpush1.bf16.msra.mxu0 %v9100_v19  ;;  %5144 = vmatpush1.bf16.msra.mxu1 %v9101_v43  ;;  %v9108_v19 = vsub.s32 0, %v7287_v5 }
 0x205   :  { %5082 = vmatprep.subr.bf16.mxu0 %v9102_v53  ;;  %5146 = vmatprep.subr.bf16.mxu1 %v9103_v52  ;;  %v9110_v53 = vsub.s32 1, %v7287_v5 }
 0x206   :  { %v7955_v48 = vrot.slane %v1043_v8, %v9108_v19 }
 0x207   :  { %v7959_v43 = vrot.slane %v1043_v8, %v9110_v53 }
 0x208   :  { %5084 = vmatpush1.bf16.msra.mxu0 %v9104_v28  ;;  %5148 = vmatpush1.bf16.msra.mxu1 %v9105_v47  ;;  %9109 = vst [vmem:[#allocation88_spill] sm:$0xff] %v7955_v48 }
 0x209   :  { %5150 = vmatprep.subr.bf16.mxu0 %v9106_v0  ;;  %5182 = vmatprep.subr.bf16.mxu1 %v9107_v61  ;;  %9111 = vst [vmem:[#allocation89_spill] sm:$0xff] %v7959_v43 }
 0x27d   :  { %v1352_v52 = vpop.f32.mrb[26].mxu0  ;;  %v1429_v28 = vpop.f32.mrb[38].mxu1 }
 0x27e   :  { %v1353_v47 = vadd.f32 %v1352_v52, %v7955_v48  ;;  %v1354_v63 = vpop.f32.mrb[27].mxu0  ;;  %v1431_v0 = vpop.f32.mrb[39].mxu1 }
 0x27f   :  { %v1355_v61 = vadd.f32 %v1354_v63, %v7959_v43  ;;  %v1432_v12 = vadd.f32 %v1431_v0, %v7965_v62 }
 0x280   :  { %v4613_v35 = vmul.f32 -1.442695, %v1353_v47  ;;  %v9113_v47 = vsub.s32 2, %v7287_v5 }
 0x281   :  { %v4615_v22 = vmul.f32 -1.442695, %v1355_v61  ;;  %v1358_v19 = vpop.f32.mrb[28].mxu0  ;;  %v1435_v39 = vpop.f32.mrb[40].mxu1  ;;  %v4617_v17 = vmul.f32 -1.442695, %v1432_v12 }
 0x282   :  { %6532 = vpow2.f32 %v4613_v35  ;;  %v1359_v53 = vadd.f32 %v1358_v19, %v7955_v48  ;;  %v1360_v9 = vpop.f32.mrb[29].mxu0  ;;  %v1437_v33 = vpop.f32.mrb[41].mxu1  ;;  %v7972_v61 = vrot.slane %v1043_v8, %v9113_v47 }
 0x283   :  { %6534 = vpow2.f32 %v4615_v22  ;;  %v1361_v52 = vadd.f32 %v1360_v9, %v7959_v43  ;;  %v9117_v43 = vld [vmem:[#allocation86_spill] sm:$0xff] }
 0x284   :  { %v4614_v30 = vmul.f32 -1.442695, %v1359_v53  ;;  %9114 = vst [vmem:[#allocation90_spill] sm:$0xff] %v7972_v61  ;;  %v1430_v35 = vadd.f32 %v1429_v28, %v7972_v61  ;;  %v1436_v9 = vadd.f32 %v1435_v39, %v7972_v61 }
 0x285   :  { %v4616_v63 = vmul.f32 -1.442695, %v1361_v52 }
 0x286   :  { %6536 = vpow2.f32 %v4614_v30 }
 0x287   :  { %6538 = vpow2.f32 %v4616_v63 }
 0x288   :  { %6540 = vpow2.f32 %v4617_v17 }
 0x289   :  { %6542 = vtanh.f32 %v1430_v35 }
 0x28c   :  { %v6533_v3 = vpop.eup %6532 }
 0x28d   :  { %v6535_v19 = vpop.eup %6534  ;;  %v1446_v48 = vadd.f32 1.0, %v6533_v3 }
 0x28e   :  { %v1458_v22 = vadd.f32 1.0, %v6535_v19 }
 0x28f   :  { %6544 = vrcp.f32 %v1446_v48 }
 0x290   :  { %v6537_v0 = vpop.eup %6536  ;;  %6546 = vrcp.f32 %v1458_v22 }
 0x291   :  { %v6539_v53 = vpop.eup %6538  ;;  %v1447_v5 = vadd.f32 1.0, %v6537_v0  ;;  %6548 = vtanh.f32 %v1436_v9  ;;  %v9116_v9 = vld [vmem:[#allocation87_spill] sm:$0xff] }
 0x292   :  { %v1459_v8 = vadd.f32 1.0, %v6539_v53  ;;  %v6541_v12 = vpop.eup %6540 }
 0x293   :  { %6550 = vrcp.f32 %v1447_v5  ;;  %v6543_v30 = vpop.eup %6542  ;;  %v1472_v3 = vadd.f32 1.0, %v6541_v12 }
 0x294   :  { %6552 = vrcp.f32 %v1459_v8 }
 0x295   :  { %6554 = vrcp.f32 %v1472_v3 }
 0x299   :  { %v6545_v28 = vpop.eup %6544 }
 0x29a   :  { %v6547_v52 = vpop.eup %6546  ;;  %v1480_v63 = vmul.f32 %v6545_v28, %v6543_v30 }
 0x29b   :  { %v1478_v47 = vmul.f32 0.0, %v6547_v52  ;;  %v6549_v17 = vpop.eup %6548 }
 0x29d   :  { %v6551_v35 = vpop.eup %6550  ;;  %v7976_v19 = vadd.f32 %v1480_v63, %v1478_v47  ;;  %v1565_v39 = vpop.f32.mrb[4].mxu0 }
 0x29e   :  { %v1642_v48 = vpop.f32.mrb[10].mxu1  ;;  %v6553_v22 = vpop.eup %6552  ;;  %v1481_v0 = vmul.f32 %v6551_v35, %v6549_v17  ;;  %v6339_v53 = vadd.f32 %v1565_v39, %v9116_v9  ;;  %v1438_v39 = vadd.f32 %v1437_v33, %v7965_v62 }
 0x29f   :  { %9115 = vst [vmem:[#allocation91_spill] sm:$0xff] %v7976_v19  ;;  %v1567_v5 = vpop.f32.mrb[5].mxu0  ;;  %v1644_v8 = vpop.f32.mrb[11].mxu1  ;;  %6556 = vtanh.f32 %v7976_v19  ;;  %v1479_v61 = vmul.f32 0.0, %v6553_v22 }
 0x2a0   :  { %v6340_v30 = vadd.f32 %v1567_v5, %v9117_v43  ;;  %v4619_v12 = vmul.f32 -1.442695, %v6339_v53  ;;  %v6378_v5 = vadd.f32 %v1644_v8, %v7836_v38 }
 0x2a1   :  { %v7981_v28 = vadd.f32 %v1481_v0, %v1479_v61  ;;  %v1571_v63 = vpop.f32.mrb[6].mxu0  ;;  %v1648_v47 = vpop.f32.mrb[12].mxu1  ;;  %v4618_v0 = vmul.f32 -1.442695, %v1438_v39 }
 0x2a2   :  { %v4621_v52 = vmul.f32 -1.442695, %v6340_v30  ;;  %6558 = vpow2.f32 %v4619_v12  ;;  %v6341_v45 = vadd.f32 %v1571_v63, %v9116_v9  ;;  %v1573_v3 = vpop.f32.mrb[7].mxu0  ;;  %v1650_v17 = vpop.f32.mrb[13].mxu1  ;;  %v6377_v30 = vadd.f32 %v1642_v48, %v7832_v15 }
 0x2a3   :  { %v6342_v35 = vadd.f32 %v1573_v3, %v9117_v43  ;;  %v6555_v61 = vpop.eup %6554  ;;  %v4623_v12 = vmul.f32 -1.442695, %v6378_v5  ;;  %v6380_v63 = vadd.f32 %v1650_v17, %v7836_v38  ;;  %v6379_v33 = vadd.f32 %v1648_v47, %v7832_v15 }
 0x2a4   :  { %6560 = vpow2.f32 %v4621_v52  ;;  %v4620_v19 = vmul.f32 -1.442695, %v6341_v45 }
 0x2a5   :  { %v4622_v22 = vmul.f32 -1.442695, %v6342_v35 }
 0x2a6   :  { %6562 = vpow2.f32 %v4620_v19  ;;  %v4624_v19 = vmul.f32 -1.442695, %v6380_v63 }
 0x2a7   :  { %6564 = vpow2.f32 %v4622_v22 }
 0x2a8   :  { %6566 = vpow2.f32 %v4618_v0 }
 0x2a9   :  { %v6557_v53 = vpop.eup %6556  ;;  %6568 = vtanh.f32 %v6377_v30 }
 0x2aa   :  { %v1486_v9 = vmul.f32 %v6557_v53, %v6555_v61  ;;  %6570 = vpow2.f32 %v4623_v12 }
 0x2ac   :  { %v6559_v55 = vpop.eup %6558  ;;  %1773 = vmatprep.mubr.f32.mxu0 %v1486_v9  ;;  %1850 = vmatprep.mubr.f32.mxu1 %v1486_v9 }
 0x2ad   :  { %v1667_v45 = vadd.f32 1.0, %v6559_v55 }
 0x2ae   :  { %v6561_v8 = vpop.eup %6560 }
 0x2af   :  { %6572 = vrcp.f32 %v1667_v45  ;;  %v1679_v52 = vadd.f32 1.0, %v6561_v8 }
 0x2b0   :  { %v6563_v3 = vpop.eup %6562  ;;  %6574 = vtanh.f32 %v6379_v33 }
 0x2b1   :  { %6576 = vrcp.f32 %v1679_v52  ;;  %v1668_v48 = vadd.f32 1.0, %v6563_v3  ;;  %v6565_v35 = vpop.eup %6564 }
 0x2b2   :  { %6578 = vpow2.f32 %v4624_v19  ;;  %v1680_v17 = vadd.f32 1.0, %v6565_v35  ;;  %v6567_v39 = vpop.eup %6566 }
 0x2b3   :  { %6580 = vrcp.f32 %v1668_v48  ;;  %v6569_v47 = vpop.eup %6568  ;;  %v1473_v63 = vadd.f32 1.0, %v6567_v39 }
 0x2b4   :  { %6582 = vrcp.f32 %v1680_v17  ;;  %v6571_v22 = vpop.eup %6570 }
 0x2b5   :  { %v1693_v0 = vadd.f32 1.0, %v6571_v22  ;;  %6584 = vtanh.f32 %v7981_v28 }
 0x2b7   :  { %6586 = vrcp.f32 %v1693_v0  ;;  %v9121_v0 = vld [vmem:[#allocation24_spill] sm:$0xff] }
 0x2b9   :  { %v6573_v9 = vpop.eup %6572 }
 0x2ba   :  { %v6575_v55 = vpop.eup %6574  ;;  %v1701_v5 = vmul.f32 %v6573_v9, %v6569_v47 }
 0x2bb   :  { %v6577_v61 = vpop.eup %6576 }
 0x2bc   :  { %v6579_v53 = vpop.eup %6578  ;;  %v1699_v30 = vmul.f32 %v6577_v61, %v7842_v32  ;;  %v9120_v61 = vld [vmem:[#allocation23_spill] sm:$0xff] }
 0x2bd   :  { %v6581_v12 = vpop.eup %6580  ;;  %v1694_v19 = vadd.f32 1.0, %v6579_v53  ;;  %v9122_v53 = vld [vmem:[#allocation25_spill] sm:$0xff] }
 0x2be   :  { %v7992_v33 = vadd.f32 %v1701_v5, %v1699_v30  ;;  %v1702_v45 = vmul.f32 %v6581_v12, %v6575_v55  ;;  %v6583_v8 = vpop.eup %6582  ;;  %v9118_v55 = vld [vmem:[#allocation21_spill] sm:$0xff]  ;;  %v9119_v5 = vld [vmem:[#allocation22_spill] sm:$0xff]  ;;  %v9124_v12 = vld [vmem:[#allocation27_spill] sm:$0xff] }
 0x2bf   :  { %v1700_v52 = vmul.f32 %v6583_v8, %v7845_v58  ;;  %v6585_v32 = vpop.eup %6584  ;;  %v9123_v30 = vld [vmem:[#allocation26_spill] sm:$0xff] }
 0x2c0   :  { %6588 = vtanh.f32 %v7992_v33  ;;  %v9127_v8 = vld [vmem:[#allocation30_spill] sm:$0xff] }
 0x2c1   :  { %6590 = vrcp.f32 %v1473_v63  ;;  %v7996_v3 = vadd.f32 %v1702_v45, %v1700_v52  ;;  %v6587_v48 = vpop.eup %6586  ;;  %v9125_v63 = vld [vmem:[#allocation28_spill] sm:$0xff]  ;;  %v9126_v45 = vld [vmem:[#allocation29_spill] sm:$0xff] }
 0x2c2   :  { %6592 = vrcp.f32 %v1694_v19  ;;  %v9128_v19 = vld [vmem:[#allocation31_spill] sm:$0xff]  ;;  %v9129_v52 = vld [vmem:[#allocation32_spill] sm:$0xff] }
 0x2c3   :  { %6594 = vtanh.f32 %v7996_v3 }
 0x2ca   :  { %v6589_v35 = vpop.eup %6588 }
 0x2cb   :  { %v1707_v17 = vmul.f32 %v6589_v35, %v6587_v48  ;;  %v6591_v39 = vpop.eup %6590  ;;  %v9131_v48 = vld [vmem:[#allocation34_spill] sm:$0xff]  ;;  %v9132_v35 = vld [vmem:[#allocation35_spill] sm:$0xff] }
 0x2cc   :  { %v6593_v47 = vpop.eup %6592  ;;  %v1487_v22 = vmul.f32 %v6591_v39, %v6585_v32  ;;  %v9130_v32 = vld [vmem:[#allocation33_spill] sm:$0xff] }
 0x2cd   :  { %1774 = vmatmul.mubr.f32.vlgmr.msra.gmra.mrb[30].mxu0 %v1707_v17  ;;  %1851 = vmatmul.mubr.f32.vlgmr.msra.gmra.mrb[42].mxu1 %v1707_v17  ;;  %v6595_v9 = vpop.eup %6594  ;;  %v9134_v39 = vld [vmem:[#allocation37_spill] sm:$0xff] }
 0x2ce   :  { %5152 = vmatpush1.bf16.msra.mxu0 %v7359_v16  ;;  %5184 = vmatpush1.bf16.msra.mxu1 %v7432_v7  ;;  %v1708_v58 = vmul.f32 %v6595_v9, %v6593_v47  ;;  %v9135_v47 = vld [vmem:[#allocation38_spill] sm:$0xff]  ;;  %v9137_v9 = vld [vmem:[#allocation40_spill] sm:$0xff] }
 0x2cf   :  { %1779 = vmatprep.mubr.f32.mxu0 %v1487_v22  ;;  %1856 = vmatprep.mubr.f32.mxu1 %v1487_v22  ;;  %v9136_v22 = vld [vmem:[#allocation39_spill] sm:$0xff] }
 0x2d0   :  { %5154 = vmatprep.subr.bf16.mxu0 %v7373_v29  ;;  %5186 = vmatprep.subr.bf16.mxu1 %v7440_v57 }
 0x2d1   :  { %1780 = vmatmul.mubr.f32.gmra.mrb[32].mxu0 %v1708_v58  ;;  %1857 = vmatmul.mubr.f32.gmra.mrb[44].mxu1 %v1708_v58 }
 0x2d2   :  { %5156 = vmatpush1.bf16.msra.mxu0 %v7387_v40  ;;  %5188 = vmatpush1.bf16.msra.mxu1 %v7454_v31 }
 0x2d3   :  { %5158 = vmatprep.subr.bf16.mxu0 %v7400_v23  ;;  %5190 = vmatprep.subr.bf16.mxu1 %v7461_v41 }
 0x2d4   :  { %1986 = vmatprep.mubr.f32.mxu0 %v9055_v11  ;;  %2063 = vmatprep.mubr.f32.mxu1 %v9055_v11 }
 0x2d6   :  { %5160 = vmatpush1.bf16.msra.mxu0 %v7407_v36  ;;  %5192 = vmatpush1.bf16.msra.mxu1 %v7474_v60 }
 0x2d7   :  { %5162 = vmatprep.subr.bf16.mxu0 %v7414_v26  ;;  %5194 = vmatprep.subr.bf16.mxu1 %v7486_v6 }
 0x2da   :  { %5164 = vmatpush1.bf16.msra.mxu0 %v7429_v1  ;;  %5196 = vmatpush1.bf16.msra.mxu1 %v7504_v13 }
 0x2db   :  { %5166 = vmatprep.subr.bf16.mxu0 %v7445_v14  ;;  %5198 = vmatprep.subr.bf16.mxu1 %v7512_v21 }
 0x2de   :  { %5168 = vmatpush1.bf16.msra.mxu0 %v7450_v18  ;;  %5200 = vmatpush1.bf16.msra.mxu1 %v7526_v44 }
 0x2df   :  { %5170 = vmatprep.subr.bf16.mxu0 %v7465_v37  ;;  %5202 = vmatprep.subr.bf16.mxu1 %v7532_v51 }
 0x2e2   :  { %5172 = vmatpush1.bf16.msra.mxu0 %v7470_v50  ;;  %5204 = vmatpush1.bf16.msra.mxu1 %v7541_v27 }
 0x2e3   :  { %5174 = vmatprep.subr.bf16.mxu0 %v7490_v10  ;;  %5206 = vmatprep.subr.bf16.mxu1 %v7545_v4 }
 0x2e6   :  { %5176 = vmatpush1.bf16.msra.mxu0 %v7497_v2  ;;  %5208 = vmatpush1.bf16.msra.mxu1 %v7552_v59 }
 0x2e7   :  { %5178 = vmatprep.subr.bf16.mxu0 %v7516_v34  ;;  %5210 = vmatprep.subr.bf16.mxu1 %v7556_v56 }
 0x2ea   :  { %5180 = vmatpush1.bf16.msra.mxu0 %v7521_v46  ;;  %5212 = vmatpush1.bf16.msra.mxu1 %v7563_v49 }
 0x2eb   :  { %5214 = vmatprep.subr.bf16.mxu0 %v7605_v25  ;;  %5278 = vmatprep.subr.bf16.mxu1 %v7607_v20 }
 0x2ed   :  { %1987 = vmatmul.mubr.f32.vlgmr.msra.gmra.mrb[8].mxu0 %v1707_v17  ;;  %2064 = vmatmul.mubr.f32.vlgmr.msra.gmra.mrb[14].mxu1 %v1707_v17  ;;  %v9133_v17 = vld [vmem:[#allocation36_spill] sm:$0xff] }
 0x2ee   :  { %1992 = vmatprep.mubr.f32.mxu0 %v9055_v11  ;;  %2069 = vmatprep.mubr.f32.mxu1 %v9055_v11 }
 0x2ef   :  { %5216 = vmatpush1.bf16.msra.mxu0 %v7609_v24  ;;  %5280 = vmatpush1.bf16.msra.mxu1 %v7612_v42 }
 0x2f0   :  { %5218 = vmatprep.subr.bf16.mxu0 %v7616_v54  ;;  %5282 = vmatprep.subr.bf16.mxu1 %v9118_v55 }
 0x2f1   :  { %1993 = vmatmul.mubr.f32.gmra.mrb[10].mxu0 %v1708_v58  ;;  %2070 = vmatmul.mubr.f32.gmra.mrb[16].mxu1 %v1708_v58  ;;  %v9138_v58 = vld [vmem:[#allocation41_spill] sm:$0xff] }
 0x2f3   :  { %5220 = vmatpush1.bf16.msra.mxu0 %v9119_v5  ;;  %5284 = vmatpush1.bf16.msra.mxu1 %v9120_v61 }
 0x2f4   :  { %5222 = vmatprep.subr.bf16.mxu0 %v9121_v0  ;;  %5286 = vmatprep.subr.bf16.mxu1 %v9122_v53 }
 0x2f7   :  { %5224 = vmatpush1.bf16.msra.mxu0 %v9123_v30  ;;  %5288 = vmatpush1.bf16.msra.mxu1 %v9124_v12 }
 0x2f8   :  { %5226 = vmatprep.subr.bf16.mxu0 %v9125_v63  ;;  %5290 = vmatprep.subr.bf16.mxu1 %v9126_v45  ;;  %v9180_v63 = vld [vmem:[#allocation89_spill] sm:$0xff] }
 0x2fb   :  { %5228 = vmatpush1.bf16.msra.mxu0 %v9127_v8  ;;  %5292 = vmatpush1.bf16.msra.mxu1 %v9128_v19  ;;  %v9139_v19 = vld [vmem:[#allocation42_spill] sm:$0xff]  ;;  %v9179_v8 = vld [vmem:[#allocation88_spill] sm:$0xff] }
 0x2fc   :  { %5230 = vmatprep.subr.bf16.mxu0 %v9129_v52  ;;  %5294 = vmatprep.subr.bf16.mxu1 %v9130_v32  ;;  %v9140_v52 = vld [vmem:[#allocation43_spill] sm:$0xff]  ;;  %v9141_v32 = vld [vmem:[#allocation44_spill] sm:$0xff] }
 0x2ff   :  { %5232 = vmatpush1.bf16.msra.mxu0 %v9131_v48  ;;  %5296 = vmatpush1.bf16.msra.mxu1 %v9132_v35  ;;  %v9142_v48 = vld [vmem:[#allocation45_spill] sm:$0xff]  ;;  %v9143_v35 = vld [vmem:[#allocation46_spill] sm:$0xff] }
 0x300   :  { %5234 = vmatprep.subr.bf16.mxu0 %v9133_v17  ;;  %5298 = vmatprep.subr.bf16.mxu1 %v9134_v39  ;;  %v9144_v17 = vld [vmem:[#allocation47_spill] sm:$0xff]  ;;  %v9145_v39 = vld [vmem:[#allocation48_spill] sm:$0xff] }
 0x303   :  { %5236 = vmatpush1.bf16.msra.mxu0 %v9135_v47  ;;  %5300 = vmatpush1.bf16.msra.mxu1 %v9136_v22  ;;  %v9146_v47 = vld [vmem:[#allocation49_spill] sm:$0xff]  ;;  %v9147_v22 = vld [vmem:[#allocation50_spill] sm:$0xff] }
 0x304   :  { %5238 = vmatprep.subr.bf16.mxu0 %v9137_v9  ;;  %5302 = vmatprep.subr.bf16.mxu1 %v9138_v58  ;;  %v9148_v9 = vld [vmem:[#allocation51_spill] sm:$0xff]  ;;  %v9149_v58 = vld [vmem:[#allocation52_spill] sm:$0xff] }
 0x307   :  { %5240 = vmatpush1.bf16.msra.mxu0 %v9139_v19  ;;  %5304 = vmatpush1.bf16.msra.mxu1 %v9140_v52  ;;  %v9150_v19 = vld [vmem:[#allocation53_spill] sm:$0xff]  ;;  %v9151_v52 = vld [vmem:[#allocation54_spill] sm:$0xff] }
 0x308   :  { %5242 = vmatprep.subr.bf16.mxu0 %v9141_v32  ;;  %5306 = vmatprep.subr.bf16.mxu1 %v9142_v48  ;;  %v9152_v32 = vld [vmem:[#allocation55_spill] sm:$0xff]  ;;  %v9153_v48 = vld [vmem:[#allocation56_spill] sm:$0xff] }
 0x30b   :  { %5244 = vmatpush1.bf16.msra.mxu0 %v9143_v35  ;;  %5308 = vmatpush1.bf16.msra.mxu1 %v9144_v17  ;;  %v9154_v35 = vld [vmem:[#allocation57_spill] sm:$0xff]  ;;  %v9155_v17 = vld [vmem:[#allocation58_spill] sm:$0xff] }
 0x30c   :  { %5246 = vmatprep.subr.bf16.mxu0 %v9145_v39  ;;  %5310 = vmatprep.subr.bf16.mxu1 %v9146_v47  ;;  %v9156_v39 = vld [vmem:[#allocation59_spill] sm:$0xff]  ;;  %v9157_v47 = vld [vmem:[#allocation60_spill] sm:$0xff] }
 0x30f   :  { %5248 = vmatpush1.bf16.msra.mxu0 %v9147_v22  ;;  %5312 = vmatpush1.bf16.msra.mxu1 %v9148_v9  ;;  %v9158_v22 = vld [vmem:[#allocation61_spill] sm:$0xff]  ;;  %v9159_v9 = vld [vmem:[#allocation62_spill] sm:$0xff] }
 0x310   :  { %5250 = vmatprep.subr.bf16.mxu0 %v9149_v58  ;;  %5314 = vmatprep.subr.bf16.mxu1 %v9150_v19  ;;  %v9160_v58 = vld [vmem:[#allocation63_spill] sm:$0xff]  ;;  %v9161_v19 = vld [vmem:[#allocation64_spill] sm:$0xff] }
 0x313   :  { %5252 = vmatpush1.bf16.msra.mxu0 %v9151_v52  ;;  %5316 = vmatpush1.bf16.msra.mxu1 %v9152_v32  ;;  %v9162_v52 = vld [vmem:[#allocation65_spill] sm:$0xff]  ;;  %v9163_v32 = vld [vmem:[#allocation66_spill] sm:$0xff] }
 0x314   :  { %5254 = vmatprep.subr.bf16.mxu0 %v9153_v48  ;;  %5318 = vmatprep.subr.bf16.mxu1 %v9154_v35  ;;  %v9164_v48 = vld [vmem:[#allocation67_spill] sm:$0xff]  ;;  %v9165_v35 = vld [vmem:[#allocation68_spill] sm:$0xff] }
 0x317   :  { %5256 = vmatpush1.bf16.msra.mxu0 %v9155_v17  ;;  %5320 = vmatpush1.bf16.msra.mxu1 %v9156_v39  ;;  %v9166_v17 = vld [vmem:[#allocation69_spill] sm:$0xff]  ;;  %v9167_v39 = vld [vmem:[#allocation70_spill] sm:$0xff] }
 0x318   :  { %5258 = vmatprep.subr.bf16.mxu0 %v9157_v47  ;;  %5322 = vmatprep.subr.bf16.mxu1 %v9158_v22  ;;  %v9168_v47 = vld [vmem:[#allocation71_spill] sm:$0xff]  ;;  %v9169_v22 = vld [vmem:[#allocation72_spill] sm:$0xff] }
 0x31b   :  { %5260 = vmatpush1.bf16.msra.mxu0 %v9159_v9  ;;  %5324 = vmatpush1.bf16.msra.mxu1 %v9160_v58  ;;  %v9170_v9 = vld [vmem:[#allocation73_spill] sm:$0xff]  ;;  %v9171_v58 = vld [vmem:[#allocation74_spill] sm:$0xff] }
 0x31c   :  { %5262 = vmatprep.subr.bf16.mxu0 %v9161_v19  ;;  %5326 = vmatprep.subr.bf16.mxu1 %v9162_v52  ;;  %v9172_v19 = vld [vmem:[#allocation75_spill] sm:$0xff]  ;;  %v9173_v52 = vld [vmem:[#allocation76_spill] sm:$0xff] }
 0x31f   :  { %5264 = vmatpush1.bf16.msra.mxu0 %v9163_v32  ;;  %5328 = vmatpush1.bf16.msra.mxu1 %v9164_v48  ;;  %v9174_v32 = vld [vmem:[#allocation77_spill] sm:$0xff]  ;;  %v9175_v48 = vld [vmem:[#allocation78_spill] sm:$0xff] }
 0x320   :  { %5266 = vmatprep.subr.bf16.mxu0 %v9165_v35  ;;  %5330 = vmatprep.subr.bf16.mxu1 %v9166_v17  ;;  %v9176_v35 = vld [vmem:[#allocation79_spill] sm:$0xff]  ;;  %v9177_v17 = vld [vmem:[#allocation17_spill] sm:$0xff] }
 0x323   :  { %5268 = vmatpush1.bf16.msra.mxu0 %v9167_v39  ;;  %5332 = vmatpush1.bf16.msra.mxu1 %v9168_v47  ;;  %v9178_v39 = vld [vmem:[#allocation18_spill] sm:$0xff] }
 0x324   :  { %5270 = vmatprep.subr.bf16.mxu0 %v9169_v22  ;;  %5334 = vmatprep.subr.bf16.mxu1 %v9170_v9 }
 0x327   :  { %5272 = vmatpush1.bf16.msra.mxu0 %v9171_v58  ;;  %5336 = vmatpush1.bf16.msra.mxu1 %v9172_v19 }
 0x328   :  { %5274 = vmatprep.subr.bf16.mxu0 %v9173_v52  ;;  %5338 = vmatprep.subr.bf16.mxu1 %v9174_v32 }
 0x32b   :  { %5276 = vmatpush1.bf16.msra.mxu0 %v9175_v48  ;;  %5340 = vmatpush1.bf16.msra.mxu1 %v9176_v35 }
 0x32c   :  { %5342 = vmatprep.subr.bf16.mxu0 %v9177_v17  ;;  %5374 = vmatprep.subr.bf16.mxu1 %v9178_v39 }
 0x3a0   :  { %v1775_v47 = vpop.f32.mrb[30].mxu0  ;;  %v1852_v22 = vpop.f32.mrb[42].mxu1 }
 0x3a1   :  { %v1776_v9 = vadd.f32 %v1775_v47, %v9179_v8  ;;  %v1777_v45 = vpop.f32.mrb[31].mxu0  ;;  %v1854_v58 = vpop.f32.mrb[43].mxu1 }
 0x3a2   :  { %v1778_v19 = vadd.f32 %v1777_v45, %v9180_v63  ;;  %v1855_v0 = vadd.f32 %v1854_v58, %v7965_v62  ;;  %v9181_v45 = vld [vmem:[#allocation90_spill] sm:$0xff] }
 0x3a3   :  { %v4625_v12 = vmul.f32 -1.442695, %v1776_v9  ;;  %v1853_v9 = vadd.f32 %v1852_v22, %v9181_v45 }
 0x3a4   :  { %v4627_v52 = vmul.f32 -1.442695, %v1778_v19  ;;  %v1781_v30 = vpop.f32.mrb[32].mxu0  ;;  %v1858_v32 = vpop.f32.mrb[44].mxu1  ;;  %v4629_v61 = vmul.f32 -1.442695, %v1855_v0 }
 0x3a5   :  { %6596 = vpow2.f32 %v4625_v12  ;;  %v1782_v48 = vadd.f32 %v1781_v30, %v9179_v8  ;;  %v1783_v35 = vpop.f32.mrb[33].mxu0  ;;  %v1860_v53 = vpop.f32.mrb[45].mxu1  ;;  %v1859_v12 = vadd.f32 %v1858_v32, %v9181_v45 }
 0x3a6   :  { %6598 = vpow2.f32 %v4627_v52  ;;  %v1784_v39 = vadd.f32 %v1783_v35, %v9180_v63 }
 0x3a7   :  { %v4626_v17 = vmul.f32 -1.442695, %v1782_v48 }
 0x3a8   :  { %v4628_v47 = vmul.f32 -1.442695, %v1784_v39 }
 0x3a9   :  { %6600 = vpow2.f32 %v4626_v17 }
 0x3aa   :  { %6602 = vpow2.f32 %v4628_v47 }
 0x3ab   :  { %6604 = vpow2.f32 %v4629_v61  ;;  %v9182_v61 = vld [vmem:[#allocation91_spill] sm:$0xff] }
 0x3ac   :  { %6606 = vtanh.f32 %v1853_v9 }
 0x3af   :  { %v6597_v19 = vpop.eup %6596 }
 0x3b0   :  { %v6599_v5 = vpop.eup %6598  ;;  %v1869_v55 = vadd.f32 1.0, %v6597_v19 }
 0x3b1   :  { %v1881_v30 = vadd.f32 1.0, %v6599_v5 }
 0x3b2   :  { %6608 = vrcp.f32 %v1869_v55 }
 0x3b3   :  { %v6601_v52 = vpop.eup %6600  ;;  %6610 = vrcp.f32 %v1881_v30 }
 0x3b4   :  { %v6603_v48 = vpop.eup %6602  ;;  %v1870_v35 = vadd.f32 1.0, %v6601_v52  ;;  %6612 = vtanh.f32 %v1859_v12  ;;  %v9183_v52 = vld [vmem:[#allocation87_spill] sm:$0xff] }
 0x3b5   :  { %v1882_v39 = vadd.f32 1.0, %v6603_v48  ;;  %v6605_v0 = vpop.eup %6604 }
 0x3b6   :  { %6614 = vrcp.f32 %v1870_v35  ;;  %v6607_v17 = vpop.eup %6606  ;;  %v1895_v19 = vadd.f32 1.0, %v6605_v0 }
 0x3b7   :  { %6616 = vrcp.f32 %v1882_v39 }
 0x3b8   :  { %6618 = vrcp.f32 %v1895_v19 }
 0x3bc   :  { %v6609_v22 = vpop.eup %6608 }
 0x3bd   :  { %v6611_v58 = vpop.eup %6610  ;;  %v1903_v47 = vmul.f32 %v6609_v22, %v6607_v17 }
 0x3be   :  { %v1901_v9 = vmul.f32 %v6611_v58, %v9182_v61  ;;  %v6613_v5 = vpop.eup %6612 }
 0x3c0   :  { %v6615_v63 = vpop.eup %6614  ;;  %v1988_v32 = vpop.f32.mrb[8].mxu0  ;;  %v8107_v45 = vadd.f32 %v1903_v47, %v1901_v9 }
 0x3c1   :  { %v2065_v55 = vpop.f32.mrb[14].mxu1  ;;  %v6617_v30 = vpop.eup %6616  ;;  %v1904_v12 = vmul.f32 %v6615_v63, %v6613_v5  ;;  %v6343_v48 = vadd.f32 %v1988_v32, %v9183_v52 }
 0x3c2   :  { %v1990_v35 = vpop.f32.mrb[9].mxu0  ;;  %v2067_v39 = vpop.f32.mrb[15].mxu1  ;;  %v1902_v8 = vmul.f32 %v6617_v30, %v7981_v28  ;;  %6620 = vtanh.f32 %v8107_v45  ;;  %v1861_v28 = vadd.f32 %v1860_v53, %v7965_v62 }
 0x3c3   :  { %v6344_v17 = vadd.f32 %v1990_v35, %v9117_v43  ;;  %v4631_v0 = vmul.f32 -1.442695, %v6343_v48  ;;  %v6382_v32 = vadd.f32 %v2067_v39, %v7836_v38  ;;  %v6619_v48 = vpop.eup %6618 }
 0x3c4   :  { %v1994_v58 = vpop.f32.mrb[10].mxu0  ;;  %v2071_v61 = vpop.f32.mrb[16].mxu1  ;;  %v8113_v54 = vadd.f32 %v1904_v12, %v1902_v8  ;;  %v4630_v35 = vmul.f32 -1.442695, %v1861_v28 }
 0x3c5   :  { %v4633_v22 = vmul.f32 -1.442695, %v6344_v17  ;;  %6622 = vpow2.f32 %v4631_v0  ;;  %v6345_v47 = vadd.f32 %v1994_v58, %v9183_v52  ;;  %v1996_v63 = vpop.f32.mrb[11].mxu0  ;;  %v2073_v19 = vpop.f32.mrb[17].mxu1  ;;  %v4635_v12 = vmul.f32 -1.442695, %v6382_v32 }
 0x3c6   :  { %v6346_v9 = vadd.f32 %v1996_v63, %v9117_v43  ;;  %v6384_v17 = vadd.f32 %v2073_v19, %v7836_v38  ;;  %v6381_v0 = vadd.f32 %v2065_v55, %v7832_v15 }
 0x3c7   :  { %6624 = vpow2.f32 %v4633_v22  ;;  %v4632_v5 = vmul.f32 -1.442695, %v6345_v47 }
 0x3c8   :  { %v4634_v30 = vmul.f32 -1.442695, %v6346_v9  ;;  %v4636_v39 = vmul.f32 -1.442695, %v6384_v17  ;;  %v6383_v9 = vadd.f32 %v2071_v61, %v7832_v15 }
 0x3c9   :  { %6626 = vpow2.f32 %v4632_v5 }
 0x3ca   :  { %6628 = vpow2.f32 %v4634_v30 }
 0x3cb   :  { %6630 = vpow2.f32 %v4630_v35 }
 0x3cc   :  { %v6621_v8 = vpop.eup %6620  ;;  %6632 = vpow2.f32 %v4635_v12 }
 0x3cd   :  { %v1909_v58 = vmul.f32 %v6621_v8, %v6619_v48  ;;  %6634 = vtanh.f32 %v6381_v0 }
 0x3cf   :  { %v6623_v22 = vpop.eup %6622  ;;  %2196 = vmatprep.mubr.f32.mxu0 %v1909_v58  ;;  %2273 = vmatprep.mubr.f32.mxu1 %v1909_v58 }
 0x3d0   :  { %v2090_v47 = vadd.f32 1.0, %v6623_v22 }
 0x3d1   :  { %v6625_v53 = vpop.eup %6624 }
 0x3d2   :  { %v2102_v63 = vadd.f32 1.0, %v6625_v53  ;;  %6636 = vrcp.f32 %v2090_v47 }
 0x3d3   :  { %v6627_v28 = vpop.eup %6626 }
 0x3d4   :  { %6638 = vrcp.f32 %v2102_v63  ;;  %v6629_v5 = vpop.eup %6628  ;;  %v2091_v19 = vadd.f32 1.0, %v6627_v28 }
 0x3d5   :  { %6640 = vpow2.f32 %v4636_v39  ;;  %v2103_v55 = vadd.f32 1.0, %v6629_v5  ;;  %v6631_v32 = vpop.eup %6630 }
 0x3d6   :  { %6642 = vtanh.f32 %v6383_v9  ;;  %v6633_v30 = vpop.eup %6632  ;;  %v1896_v53 = vadd.f32 1.0, %v6631_v32 }
 0x3d7   :  { %6644 = vrcp.f32 %v2091_v19  ;;  %v6635_v48 = vpop.eup %6634  ;;  %v2116_v17 = vadd.f32 1.0, %v6633_v30 }
 0x3d8   :  { %6646 = vrcp.f32 %v2103_v55 }
 0x3d9   :  { %6648 = vtanh.f32 %v8113_v54 }
 0x3da   :  { %6650 = vrcp.f32 %v2116_v17  ;;  %v9185_v17 = vld [vmem:[#allocation21_spill] sm:$0xff] }
 0x3dc   :  { %v6637_v35 = vpop.eup %6636 }
 0x3dd   :  { %v2124_v12 = vmul.f32 %v6637_v35, %v6635_v48 }
 0x3de   :  { %v6639_v8 = vpop.eup %6638 }
 0x3df   :  { %v6641_v0 = vpop.eup %6640  ;;  %v2122_v61 = vmul.f32 %v6639_v8, %v7992_v33 }
 0x3e0   :  { %v6643_v58 = vpop.eup %6642  ;;  %v2117_v9 = vadd.f32 1.0, %v6641_v0  ;;  %v9186_v0 = vld [vmem:[#allocation22_spill] sm:$0xff] }
 0x3e1   :  { %v6645_v22 = vpop.eup %6644  ;;  %v8123_v47 = vadd.f32 %v2124_v12, %v2122_v61  ;;  %v9184_v12 = vld [vmem:[#allocation20_spill] sm:$0xff]  ;;  %v9187_v61 = vld [vmem:[#allocation23_spill] sm:$0xff] }
 0x3e2   :  { %v6647_v39 = vpop.eup %6646  ;;  %v2125_v63 = vmul.f32 %v6645_v22, %v6643_v58  ;;  %v9188_v58 = vld [vmem:[#allocation24_spill] sm:$0xff]  ;;  %v9189_v22 = vld [vmem:[#allocation25_spill] sm:$0xff] }
 0x3e3   :  { %6652 = vtanh.f32 %v8123_v47  ;;  %v2123_v28 = vmul.f32 %v6647_v39, %v7996_v3  ;;  %v6649_v33 = vpop.eup %6648  ;;  %v9191_v39 = vld [vmem:[#allocation27_spill] sm:$0xff] }
 0x3e4   :  { %6654 = vrcp.f32 %v1896_v53  ;;  %v6651_v19 = vpop.eup %6650  ;;  %v9190_v53 = vld [vmem:[#allocation26_spill] sm:$0xff] }
 0x3e5   :  { %v8128_v5 = vadd.f32 %v2125_v63, %v2123_v28  ;;  %6656 = vrcp.f32 %v2117_v9  ;;  %v9192_v63 = vld [vmem:[#allocation28_spill] sm:$0xff]  ;;  %v9193_v9 = vld [vmem:[#allocation29_spill] sm:$0xff]  ;;  %v9194_v28 = vld [vmem:[#allocation30_spill] sm:$0xff] }
 0x3e7   :  { %6658 = vtanh.f32 %v8128_v5 }
 0x3ed   :  { %v6653_v55 = vpop.eup %6652 }
 0x3ee   :  { %v2130_v32 = vmul.f32 %v6653_v55, %v6651_v19  ;;  %v6655_v30 = vpop.eup %6654  ;;  %v9196_v19 = vld [vmem:[#allocation32_spill] sm:$0xff]  ;;  %v9197_v55 = vld [vmem:[#allocation33_spill] sm:$0xff] }
 0x3ef   :  { %v6657_v48 = vpop.eup %6656  ;;  %v1910_v35 = vmul.f32 %v6655_v30, %v6649_v33  ;;  %v9195_v33 = vld [vmem:[#allocation31_spill] sm:$0xff] }
 0x3f0   :  { %2197 = vmatmul.mubr.f32.vlgmr.msra.gmra.mrb[34].mxu0 %v2130_v32  ;;  %2274 = vmatmul.mubr.f32.vlgmr.msra.gmra.mrb[46].mxu1 %v2130_v32  ;;  %v9199_v30 = vld [vmem:[#allocation35_spill] sm:$0xff] }
 0x3f1   :  { %v6659_v8 = vpop.eup %6658  ;;  %5344 = vmatpush1.bf16.msra.mxu0 %v7359_v16  ;;  %5376 = vmatpush1.bf16.msra.mxu1 %v7432_v7 }
 0x3f2   :  { %2202 = vmatprep.mubr.f32.mxu0 %v1910_v35  ;;  %2279 = vmatprep.mubr.f32.mxu1 %v1910_v35  ;;  %v2131_v3 = vmul.f32 %v6659_v8, %v6657_v48  ;;  %v9200_v48 = vld [vmem:[#allocation36_spill] sm:$0xff]  ;;  %v9201_v35 = vld [vmem:[#allocation37_spill] sm:$0xff]  ;;  %v9202_v8 = vld [vmem:[#allocation38_spill] sm:$0xff] }
 0x3f3   :  { %5346 = vmatprep.subr.bf16.mxu0 %v7373_v29  ;;  %5378 = vmatprep.subr.bf16.mxu1 %v7440_v57 }
 0x3f4   :  { %2203 = vmatmul.mubr.f32.gmra.mrb[36].mxu0 %v2131_v3  ;;  %2280 = vmatmul.mubr.f32.gmra.mrb[48].mxu1 %v2131_v3 }
 0x3f5   :  { %5348 = vmatpush1.bf16.msra.mxu0 %v7387_v40  ;;  %5380 = vmatpush1.bf16.msra.mxu1 %v7454_v31 }
 0x3f6   :  { %5350 = vmatprep.subr.bf16.mxu0 %v7400_v23  ;;  %5382 = vmatprep.subr.bf16.mxu1 %v7461_v41 }
 0x3f7   :  { %2409 = vmatprep.mubr.f32.mxu0 %v9055_v11  ;;  %2486 = vmatprep.mubr.f32.mxu1 %v9055_v11 }
 0x3f9   :  { %5352 = vmatpush1.bf16.msra.mxu0 %v7407_v36  ;;  %5384 = vmatpush1.bf16.msra.mxu1 %v7474_v60 }
 0x3fa   :  { %5354 = vmatprep.subr.bf16.mxu0 %v7414_v26  ;;  %5386 = vmatprep.subr.bf16.mxu1 %v7486_v6 }
 0x3fd   :  { %5356 = vmatpush1.bf16.msra.mxu0 %v7429_v1  ;;  %5388 = vmatpush1.bf16.msra.mxu1 %v7504_v13 }
 0x3fe   :  { %5358 = vmatprep.subr.bf16.mxu0 %v7445_v14  ;;  %5390 = vmatprep.subr.bf16.mxu1 %v7512_v21 }
 0x401   :  { %5360 = vmatpush1.bf16.msra.mxu0 %v7450_v18  ;;  %5392 = vmatpush1.bf16.msra.mxu1 %v7526_v44 }
 0x402   :  { %5362 = vmatprep.subr.bf16.mxu0 %v7465_v37  ;;  %5394 = vmatprep.subr.bf16.mxu1 %v7532_v51 }
 0x405   :  { %5364 = vmatpush1.bf16.msra.mxu0 %v7470_v50  ;;  %5396 = vmatpush1.bf16.msra.mxu1 %v7541_v27 }
 0x406   :  { %5366 = vmatprep.subr.bf16.mxu0 %v7490_v10  ;;  %5398 = vmatprep.subr.bf16.mxu1 %v7545_v4 }
 0x409   :  { %5368 = vmatpush1.bf16.msra.mxu0 %v7497_v2  ;;  %5400 = vmatpush1.bf16.msra.mxu1 %v7552_v59 }
 0x40a   :  { %5370 = vmatprep.subr.bf16.mxu0 %v7516_v34  ;;  %5402 = vmatprep.subr.bf16.mxu1 %v7556_v56 }
 0x40d   :  { %5372 = vmatpush1.bf16.msra.mxu0 %v7521_v46  ;;  %5404 = vmatpush1.bf16.msra.mxu1 %v7563_v49 }
 0x40e   :  { %5406 = vmatprep.subr.bf16.mxu0 %v7605_v25  ;;  %5470 = vmatprep.subr.bf16.mxu1 %v7607_v20 }
 0x410   :  { %2410 = vmatmul.mubr.f32.vlgmr.msra.gmra.mrb[12].mxu0 %v2130_v32  ;;  %2487 = vmatmul.mubr.f32.vlgmr.msra.gmra.mrb[18].mxu1 %v2130_v32  ;;  %v9198_v32 = vld [vmem:[#allocation34_spill] sm:$0xff] }
 0x411   :  { %2415 = vmatprep.mubr.f32.mxu0 %v9055_v11  ;;  %2492 = vmatprep.mubr.f32.mxu1 %v9055_v11 }
 0x412   :  { %5408 = vmatpush1.bf16.msra.mxu0 %v7609_v24  ;;  %5472 = vmatpush1.bf16.msra.mxu1 %v7612_v42 }
 0x413   :  { %5410 = vmatprep.subr.bf16.mxu0 %v9184_v12  ;;  %5474 = vmatprep.subr.bf16.mxu1 %v9185_v17 }
 0x414   :  { %2416 = vmatmul.mubr.f32.gmra.mrb[14].mxu0 %v2131_v3  ;;  %2493 = vmatmul.mubr.f32.gmra.mrb[20].mxu1 %v2131_v3  ;;  %v9203_v3 = vld [vmem:[#allocation39_spill] sm:$0xff] }
 0x416   :  { %5412 = vmatpush1.bf16.msra.mxu0 %v9186_v0  ;;  %5476 = vmatpush1.bf16.msra.mxu1 %v9187_v61 }
 0x417   :  { %5414 = vmatprep.subr.bf16.mxu0 %v9188_v58  ;;  %5478 = vmatprep.subr.bf16.mxu1 %v9189_v22 }
 0x41a   :  { %5416 = vmatpush1.bf16.msra.mxu0 %v9190_v53  ;;  %5480 = vmatpush1.bf16.msra.mxu1 %v9191_v39  ;;  %v9247_v53 = vld [vmem:[#allocation89_spill] sm:$0xff] }
 0x41b   :  { %5418 = vmatprep.subr.bf16.mxu0 %v9192_v63  ;;  %5482 = vmatprep.subr.bf16.mxu1 %v9193_v9  ;;  %v9204_v9 = vld [vmem:[#allocation40_spill] sm:$0xff] }
 0x41c   :  { %v9246_v63 = vld [vmem:[#allocation88_spill] sm:$0xff] }
 0x41e   :  { %5420 = vmatpush1.bf16.msra.mxu0 %v9194_v28  ;;  %5484 = vmatpush1.bf16.msra.mxu1 %v9195_v33  ;;  %v9205_v28 = vld [vmem:[#allocation41_spill] sm:$0xff]  ;;  %v9206_v33 = vld [vmem:[#allocation42_spill] sm:$0xff] }
 0x41f   :  { %5422 = vmatprep.subr.bf16.mxu0 %v9196_v19  ;;  %5486 = vmatprep.subr.bf16.mxu1 %v9197_v55  ;;  %v9207_v19 = vld [vmem:[#allocation43_spill] sm:$0xff]  ;;  %v9208_v55 = vld [vmem:[#allocation44_spill] sm:$0xff] }
 0x422   :  { %5424 = vmatpush1.bf16.msra.mxu0 %v9198_v32  ;;  %5488 = vmatpush1.bf16.msra.mxu1 %v9199_v30  ;;  %v9209_v32 = vld [vmem:[#allocation45_spill] sm:$0xff]  ;;  %v9210_v30 = vld [vmem:[#allocation46_spill] sm:$0xff] }
 0x423   :  { %5426 = vmatprep.subr.bf16.mxu0 %v9200_v48  ;;  %5490 = vmatprep.subr.bf16.mxu1 %v9201_v35  ;;  %v9211_v48 = vld [vmem:[#allocation47_spill] sm:$0xff]  ;;  %v9212_v35 = vld [vmem:[#allocation48_spill] sm:$0xff] }
 0x426   :  { %5428 = vmatpush1.bf16.msra.mxu0 %v9202_v8  ;;  %5492 = vmatpush1.bf16.msra.mxu1 %v9203_v3  ;;  %v9213_v8 = vld [vmem:[#allocation49_spill] sm:$0xff]  ;;  %v9214_v3 = vld [vmem:[#allocation50_spill] sm:$0xff] }
 0x427   :  { %5430 = vmatprep.subr.bf16.mxu0 %v9204_v9  ;;  %5494 = vmatprep.subr.bf16.mxu1 %v9205_v28  ;;  %v9215_v9 = vld [vmem:[#allocation51_spill] sm:$0xff]  ;;  %v9216_v28 = vld [vmem:[#allocation52_spill] sm:$0xff] }
 0x42a   :  { %5432 = vmatpush1.bf16.msra.mxu0 %v9206_v33  ;;  %5496 = vmatpush1.bf16.msra.mxu1 %v9207_v19  ;;  %v9217_v33 = vld [vmem:[#allocation53_spill] sm:$0xff]  ;;  %v9218_v19 = vld [vmem:[#allocation54_spill] sm:$0xff] }
 0x42b   :  { %5434 = vmatprep.subr.bf16.mxu0 %v9208_v55  ;;  %5498 = vmatprep.subr.bf16.mxu1 %v9209_v32  ;;  %v9219_v55 = vld [vmem:[#allocation55_spill] sm:$0xff]  ;;  %v9220_v32 = vld [vmem:[#allocation56_spill] sm:$0xff] }
 0x42e   :  { %5436 = vmatpush1.bf16.msra.mxu0 %v9210_v30  ;;  %5500 = vmatpush1.bf16.msra.mxu1 %v9211_v48  ;;  %v9221_v30 = vld [vmem:[#allocation57_spill] sm:$0xff]  ;;  %v9222_v48 = vld [vmem:[#allocation58_spill] sm:$0xff] }
 0x42f   :  { %5438 = vmatprep.subr.bf16.mxu0 %v9212_v35  ;;  %5502 = vmatprep.subr.bf16.mxu1 %v9213_v8  ;;  %v9223_v35 = vld [vmem:[#allocation59_spill] sm:$0xff]  ;;  %v9224_v8 = vld [vmem:[#allocation60_spill] sm:$0xff] }
 0x432   :  { %5440 = vmatpush1.bf16.msra.mxu0 %v9214_v3  ;;  %5504 = vmatpush1.bf16.msra.mxu1 %v9215_v9  ;;  %v9225_v3 = vld [vmem:[#allocation61_spill] sm:$0xff]  ;;  %v9226_v9 = vld [vmem:[#allocation62_spill] sm:$0xff] }
 0x433   :  { %5442 = vmatprep.subr.bf16.mxu0 %v9216_v28  ;;  %5506 = vmatprep.subr.bf16.mxu1 %v9217_v33  ;;  %v9227_v28 = vld [vmem:[#allocation63_spill] sm:$0xff]  ;;  %v9228_v33 = vld [vmem:[#allocation64_spill] sm:$0xff] }
 0x436   :  { %5444 = vmatpush1.bf16.msra.mxu0 %v9218_v19  ;;  %5508 = vmatpush1.bf16.msra.mxu1 %v9219_v55  ;;  %v9229_v19 = vld [vmem:[#allocation65_spill] sm:$0xff]  ;;  %v9230_v55 = vld [vmem:[#allocation66_spill] sm:$0xff] }
 0x437   :  { %5446 = vmatprep.subr.bf16.mxu0 %v9220_v32  ;;  %5510 = vmatprep.subr.bf16.mxu1 %v9221_v30  ;;  %v9231_v32 = vld [vmem:[#allocation67_spill] sm:$0xff]  ;;  %v9232_v30 = vld [vmem:[#allocation68_spill] sm:$0xff] }
 0x43a   :  { %5448 = vmatpush1.bf16.msra.mxu0 %v9222_v48  ;;  %5512 = vmatpush1.bf16.msra.mxu1 %v9223_v35  ;;  %v9233_v48 = vld [vmem:[#allocation69_spill] sm:$0xff]  ;;  %v9234_v35 = vld [vmem:[#allocation70_spill] sm:$0xff] }
 0x43b   :  { %5450 = vmatprep.subr.bf16.mxu0 %v9224_v8  ;;  %5514 = vmatprep.subr.bf16.mxu1 %v9225_v3  ;;  %v9235_v8 = vld [vmem:[#allocation71_spill] sm:$0xff]  ;;  %v9236_v3 = vld [vmem:[#allocation72_spill] sm:$0xff] }
 0x43e   :  { %5452 = vmatpush1.bf16.msra.mxu0 %v9226_v9  ;;  %5516 = vmatpush1.bf16.msra.mxu1 %v9227_v28  ;;  %v9237_v9 = vld [vmem:[#allocation73_spill] sm:$0xff]  ;;  %v9238_v28 = vld [vmem:[#allocation74_spill] sm:$0xff] }
 0x43f   :  { %5454 = vmatprep.subr.bf16.mxu0 %v9228_v33  ;;  %5518 = vmatprep.subr.bf16.mxu1 %v9229_v19  ;;  %v9239_v33 = vld [vmem:[#allocation75_spill] sm:$0xff]  ;;  %v9240_v19 = vld [vmem:[#allocation76_spill] sm:$0xff] }
 0x442   :  { %5456 = vmatpush1.bf16.msra.mxu0 %v9230_v55  ;;  %5520 = vmatpush1.bf16.msra.mxu1 %v9231_v32  ;;  %v9241_v55 = vld [vmem:[#allocation77_spill] sm:$0xff]  ;;  %v9242_v32 = vld [vmem:[#allocation78_spill] sm:$0xff] }
 0x443   :  { %5458 = vmatprep.subr.bf16.mxu0 %v9232_v30  ;;  %5522 = vmatprep.subr.bf16.mxu1 %v9233_v48  ;;  %v9243_v30 = vld [vmem:[#allocation79_spill] sm:$0xff]  ;;  %v9244_v48 = vld [vmem:[#allocation17_spill] sm:$0xff] }
 0x446   :  { %5460 = vmatpush1.bf16.msra.mxu0 %v9234_v35  ;;  %5524 = vmatpush1.bf16.msra.mxu1 %v9235_v8  ;;  %v9245_v35 = vld [vmem:[#allocation18_spill] sm:$0xff] }
 0x447   :  { %5462 = vmatprep.subr.bf16.mxu0 %v9236_v3  ;;  %5526 = vmatprep.subr.bf16.mxu1 %v9237_v9 }
 0x44a   :  { %5464 = vmatpush1.bf16.msra.mxu0 %v9238_v28  ;;  %5528 = vmatpush1.bf16.msra.mxu1 %v9239_v33 }
 0x44b   :  { %5466 = vmatprep.subr.bf16.mxu0 %v9240_v19  ;;  %5530 = vmatprep.subr.bf16.mxu1 %v9241_v55 }
 0x44e   :  { %5468 = vmatpush1.bf16.msra.mxu0 %v9242_v32  ;;  %5532 = vmatpush1.bf16.msra.mxu1 %v9243_v30 }
 0x44f   :  { %5534 = vmatprep.subr.bf16.mxu0 %v9244_v48  ;;  %5566 = vmatprep.subr.bf16.mxu1 %v9245_v35 }
 0x4c3   :  { %v2198_v8 = vpop.f32.mrb[34].mxu0  ;;  %v2275_v3 = vpop.f32.mrb[46].mxu1 }
 0x4c4   :  { %v2199_v9 = vadd.f32 %v2198_v8, %v9246_v63  ;;  %v2200_v39 = vpop.f32.mrb[35].mxu0  ;;  %v2277_v28 = vpop.f32.mrb[47].mxu1 }
 0x4c5   :  { %v2201_v33 = vadd.f32 %v2200_v39, %v9247_v53  ;;  %v2278_v0 = vadd.f32 %v2277_v28, %v7965_v62  ;;  %v9248_v39 = vld [vmem:[#allocation90_spill] sm:$0xff] }
 0x4c6   :  { %v4637_v22 = vmul.f32 -1.442695, %v2199_v9  ;;  %v2276_v9 = vadd.f32 %v2275_v3, %v9248_v39 }
 0x4c7   :  { %v4639_v19 = vmul.f32 -1.442695, %v2201_v33  ;;  %v2204_v58 = vpop.f32.mrb[36].mxu0  ;;  %v2281_v55 = vpop.f32.mrb[48].mxu1  ;;  %v4641_v17 = vmul.f32 -1.442695, %v2278_v0 }
 0x4c8   :  { %6660 = vpow2.f32 %v4637_v22  ;;  %v2205_v32 = vadd.f32 %v2204_v58, %v9246_v63  ;;  %v2206_v30 = vpop.f32.mrb[37].mxu0  ;;  %v2283_v61 = vpop.f32.mrb[49].mxu1  ;;  %v2282_v22 = vadd.f32 %v2281_v55, %v9248_v39 }
 0x4c9   :  { %6662 = vpow2.f32 %v4639_v19  ;;  %v2207_v35 = vadd.f32 %v2206_v30, %v9247_v53 }
 0x4ca   :  { %v4638_v48 = vmul.f32 -1.442695, %v2205_v32 }
 0x4cb   :  { %v4640_v8 = vmul.f32 -1.442695, %v2207_v35 }
 0x4cc   :  { %6664 = vpow2.f32 %v4638_v48 }
 0x4cd   :  { %6666 = vpow2.f32 %v4640_v8 }
 0x4ce   :  { %6668 = vpow2.f32 %v4641_v17 }
 0x4cf   :  { %6670 = vtanh.f32 %v2276_v9 }
 0x4d2   :  { %v6661_v33 = vpop.eup %6660 }
 0x4d3   :  { %v6663_v12 = vpop.eup %6662  ;;  %v2292_v42 = vadd.f32 1.0, %v6661_v33 }
 0x4d4   :  { %v2304_v58 = vadd.f32 1.0, %v6663_v12 }
 0x4d5   :  { %6672 = vrcp.f32 %v2292_v42 }
 0x4d6   :  { %v6665_v19 = vpop.eup %6664  ;;  %6674 = vrcp.f32 %v2304_v58 }
 0x4d7   :  { %v6667_v32 = vpop.eup %6666  ;;  %v2293_v30 = vadd.f32 1.0, %v6665_v19  ;;  %6676 = vtanh.f32 %v2282_v22 }
 0x4d8   :  { %v2305_v28 = vadd.f32 1.0, %v6667_v32  ;;  %v6669_v0 = vpop.eup %6668 }
 0x4d9   :  { %6678 = vrcp.f32 %v2293_v30  ;;  %v6671_v48 = vpop.eup %6670  ;;  %v2318_v33 = vadd.f32 1.0, %v6669_v0 }
 0x4da   :  { %6680 = vrcp.f32 %v2305_v28 }
 0x4db   :  { %6682 = vrcp.f32 %v2318_v33 }
 0x4df   :  { %v6673_v35 = vpop.eup %6672 }
 0x4e0   :  { %v6675_v3 = vpop.eup %6674  ;;  %v2326_v8 = vmul.f32 %v6673_v35, %v6671_v48 }
 0x4e1   :  { %v2324_v17 = vmul.f32 %v6675_v3, %v8107_v45  ;;  %v6677_v12 = vpop.eup %6676 }
 0x4e3   :  { %v6679_v9 = vpop.eup %6678  ;;  %v2411_v55 = vpop.f32.mrb[12].mxu0  ;;  %v8239_v39 = vadd.f32 %v2326_v8, %v2324_v17 }
 0x4e4   :  { %v2488_v42 = vpop.f32.mrb[18].mxu1  ;;  %v6681_v58 = vpop.eup %6680  ;;  %v2327_v22 = vmul.f32 %v6679_v9, %v6677_v12  ;;  %v6347_v19 = vadd.f32 %v2411_v55, %v9183_v52 }
 0x4e5   :  { %v2413_v32 = vpop.f32.mrb[13].mxu0  ;;  %v2490_v30 = vpop.f32.mrb[19].mxu1  ;;  %v2325_v28 = vmul.f32 %v6681_v58, %v8113_v54  ;;  %6684 = vtanh.f32 %v8239_v39  ;;  %v2284_v54 = vadd.f32 %v2283_v61, %v7965_v62 }
 0x4e6   :  { %v6348_v48 = vadd.f32 %v2413_v32, %v9117_v43  ;;  %v4643_v45 = vmul.f32 -1.442695, %v6347_v19  ;;  %v6386_v55 = vadd.f32 %v2490_v30, %v7836_v38  ;;  %v6683_v19 = vpop.eup %6682 }
 0x4e7   :  { %v2417_v35 = vpop.f32.mrb[14].mxu0  ;;  %v2494_v3 = vpop.f32.mrb[20].mxu1  ;;  %v8245_v53 = vadd.f32 %v2327_v22, %v2325_v28  ;;  %v4642_v32 = vmul.f32 -1.442695, %v2284_v54 }
 0x4e8   :  { %v4645_v0 = vmul.f32 -1.442695, %v6348_v48  ;;  %6686 = vpow2.f32 %v4643_v45  ;;  %v6349_v8 = vadd.f32 %v2417_v35, %v9183_v52  ;;  %v2419_v33 = vpop.f32.mrb[15].mxu0  ;;  %v2496_v17 = vpop.f32.mrb[21].mxu1  ;;  %v4647_v28 = vmul.f32 -1.442695, %v6386_v55 }
 0x4e9   :  { %v6350_v12 = vadd.f32 %v2419_v33, %v9117_v43  ;;  %v6388_v48 = vadd.f32 %v2496_v17, %v7836_v38  ;;  %v6385_v45 = vadd.f32 %v2488_v42, %v7832_v15 }
 0x4ea   :  { %6688 = vpow2.f32 %v4645_v0  ;;  %v4644_v9 = vmul.f32 -1.442695, %v6349_v8 }
 0x4eb   :  { %v4646_v58 = vmul.f32 -1.442695, %v6350_v12  ;;  %v4648_v30 = vmul.f32 -1.442695, %v6388_v48  ;;  %v6387_v12 = vadd.f32 %v2494_v3, %v7832_v15 }
 0x4ec   :  { %6690 = vpow2.f32 %v4644_v9 }
 0x4ed   :  { %6692 = vpow2.f32 %v4646_v58 }
 0x4ee   :  { %6694 = vpow2.f32 %v4642_v32 }
 0x4ef   :  { %v6685_v22 = vpop.eup %6684  ;;  %6696 = vpow2.f32 %v4647_v28 }
 0x4f0   :  { %v2332_v35 = vmul.f32 %v6685_v22, %v6683_v19  ;;  %6698 = vtanh.f32 %v6385_v45 }
 0x4f2   :  { %v6687_v0 = vpop.eup %6686  ;;  %2619 = vmatprep.mubr.f32.mxu0 %v2332_v35  ;;  %2696 = vmatprep.mubr.f32.mxu1 %v2332_v35 }
 0x4f3   :  { %v2513_v8 = vadd.f32 1.0, %v6687_v0 }
 0x4f4   :  { %v6689_v61 = vpop.eup %6688 }
 0x4f5   :  { %v2525_v33 = vadd.f32 1.0, %v6689_v61  ;;  %6700 = vrcp.f32 %v2513_v8 }
 0x4f6   :  { %v6691_v54 = vpop.eup %6690 }
 0x4f7   :  { %6702 = vrcp.f32 %v2525_v33  ;;  %v6693_v9 = vpop.eup %6692  ;;  %v2514_v17 = vadd.f32 1.0, %v6691_v54 }
 0x4f8   :  { %6704 = vpow2.f32 %v4648_v30  ;;  %v2526_v42 = vadd.f32 1.0, %v6693_v9  ;;  %v6695_v55 = vpop.eup %6694 }
 0x4f9   :  { %6706 = vtanh.f32 %v6387_v12  ;;  %v6697_v58 = vpop.eup %6696  ;;  %v2319_v61 = vadd.f32 1.0, %v6695_v55 }
 0x4fa   :  { %6708 = vrcp.f32 %v2514_v17  ;;  %v6699_v19 = vpop.eup %6698  ;;  %v2539_v48 = vadd.f32 1.0, %v6697_v58 }
 0x4fb   :  { %6710 = vrcp.f32 %v2526_v42 }
 0x4fc   :  { %6712 = vtanh.f32 %v8245_v53 }
 0x4fd   :  { %6714 = vrcp.f32 %v2539_v48  ;;  %v9250_v48 = vld [vmem:[#allocation20_spill] sm:$0xff] }
 0x4ff   :  { %v6701_v32 = vpop.eup %6700 }
 0x500   :  { %v2547_v28 = vmul.f32 %v6701_v32, %v6699_v19 }
 0x501   :  { %v6703_v22 = vpop.eup %6702 }
 0x502   :  { %v6705_v45 = vpop.eup %6704  ;;  %v2545_v3 = vmul.f32 %v6703_v22, %v8123_v47 }
 0x503   :  { %v6707_v35 = vpop.eup %6706  ;;  %v2540_v12 = vadd.f32 1.0, %v6705_v45  ;;  %v9251_v45 = vld [vmem:[#allocation21_spill] sm:$0xff] }
 0x504   :  { %v6709_v0 = vpop.eup %6708  ;;  %v8255_v8 = vadd.f32 %v2547_v28, %v2545_v3  ;;  %v9249_v28 = vld [vmem:[#allocation19_spill] sm:$0xff]  ;;  %v9252_v3 = vld [vmem:[#allocation22_spill] sm:$0xff] }
 0x505   :  { %v6711_v30 = vpop.eup %6710  ;;  %v2548_v33 = vmul.f32 %v6709_v0, %v6707_v35  ;;  %v9253_v35 = vld [vmem:[#allocation23_spill] sm:$0xff]  ;;  %v9254_v0 = vld [vmem:[#allocation24_spill] sm:$0xff] }
 0x506   :  { %6716 = vtanh.f32 %v8255_v8  ;;  %v2546_v54 = vmul.f32 %v6711_v30, %v8128_v5  ;;  %v6713_v47 = vpop.eup %6712  ;;  %v9256_v30 = vld [vmem:[#allocation26_spill] sm:$0xff] }
 0x507   :  { %6718 = vrcp.f32 %v2319_v61  ;;  %v6715_v17 = vpop.eup %6714  ;;  %v9255_v61 = vld [vmem:[#allocation25_spill] sm:$0xff] }
 0x508   :  { %v8260_v9 = vadd.f32 %v2548_v33, %v2546_v54  ;;  %6720 = vrcp.f32 %v2540_v12  ;;  %v9257_v33 = vld [vmem:[#allocation27_spill] sm:$0xff]  ;;  %v9258_v12 = vld [vmem:[#allocation28_spill] sm:$0xff]  ;;  %v9259_v54 = vld [vmem:[#allocation29_spill] sm:$0xff] }
 0x50a   :  { %6722 = vtanh.f32 %v8260_v9 }
 0x510   :  { %v6717_v42 = vpop.eup %6716 }
 0x511   :  { %v2553_v55 = vmul.f32 %v6717_v42, %v6715_v17  ;;  %v6719_v58 = vpop.eup %6718  ;;  %v9261_v17 = vld [vmem:[#allocation31_spill] sm:$0xff]  ;;  %v9262_v42 = vld [vmem:[#allocation32_spill] sm:$0xff] }
 0x512   :  { %v6721_v19 = vpop.eup %6720  ;;  %v2333_v32 = vmul.f32 %v6719_v58, %v6713_v47  ;;  %v9260_v47 = vld [vmem:[#allocation30_spill] sm:$0xff] }
 0x513   :  { %2620 = vmatmul.mubr.f32.vlgmr.msra.gmra.mrb[38].mxu0 %v2553_v55  ;;  %2697 = vmatmul.mubr.f32.vlgmr.msra.gmra.mrb[50].mxu1 %v2553_v55  ;;  %v9264_v58 = vld [vmem:[#allocation34_spill] sm:$0xff] }
 0x514   :  { %v6723_v22 = vpop.eup %6722  ;;  %5536 = vmatpush1.bf16.msra.mxu0 %v7359_v16  ;;  %5568 = vmatpush1.bf16.msra.mxu1 %v7432_v7 }
 0x515   :  { %2625 = vmatprep.mubr.f32.mxu0 %v2333_v32  ;;  %2702 = vmatprep.mubr.f32.mxu1 %v2333_v32  ;;  %v2554_v5 = vmul.f32 %v6723_v22, %v6721_v19  ;;  %v9265_v19 = vld [vmem:[#allocation35_spill] sm:$0xff]  ;;  %v9266_v32 = vld [vmem:[#allocation36_spill] sm:$0xff]  ;;  %v9267_v22 = vld [vmem:[#allocation37_spill] sm:$0xff] }
 0x516   :  { %5538 = vmatprep.subr.bf16.mxu0 %v7373_v29  ;;  %5570 = vmatprep.subr.bf16.mxu1 %v7440_v57 }
 0x517   :  { %2626 = vmatmul.mubr.f32.gmra.mrb[40].mxu0 %v2554_v5  ;;  %2703 = vmatmul.mubr.f32.gmra.mrb[52].mxu1 %v2554_v5 }
 0x518   :  { %5540 = vmatpush1.bf16.msra.mxu0 %v7387_v40  ;;  %5572 = vmatpush1.bf16.msra.mxu1 %v7454_v31 }
 0x519   :  { %5542 = vmatprep.subr.bf16.mxu0 %v7400_v23  ;;  %5574 = vmatprep.subr.bf16.mxu1 %v7461_v41 }
 0x51a   :  { %2832 = vmatprep.mubr.f32.mxu0 %v9055_v11  ;;  %2909 = vmatprep.mubr.f32.mxu1 %v9055_v11 }
 0x51c   :  { %5544 = vmatpush1.bf16.msra.mxu0 %v7407_v36  ;;  %5576 = vmatpush1.bf16.msra.mxu1 %v7474_v60 }
 0x51d   :  { %5546 = vmatprep.subr.bf16.mxu0 %v7414_v26  ;;  %5578 = vmatprep.subr.bf16.mxu1 %v7486_v6 }
 0x520   :  { %5548 = vmatpush1.bf16.msra.mxu0 %v7429_v1  ;;  %5580 = vmatpush1.bf16.msra.mxu1 %v7504_v13 }
 0x521   :  { %5550 = vmatprep.subr.bf16.mxu0 %v7445_v14  ;;  %5582 = vmatprep.subr.bf16.mxu1 %v7512_v21 }
 0x524   :  { %5552 = vmatpush1.bf16.msra.mxu0 %v7450_v18  ;;  %5584 = vmatpush1.bf16.msra.mxu1 %v7526_v44 }
 0x525   :  { %5554 = vmatprep.subr.bf16.mxu0 %v7465_v37  ;;  %5586 = vmatprep.subr.bf16.mxu1 %v7532_v51 }
 0x528   :  { %5556 = vmatpush1.bf16.msra.mxu0 %v7470_v50  ;;  %5588 = vmatpush1.bf16.msra.mxu1 %v7541_v27 }
 0x529   :  { %5558 = vmatprep.subr.bf16.mxu0 %v7490_v10  ;;  %5590 = vmatprep.subr.bf16.mxu1 %v7545_v4 }
 0x52c   :  { %5560 = vmatpush1.bf16.msra.mxu0 %v7497_v2  ;;  %5592 = vmatpush1.bf16.msra.mxu1 %v7552_v59 }
 0x52d   :  { %5562 = vmatprep.subr.bf16.mxu0 %v7516_v34  ;;  %5594 = vmatprep.subr.bf16.mxu1 %v7556_v56 }
 0x530   :  { %5564 = vmatpush1.bf16.msra.mxu0 %v7521_v46  ;;  %5596 = vmatpush1.bf16.msra.mxu1 %v7563_v49 }
 0x531   :  { %5598 = vmatprep.subr.bf16.mxu0 %v7605_v25  ;;  %5662 = vmatprep.subr.bf16.mxu1 %v7607_v20 }
 0x533   :  { %2833 = vmatmul.mubr.f32.vlgmr.msra.gmra.mrb[16].mxu0 %v2553_v55  ;;  %2910 = vmatmul.mubr.f32.vlgmr.msra.gmra.mrb[22].mxu1 %v2553_v55  ;;  %v9263_v55 = vld [vmem:[#allocation33_spill] sm:$0xff] }
 0x534   :  { %2838 = vmatprep.mubr.f32.mxu0 %v9055_v11  ;;  %2915 = vmatprep.mubr.f32.mxu1 %v9055_v11 }
 0x535   :  { %5600 = vmatpush1.bf16.msra.mxu0 %v7609_v24  ;;  %5664 = vmatpush1.bf16.msra.mxu1 %v9249_v28 }
 0x536   :  { %5602 = vmatprep.subr.bf16.mxu0 %v9250_v48  ;;  %5666 = vmatprep.subr.bf16.mxu1 %v9251_v45 }
 0x537   :  { %2839 = vmatmul.mubr.f32.gmra.mrb[18].mxu0 %v2554_v5  ;;  %2916 = vmatmul.mubr.f32.gmra.mrb[24].mxu1 %v2554_v5  ;;  %v9268_v5 = vld [vmem:[#allocation38_spill] sm:$0xff] }
 0x539   :  { %5604 = vmatpush1.bf16.msra.mxu0 %v9252_v3  ;;  %5668 = vmatpush1.bf16.msra.mxu1 %v9253_v35 }
 0x53a   :  { %5606 = vmatprep.subr.bf16.mxu0 %v9254_v0  ;;  %5670 = vmatprep.subr.bf16.mxu1 %v9255_v61 }
 0x53d   :  { %5608 = vmatpush1.bf16.msra.mxu0 %v9256_v30  ;;  %5672 = vmatpush1.bf16.msra.mxu1 %v9257_v33  ;;  %v9312_v30 = vld [vmem:[#allocation89_spill] sm:$0xff] }
 0x53e   :  { %5610 = vmatprep.subr.bf16.mxu0 %v9258_v12  ;;  %5674 = vmatprep.subr.bf16.mxu1 %v9259_v54  ;;  %v9269_v12 = vld [vmem:[#allocation39_spill] sm:$0xff]  ;;  %v9270_v54 = vld [vmem:[#allocation40_spill] sm:$0xff] }
 0x541   :  { %5612 = vmatpush1.bf16.msra.mxu0 %v9260_v47  ;;  %5676 = vmatpush1.bf16.msra.mxu1 %v9261_v17  ;;  %v9271_v47 = vld [vmem:[#allocation41_spill] sm:$0xff]  ;;  %v9272_v17 = vld [vmem:[#allocation42_spill] sm:$0xff] }
 0x542   :  { %5614 = vmatprep.subr.bf16.mxu0 %v9262_v42  ;;  %5678 = vmatprep.subr.bf16.mxu1 %v9263_v55  ;;  %v9273_v42 = vld [vmem:[#allocation43_spill] sm:$0xff]  ;;  %v9274_v55 = vld [vmem:[#allocation44_spill] sm:$0xff] }
 0x545   :  { %5616 = vmatpush1.bf16.msra.mxu0 %v9264_v58  ;;  %5680 = vmatpush1.bf16.msra.mxu1 %v9265_v19  ;;  %v9275_v58 = vld [vmem:[#allocation45_spill] sm:$0xff]  ;;  %v9276_v19 = vld [vmem:[#allocation46_spill] sm:$0xff] }
 0x546   :  { %5618 = vmatprep.subr.bf16.mxu0 %v9266_v32  ;;  %5682 = vmatprep.subr.bf16.mxu1 %v9267_v22  ;;  %v9277_v32 = vld [vmem:[#allocation47_spill] sm:$0xff]  ;;  %v9278_v22 = vld [vmem:[#allocation48_spill] sm:$0xff] }
 0x549   :  { %5620 = vmatpush1.bf16.msra.mxu0 %v9268_v5  ;;  %5684 = vmatpush1.bf16.msra.mxu1 %v9269_v12  ;;  %v9279_v5 = vld [vmem:[#allocation49_spill] sm:$0xff]  ;;  %v9280_v12 = vld [vmem:[#allocation50_spill] sm:$0xff] }
 0x54a   :  { %5622 = vmatprep.subr.bf16.mxu0 %v9270_v54  ;;  %5686 = vmatprep.subr.bf16.mxu1 %v9271_v47  ;;  %v9281_v54 = vld [vmem:[#allocation51_spill] sm:$0xff]  ;;  %v9282_v47 = vld [vmem:[#allocation52_spill] sm:$0xff] }
 0x54d   :  { %5624 = vmatpush1.bf16.msra.mxu0 %v9272_v17  ;;  %5688 = vmatpush1.bf16.msra.mxu1 %v9273_v42  ;;  %v9283_v17 = vld [vmem:[#allocation53_spill] sm:$0xff]  ;;  %v9284_v42 = vld [vmem:[#allocation54_spill] sm:$0xff] }
 0x54e   :  { %5626 = vmatprep.subr.bf16.mxu0 %v9274_v55  ;;  %5690 = vmatprep.subr.bf16.mxu1 %v9275_v58  ;;  %v9285_v55 = vld [vmem:[#allocation55_spill] sm:$0xff]  ;;  %v9286_v58 = vld [vmem:[#allocation56_spill] sm:$0xff] }
 0x551   :  { %5628 = vmatpush1.bf16.msra.mxu0 %v9276_v19  ;;  %5692 = vmatpush1.bf16.msra.mxu1 %v9277_v32  ;;  %v9287_v19 = vld [vmem:[#allocation57_spill] sm:$0xff]  ;;  %v9288_v32 = vld [vmem:[#allocation58_spill] sm:$0xff] }
 0x552   :  { %5630 = vmatprep.subr.bf16.mxu0 %v9278_v22  ;;  %5694 = vmatprep.subr.bf16.mxu1 %v9279_v5  ;;  %v9289_v22 = vld [vmem:[#allocation59_spill] sm:$0xff]  ;;  %v9290_v5 = vld [vmem:[#allocation60_spill] sm:$0xff] }
 0x555   :  { %5632 = vmatpush1.bf16.msra.mxu0 %v9280_v12  ;;  %5696 = vmatpush1.bf16.msra.mxu1 %v9281_v54  ;;  %v9291_v12 = vld [vmem:[#allocation61_spill] sm:$0xff]  ;;  %v9292_v54 = vld [vmem:[#allocation62_spill] sm:$0xff] }
 0x556   :  { %5634 = vmatprep.subr.bf16.mxu0 %v9282_v47  ;;  %5698 = vmatprep.subr.bf16.mxu1 %v9283_v17  ;;  %v9293_v47 = vld [vmem:[#allocation63_spill] sm:$0xff]  ;;  %v9294_v17 = vld [vmem:[#allocation64_spill] sm:$0xff] }
 0x559   :  { %5636 = vmatpush1.bf16.msra.mxu0 %v9284_v42  ;;  %5700 = vmatpush1.bf16.msra.mxu1 %v9285_v55  ;;  %v9295_v42 = vld [vmem:[#allocation65_spill] sm:$0xff]  ;;  %v9296_v55 = vld [vmem:[#allocation66_spill] sm:$0xff] }
 0x55a   :  { %5638 = vmatprep.subr.bf16.mxu0 %v9286_v58  ;;  %5702 = vmatprep.subr.bf16.mxu1 %v9287_v19  ;;  %v9297_v58 = vld [vmem:[#allocation67_spill] sm:$0xff]  ;;  %v9298_v19 = vld [vmem:[#allocation68_spill] sm:$0xff] }
 0x55d   :  { %5640 = vmatpush1.bf16.msra.mxu0 %v9288_v32  ;;  %5704 = vmatpush1.bf16.msra.mxu1 %v9289_v22  ;;  %v9299_v32 = vld [vmem:[#allocation69_spill] sm:$0xff]  ;;  %v9300_v22 = vld [vmem:[#allocation70_spill] sm:$0xff] }
 0x55e   :  { %5642 = vmatprep.subr.bf16.mxu0 %v9290_v5  ;;  %5706 = vmatprep.subr.bf16.mxu1 %v9291_v12  ;;  %v9301_v5 = vld [vmem:[#allocation71_spill] sm:$0xff]  ;;  %v9302_v12 = vld [vmem:[#allocation72_spill] sm:$0xff] }
 0x561   :  { %5644 = vmatpush1.bf16.msra.mxu0 %v9292_v54  ;;  %5708 = vmatpush1.bf16.msra.mxu1 %v9293_v47  ;;  %v9303_v54 = vld [vmem:[#allocation73_spill] sm:$0xff]  ;;  %v9304_v47 = vld [vmem:[#allocation74_spill] sm:$0xff] }
 0x562   :  { %5646 = vmatprep.subr.bf16.mxu0 %v9294_v17  ;;  %5710 = vmatprep.subr.bf16.mxu1 %v9295_v42  ;;  %v9305_v17 = vld [vmem:[#allocation75_spill] sm:$0xff]  ;;  %v9306_v42 = vld [vmem:[#allocation76_spill] sm:$0xff] }
 0x565   :  { %5648 = vmatpush1.bf16.msra.mxu0 %v9296_v55  ;;  %5712 = vmatpush1.bf16.msra.mxu1 %v9297_v58  ;;  %v9307_v55 = vld [vmem:[#allocation77_spill] sm:$0xff]  ;;  %v9308_v58 = vld [vmem:[#allocation78_spill] sm:$0xff] }
 0x566   :  { %5650 = vmatprep.subr.bf16.mxu0 %v9298_v19  ;;  %5714 = vmatprep.subr.bf16.mxu1 %v9299_v32  ;;  %v9309_v19 = vld [vmem:[#allocation79_spill] sm:$0xff]  ;;  %v9310_v32 = vld [vmem:[#allocation17_spill] sm:$0xff] }
 0x569   :  { %5652 = vmatpush1.bf16.msra.mxu0 %v9300_v22  ;;  %5716 = vmatpush1.bf16.msra.mxu1 %v9301_v5  ;;  %v9311_v22 = vld [vmem:[#allocation18_spill] sm:$0xff] }
 0x56a   :  { %5654 = vmatprep.subr.bf16.mxu0 %v9302_v12  ;;  %5718 = vmatprep.subr.bf16.mxu1 %v9303_v54 }
 0x56d   :  { %5656 = vmatpush1.bf16.msra.mxu0 %v9304_v47  ;;  %5720 = vmatpush1.bf16.msra.mxu1 %v9305_v17 }
 0x56e   :  { %5658 = vmatprep.subr.bf16.mxu0 %v9306_v42  ;;  %5722 = vmatprep.subr.bf16.mxu1 %v9307_v55 }
 0x571   :  { %5660 = vmatpush1.bf16.msra.mxu0 %v9308_v58  ;;  %5724 = vmatpush1.bf16.msra.mxu1 %v9309_v19 }
 0x572   :  { %5726 = vmatprep.subr.bf16.mxu0 %v9310_v32  ;;  %5758 = vmatprep.subr.bf16.mxu1 %v9311_v22 }
 0x5e6   :  { %v2621_v5 = vpop.f32.mrb[38].mxu0  ;;  %v2698_v12 = vpop.f32.mrb[50].mxu1 }
 0x5e7   :  { %v2622_v54 = vadd.f32 %v2621_v5, %v9246_v63  ;;  %v2623_v33 = vpop.f32.mrb[39].mxu0  ;;  %v2700_v47 = vpop.f32.mrb[51].mxu1 }
 0x5e8   :  { %v2624_v17 = vadd.f32 %v2623_v33, %v9312_v30  ;;  %v2701_v3 = vadd.f32 %v2700_v47, %v7965_v62  ;;  %v9313_v33 = vld [vmem:[#allocation90_spill] sm:$0xff] }
 0x5e9   :  { %v4649_v61 = vmul.f32 -1.442695, %v2622_v54  ;;  %v2699_v54 = vadd.f32 %v2698_v12, %v9313_v33 }
 0x5ea   :  { %v4651_v42 = vmul.f32 -1.442695, %v2624_v17  ;;  %v2627_v0 = vpop.f32.mrb[40].mxu0  ;;  %v2704_v55 = vpop.f32.mrb[52].mxu1  ;;  %v4653_v45 = vmul.f32 -1.442695, %v2701_v3 }
 0x5eb   :  { %6724 = vpow2.f32 %v4649_v61  ;;  %v2628_v58 = vadd.f32 %v2627_v0, %v9246_v63  ;;  %v2629_v19 = vpop.f32.mrb[41].mxu0  ;;  %v2706_v35 = vpop.f32.mrb[53].mxu1  ;;  %v2705_v61 = vadd.f32 %v2704_v55, %v9313_v33 }
 0x5ec   :  { %6726 = vpow2.f32 %v4651_v42  ;;  %v2630_v22 = vadd.f32 %v2629_v19, %v9312_v30 }
 0x5ed   :  { %v4650_v32 = vmul.f32 -1.442695, %v2628_v58 }
 0x5ee   :  { %v4652_v5 = vmul.f32 -1.442695, %v2630_v22 }
 0x5ef   :  { %6728 = vpow2.f32 %v4650_v32 }
 0x5f0   :  { %6730 = vpow2.f32 %v4652_v5 }
 0x5f1   :  { %6732 = vpow2.f32 %v4653_v45 }
 0x5f2   :  { %6734 = vtanh.f32 %v2699_v54 }
 0x5f5   :  { %v6725_v17 = vpop.eup %6724 }
 0x5f6   :  { %v6727_v48 = vpop.eup %6726  ;;  %v2715_v28 = vadd.f32 1.0, %v6725_v17 }
 0x5f7   :  { %v2727_v0 = vadd.f32 1.0, %v6727_v48 }
 0x5f8   :  { %6736 = vrcp.f32 %v2715_v28 }
 0x5f9   :  { %v6729_v42 = vpop.eup %6728  ;;  %6738 = vrcp.f32 %v2727_v0 }
 0x5fa   :  { %v6731_v58 = vpop.eup %6730  ;;  %v2716_v19 = vadd.f32 1.0, %v6729_v42  ;;  %6740 = vtanh.f32 %v2705_v61 }
 0x5fb   :  { %v2728_v47 = vadd.f32 1.0, %v6731_v58  ;;  %v6733_v3 = vpop.eup %6732 }
 0x5fc   :  { %6742 = vrcp.f32 %v2716_v19  ;;  %v6735_v32 = vpop.eup %6734  ;;  %v2741_v17 = vadd.f32 1.0, %v6733_v3 }
 0x5fd   :  { %6744 = vrcp.f32 %v2728_v47 }
 0x5fe   :  { %6746 = vrcp.f32 %v2741_v17 }
 0x602   :  { %v6737_v12 = vpop.eup %6736 }
 0x603   :  { %v6739_v22 = vpop.eup %6738  ;;  %v2749_v5 = vmul.f32 %v6737_v12, %v6735_v32 }
 0x604   :  { %v2747_v45 = vmul.f32 %v6739_v22, %v8239_v39  ;;  %v6741_v48 = vpop.eup %6740 }
 0x606   :  { %v6743_v54 = vpop.eup %6742  ;;  %v2834_v55 = vpop.f32.mrb[16].mxu0  ;;  %v8371_v33 = vadd.f32 %v2749_v5, %v2747_v45 }
 0x607   :  { %v2911_v28 = vpop.f32.mrb[22].mxu1  ;;  %v6745_v0 = vpop.eup %6744  ;;  %v2750_v61 = vmul.f32 %v6743_v54, %v6741_v48  ;;  %v6351_v42 = vadd.f32 %v2834_v55, %v9183_v52 }
 0x608   :  { %v2836_v58 = vpop.f32.mrb[17].mxu0  ;;  %v2913_v19 = vpop.f32.mrb[23].mxu1  ;;  %v2748_v47 = vmul.f32 %v6745_v0, %v8245_v53  ;;  %6748 = vtanh.f32 %v8371_v33  ;;  %v2707_v53 = vadd.f32 %v2706_v35, %v7965_v62 }
 0x609   :  { %v6352_v32 = vadd.f32 %v2836_v58, %v9117_v43  ;;  %v4655_v39 = vmul.f32 -1.442695, %v6351_v42  ;;  %v6390_v55 = vadd.f32 %v2913_v19, %v7836_v38  ;;  %v6747_v42 = vpop.eup %6746 }
 0x60a   :  { %v2840_v12 = vpop.f32.mrb[18].mxu0  ;;  %v2917_v22 = vpop.f32.mrb[24].mxu1  ;;  %v8377_v30 = vadd.f32 %v2750_v61, %v2748_v47  ;;  %v4654_v58 = vmul.f32 -1.442695, %v2707_v53 }
 0x60b   :  { %v4657_v3 = vmul.f32 -1.442695, %v6352_v32  ;;  %6750 = vpow2.f32 %v4655_v39  ;;  %v6353_v5 = vadd.f32 %v2840_v12, %v9183_v52  ;;  %v2842_v17 = vpop.f32.mrb[19].mxu0  ;;  %v2919_v45 = vpop.f32.mrb[25].mxu1  ;;  %v4659_v47 = vmul.f32 -1.442695, %v6390_v55 }
 0x60c   :  { %v6354_v48 = vadd.f32 %v2842_v17, %v9117_v43  ;;  %v6392_v32 = vadd.f32 %v2919_v45, %v7836_v38  ;;  %v6389_v39 = vadd.f32 %v2911_v28, %v7832_v15 }
 0x60d   :  { %6752 = vpow2.f32 %v4657_v3  ;;  %v4656_v54 = vmul.f32 -1.442695, %v6353_v5 }
 0x60e   :  { %v4658_v0 = vmul.f32 -1.442695, %v6354_v48  ;;  %v4660_v19 = vmul.f32 -1.442695, %v6392_v32  ;;  %v6391_v48 = vadd.f32 %v2917_v22, %v7832_v15 }
 0x60f   :  { %6754 = vpow2.f32 %v4656_v54 }
 0x610   :  { %6756 = vpow2.f32 %v4658_v0 }
 0x611   :  { %6758 = vpow2.f32 %v4654_v58 }
 0x612   :  { %v6749_v61 = vpop.eup %6748  ;;  %6760 = vpow2.f32 %v4659_v47 }
 0x613   :  { %v2755_v12 = vmul.f32 %v6749_v61, %v6747_v42  ;;  %6762 = vtanh.f32 %v6389_v39 }
 0x615   :  { %v6751_v3 = vpop.eup %6750  ;;  %3042 = vmatprep.mubr.f32.mxu0 %v2755_v12  ;;  %3119 = vmatprep.mubr.f32.mxu1 %v2755_v12 }
 0x616   :  { %v2936_v5 = vadd.f32 1.0, %v6751_v3 }
 0x617   :  { %v6753_v35 = vpop.eup %6752 }
 0x618   :  { %v2948_v17 = vadd.f32 1.0, %v6753_v35  ;;  %6764 = vrcp.f32 %v2936_v5 }
 0x619   :  { %v6755_v53 = vpop.eup %6754 }
 0x61a   :  { %6766 = vrcp.f32 %v2948_v17  ;;  %v6757_v54 = vpop.eup %6756  ;;  %v2937_v45 = vadd.f32 1.0, %v6755_v53 }
 0x61b   :  { %6768 = vpow2.f32 %v4660_v19  ;;  %v2949_v28 = vadd.f32 1.0, %v6757_v54  ;;  %v6759_v55 = vpop.eup %6758 }
 0x61c   :  { %6770 = vtanh.f32 %v6391_v48  ;;  %v6761_v0 = vpop.eup %6760  ;;  %v2742_v35 = vadd.f32 1.0, %v6759_v55 }
 0x61d   :  { %6772 = vrcp.f32 %v2937_v45  ;;  %v6763_v42 = vpop.eup %6762  ;;  %v2962_v32 = vadd.f32 1.0, %v6761_v0 }
 0x61e   :  { %6774 = vrcp.f32 %v2949_v28 }
 0x61f   :  { %6776 = vtanh.f32 %v8377_v30 }
 0x620   :  { %6778 = vrcp.f32 %v2962_v32  ;;  %v9315_v32 = vld [vmem:[#allocation20_spill] sm:$0xff] }
 0x622   :  { %v6765_v58 = vpop.eup %6764 }
 0x623   :  { %v2970_v47 = vmul.f32 %v6765_v58, %v6763_v42 }
 0x624   :  { %v6767_v61 = vpop.eup %6766 }
 0x625   :  { %v6769_v39 = vpop.eup %6768  ;;  %v2968_v22 = vmul.f32 %v6767_v61, %v8255_v8 }
 0x626   :  { %v6771_v12 = vpop.eup %6770  ;;  %v2963_v48 = vadd.f32 1.0, %v6769_v39  ;;  %v9316_v39 = vld [vmem:[#allocation21_spill] sm:$0xff] }
 0x627   :  { %v6773_v3 = vpop.eup %6772  ;;  %v8387_v5 = vadd.f32 %v2970_v47, %v2968_v22  ;;  %v9314_v47 = vld [vmem:[#allocation19_spill] sm:$0xff]  ;;  %v9317_v22 = vld [vmem:[#allocation22_spill] sm:$0xff] }
 0x628   :  { %v6775_v19 = vpop.eup %6774  ;;  %v2971_v17 = vmul.f32 %v6773_v3, %v6771_v12  ;;  %v9318_v12 = vld [vmem:[#allocation23_spill] sm:$0xff]  ;;  %v9319_v3 = vld [vmem:[#allocation24_spill] sm:$0xff] }
 0x629   :  { %6780 = vtanh.f32 %v8387_v5  ;;  %v2969_v53 = vmul.f32 %v6775_v19, %v8260_v9  ;;  %v6777_v8 = vpop.eup %6776  ;;  %v9321_v19 = vld [vmem:[#allocation26_spill] sm:$0xff] }
 0x62a   :  { %6782 = vrcp.f32 %v2742_v35  ;;  %v6779_v45 = vpop.eup %6778  ;;  %v9320_v35 = vld [vmem:[#allocation25_spill] sm:$0xff] }
 0x62b   :  { %v8392_v54 = vadd.f32 %v2971_v17, %v2969_v53  ;;  %6784 = vrcp.f32 %v2963_v48  ;;  %v9322_v17 = vld [vmem:[#allocation27_spill] sm:$0xff]  ;;  %v9323_v48 = vld [vmem:[#allocation28_spill] sm:$0xff]  ;;  %v9324_v53 = vld [vmem:[#allocation29_spill] sm:$0xff] }
 0x62d   :  { %6786 = vtanh.f32 %v8392_v54 }
 0x633   :  { %v6781_v28 = vpop.eup %6780 }
 0x634   :  { %v2976_v55 = vmul.f32 %v6781_v28, %v6779_v45  ;;  %v6783_v0 = vpop.eup %6782  ;;  %v9326_v45 = vld [vmem:[#allocation31_spill] sm:$0xff]  ;;  %v9327_v28 = vld [vmem:[#allocation32_spill] sm:$0xff] }
 0x635   :  { %v6785_v42 = vpop.eup %6784  ;;  %v2756_v58 = vmul.f32 %v6783_v0, %v6777_v8  ;;  %v9325_v8 = vld [vmem:[#allocation30_spill] sm:$0xff] }
 0x636   :  { %3043 = vmatmul.mubr.f32.vlgmr.msra.gmra.mrb[42].mxu0 %v2976_v55  ;;  %3120 = vmatmul.mubr.f32.vlgmr.msra.gmra.mrb[54].mxu1 %v2976_v55  ;;  %v9329_v0 = vld [vmem:[#allocation34_spill] sm:$0xff] }
 0x637   :  { %v6787_v61 = vpop.eup %6786  ;;  %5728 = vmatpush1.bf16.msra.mxu0 %v7359_v16  ;;  %5760 = vmatpush1.bf16.msra.mxu1 %v7432_v7 }
 0x638   :  { %3048 = vmatprep.mubr.f32.mxu0 %v2756_v58  ;;  %3125 = vmatprep.mubr.f32.mxu1 %v2756_v58  ;;  %v2977_v9 = vmul.f32 %v6787_v61, %v6785_v42  ;;  %v9330_v42 = vld [vmem:[#allocation35_spill] sm:$0xff]  ;;  %v9331_v58 = vld [vmem:[#allocation36_spill] sm:$0xff]  ;;  %v9332_v61 = vld [vmem:[#allocation37_spill] sm:$0xff] }
 0x639   :  { %5730 = vmatprep.subr.bf16.mxu0 %v7373_v29  ;;  %5762 = vmatprep.subr.bf16.mxu1 %v7440_v57 }
 0x63a   :  { %3049 = vmatmul.mubr.f32.gmra.mrb[44].mxu0 %v2977_v9  ;;  %3126 = vmatmul.mubr.f32.gmra.mrb[56].mxu1 %v2977_v9 }
 0x63b   :  { %5732 = vmatpush1.bf16.msra.mxu0 %v7387_v40  ;;  %5764 = vmatpush1.bf16.msra.mxu1 %v7454_v31 }
 0x63c   :  { %5734 = vmatprep.subr.bf16.mxu0 %v7400_v23  ;;  %5766 = vmatprep.subr.bf16.mxu1 %v7461_v41 }
 0x63d   :  { %3255 = vmatprep.mubr.f32.mxu0 %v9055_v11  ;;  %3332 = vmatprep.mubr.f32.mxu1 %v9055_v11 }
 0x63f   :  { %5736 = vmatpush1.bf16.msra.mxu0 %v7407_v36  ;;  %5768 = vmatpush1.bf16.msra.mxu1 %v7474_v60 }
 0x640   :  { %5738 = vmatprep.subr.bf16.mxu0 %v7414_v26  ;;  %5770 = vmatprep.subr.bf16.mxu1 %v7486_v6 }
 0x643   :  { %5740 = vmatpush1.bf16.msra.mxu0 %v7429_v1  ;;  %5772 = vmatpush1.bf16.msra.mxu1 %v7504_v13 }
 0x644   :  { %5742 = vmatprep.subr.bf16.mxu0 %v7445_v14  ;;  %5774 = vmatprep.subr.bf16.mxu1 %v7512_v21 }
 0x647   :  { %5744 = vmatpush1.bf16.msra.mxu0 %v7450_v18  ;;  %5776 = vmatpush1.bf16.msra.mxu1 %v7526_v44 }
 0x648   :  { %5746 = vmatprep.subr.bf16.mxu0 %v7465_v37  ;;  %5778 = vmatprep.subr.bf16.mxu1 %v7532_v51 }
 0x64b   :  { %5748 = vmatpush1.bf16.msra.mxu0 %v7470_v50  ;;  %5780 = vmatpush1.bf16.msra.mxu1 %v7541_v27 }
 0x64c   :  { %5750 = vmatprep.subr.bf16.mxu0 %v7490_v10  ;;  %5782 = vmatprep.subr.bf16.mxu1 %v7545_v4 }
 0x64f   :  { %5752 = vmatpush1.bf16.msra.mxu0 %v7497_v2  ;;  %5784 = vmatpush1.bf16.msra.mxu1 %v7552_v59 }
 0x650   :  { %5754 = vmatprep.subr.bf16.mxu0 %v7516_v34  ;;  %5786 = vmatprep.subr.bf16.mxu1 %v7556_v56 }
 0x653   :  { %5756 = vmatpush1.bf16.msra.mxu0 %v7521_v46  ;;  %5788 = vmatpush1.bf16.msra.mxu1 %v7563_v49 }
 0x654   :  { %5790 = vmatprep.subr.bf16.mxu0 %v7605_v25  ;;  %5854 = vmatprep.subr.bf16.mxu1 %v7607_v20 }
 0x656   :  { %3256 = vmatmul.mubr.f32.vlgmr.msra.gmra.mrb[20].mxu0 %v2976_v55  ;;  %3333 = vmatmul.mubr.f32.vlgmr.msra.gmra.mrb[26].mxu1 %v2976_v55  ;;  %v9328_v55 = vld [vmem:[#allocation33_spill] sm:$0xff] }
 0x657   :  { %3261 = vmatprep.mubr.f32.mxu0 %v9055_v11  ;;  %3338 = vmatprep.mubr.f32.mxu1 %v9055_v11 }
 0x658   :  { %5792 = vmatpush1.bf16.msra.mxu0 %v7609_v24  ;;  %5856 = vmatpush1.bf16.msra.mxu1 %v9314_v47 }
 0x659   :  { %5794 = vmatprep.subr.bf16.mxu0 %v9315_v32  ;;  %5858 = vmatprep.subr.bf16.mxu1 %v9316_v39 }
 0x65a   :  { %3262 = vmatmul.mubr.f32.gmra.mrb[22].mxu0 %v2977_v9  ;;  %3339 = vmatmul.mubr.f32.gmra.mrb[28].mxu1 %v2977_v9  ;;  %v9333_v9 = vld [vmem:[#allocation38_spill] sm:$0xff] }
 0x65c   :  { %5796 = vmatpush1.bf16.msra.mxu0 %v9317_v22  ;;  %5860 = vmatpush1.bf16.msra.mxu1 %v9318_v12 }
 0x65d   :  { %5798 = vmatprep.subr.bf16.mxu0 %v9319_v3  ;;  %5862 = vmatprep.subr.bf16.mxu1 %v9320_v35 }
 0x660   :  { %5800 = vmatpush1.bf16.msra.mxu0 %v9321_v19  ;;  %5864 = vmatpush1.bf16.msra.mxu1 %v9322_v17  ;;  %v9377_v19 = vld [vmem:[#allocation89_spill] sm:$0xff] }
 0x661   :  { %5802 = vmatprep.subr.bf16.mxu0 %v9323_v48  ;;  %5866 = vmatprep.subr.bf16.mxu1 %v9324_v53  ;;  %v9334_v48 = vld [vmem:[#allocation39_spill] sm:$0xff]  ;;  %v9335_v53 = vld [vmem:[#allocation40_spill] sm:$0xff] }
 0x664   :  { %5804 = vmatpush1.bf16.msra.mxu0 %v9325_v8  ;;  %5868 = vmatpush1.bf16.msra.mxu1 %v9326_v45  ;;  %v9336_v8 = vld [vmem:[#allocation41_spill] sm:$0xff]  ;;  %v9337_v45 = vld [vmem:[#allocation42_spill] sm:$0xff] }
 0x665   :  { %5806 = vmatprep.subr.bf16.mxu0 %v9327_v28  ;;  %5870 = vmatprep.subr.bf16.mxu1 %v9328_v55  ;;  %v9338_v28 = vld [vmem:[#allocation43_spill] sm:$0xff]  ;;  %v9339_v55 = vld [vmem:[#allocation44_spill] sm:$0xff] }
 0x668   :  { %5808 = vmatpush1.bf16.msra.mxu0 %v9329_v0  ;;  %5872 = vmatpush1.bf16.msra.mxu1 %v9330_v42  ;;  %v9340_v0 = vld [vmem:[#allocation45_spill] sm:$0xff]  ;;  %v9341_v42 = vld [vmem:[#allocation46_spill] sm:$0xff] }
 0x669   :  { %5810 = vmatprep.subr.bf16.mxu0 %v9331_v58  ;;  %5874 = vmatprep.subr.bf16.mxu1 %v9332_v61  ;;  %v9342_v58 = vld [vmem:[#allocation47_spill] sm:$0xff]  ;;  %v9343_v61 = vld [vmem:[#allocation48_spill] sm:$0xff] }
 0x66c   :  { %5812 = vmatpush1.bf16.msra.mxu0 %v9333_v9  ;;  %5876 = vmatpush1.bf16.msra.mxu1 %v9334_v48  ;;  %v9344_v9 = vld [vmem:[#allocation49_spill] sm:$0xff]  ;;  %v9345_v48 = vld [vmem:[#allocation50_spill] sm:$0xff] }
 0x66d   :  { %5814 = vmatprep.subr.bf16.mxu0 %v9335_v53  ;;  %5878 = vmatprep.subr.bf16.mxu1 %v9336_v8  ;;  %v9346_v53 = vld [vmem:[#allocation51_spill] sm:$0xff]  ;;  %v9347_v8 = vld [vmem:[#allocation52_spill] sm:$0xff] }
 0x670   :  { %5816 = vmatpush1.bf16.msra.mxu0 %v9337_v45  ;;  %5880 = vmatpush1.bf16.msra.mxu1 %v9338_v28  ;;  %v9348_v45 = vld [vmem:[#allocation53_spill] sm:$0xff]  ;;  %v9349_v28 = vld [vmem:[#allocation54_spill] sm:$0xff] }
 0x671   :  { %5818 = vmatprep.subr.bf16.mxu0 %v9339_v55  ;;  %5882 = vmatprep.subr.bf16.mxu1 %v9340_v0  ;;  %v9350_v55 = vld [vmem:[#allocation55_spill] sm:$0xff]  ;;  %v9351_v0 = vld [vmem:[#allocation56_spill] sm:$0xff] }
 0x674   :  { %5820 = vmatpush1.bf16.msra.mxu0 %v9341_v42  ;;  %5884 = vmatpush1.bf16.msra.mxu1 %v9342_v58  ;;  %v9352_v42 = vld [vmem:[#allocation57_spill] sm:$0xff]  ;;  %v9353_v58 = vld [vmem:[#allocation58_spill] sm:$0xff] }
 0x675   :  { %5822 = vmatprep.subr.bf16.mxu0 %v9343_v61  ;;  %5886 = vmatprep.subr.bf16.mxu1 %v9344_v9  ;;  %v9354_v61 = vld [vmem:[#allocation59_spill] sm:$0xff]  ;;  %v9355_v9 = vld [vmem:[#allocation60_spill] sm:$0xff] }
 0x678   :  { %5824 = vmatpush1.bf16.msra.mxu0 %v9345_v48  ;;  %5888 = vmatpush1.bf16.msra.mxu1 %v9346_v53  ;;  %v9356_v48 = vld [vmem:[#allocation61_spill] sm:$0xff]  ;;  %v9357_v53 = vld [vmem:[#allocation62_spill] sm:$0xff] }
 0x679   :  { %5826 = vmatprep.subr.bf16.mxu0 %v9347_v8  ;;  %5890 = vmatprep.subr.bf16.mxu1 %v9348_v45  ;;  %v9358_v8 = vld [vmem:[#allocation63_spill] sm:$0xff]  ;;  %v9359_v45 = vld [vmem:[#allocation64_spill] sm:$0xff] }
 0x67c   :  { %5828 = vmatpush1.bf16.msra.mxu0 %v9349_v28  ;;  %5892 = vmatpush1.bf16.msra.mxu1 %v9350_v55  ;;  %v9360_v28 = vld [vmem:[#allocation65_spill] sm:$0xff]  ;;  %v9361_v55 = vld [vmem:[#allocation66_spill] sm:$0xff] }
 0x67d   :  { %5830 = vmatprep.subr.bf16.mxu0 %v9351_v0  ;;  %5894 = vmatprep.subr.bf16.mxu1 %v9352_v42  ;;  %v9362_v0 = vld [vmem:[#allocation67_spill] sm:$0xff]  ;;  %v9363_v42 = vld [vmem:[#allocation68_spill] sm:$0xff] }
 0x680   :  { %5832 = vmatpush1.bf16.msra.mxu0 %v9353_v58  ;;  %5896 = vmatpush1.bf16.msra.mxu1 %v9354_v61  ;;  %v9364_v58 = vld [vmem:[#allocation69_spill] sm:$0xff]  ;;  %v9365_v61 = vld [vmem:[#allocation70_spill] sm:$0xff] }
 0x681   :  { %5834 = vmatprep.subr.bf16.mxu0 %v9355_v9  ;;  %5898 = vmatprep.subr.bf16.mxu1 %v9356_v48  ;;  %v9366_v9 = vld [vmem:[#allocation71_spill] sm:$0xff]  ;;  %v9367_v48 = vld [vmem:[#allocation72_spill] sm:$0xff] }
 0x684   :  { %5836 = vmatpush1.bf16.msra.mxu0 %v9357_v53  ;;  %5900 = vmatpush1.bf16.msra.mxu1 %v9358_v8  ;;  %v9368_v53 = vld [vmem:[#allocation73_spill] sm:$0xff]  ;;  %v9369_v8 = vld [vmem:[#allocation74_spill] sm:$0xff] }
 0x685   :  { %5838 = vmatprep.subr.bf16.mxu0 %v9359_v45  ;;  %5902 = vmatprep.subr.bf16.mxu1 %v9360_v28  ;;  %v9370_v45 = vld [vmem:[#allocation75_spill] sm:$0xff]  ;;  %v9371_v28 = vld [vmem:[#allocation76_spill] sm:$0xff] }
 0x688   :  { %5840 = vmatpush1.bf16.msra.mxu0 %v9361_v55  ;;  %5904 = vmatpush1.bf16.msra.mxu1 %v9362_v0  ;;  %v9372_v55 = vld [vmem:[#allocation77_spill] sm:$0xff]  ;;  %v9373_v0 = vld [vmem:[#allocation78_spill] sm:$0xff] }
 0x689   :  { %5842 = vmatprep.subr.bf16.mxu0 %v9363_v42  ;;  %5906 = vmatprep.subr.bf16.mxu1 %v9364_v58  ;;  %v9374_v42 = vld [vmem:[#allocation79_spill] sm:$0xff]  ;;  %v9375_v58 = vld [vmem:[#allocation17_spill] sm:$0xff] }
 0x68c   :  { %5844 = vmatpush1.bf16.msra.mxu0 %v9365_v61  ;;  %5908 = vmatpush1.bf16.msra.mxu1 %v9366_v9  ;;  %v9376_v61 = vld [vmem:[#allocation18_spill] sm:$0xff] }
 0x68d   :  { %5846 = vmatprep.subr.bf16.mxu0 %v9367_v48  ;;  %5910 = vmatprep.subr.bf16.mxu1 %v9368_v53 }
 0x690   :  { %5848 = vmatpush1.bf16.msra.mxu0 %v9369_v8  ;;  %5912 = vmatpush1.bf16.msra.mxu1 %v9370_v45 }
 0x691   :  { %5850 = vmatprep.subr.bf16.mxu0 %v9371_v28  ;;  %5914 = vmatprep.subr.bf16.mxu1 %v9372_v55 }
 0x694   :  { %5852 = vmatpush1.bf16.msra.mxu0 %v9373_v0  ;;  %5916 = vmatpush1.bf16.msra.mxu1 %v9374_v42 }
 0x695   :  { %5918 = vmatprep.subr.bf16.mxu0 %v9375_v58  ;;  %5950 = vmatprep.subr.bf16.mxu1 %v9376_v61 }
 0x709   :  { %v3044_v9 = vpop.f32.mrb[42].mxu0  ;;  %v3121_v48 = vpop.f32.mrb[54].mxu1 }
 0x70a   :  { %v3045_v53 = vadd.f32 %v3044_v9, %v9246_v63  ;;  %v3046_v17 = vpop.f32.mrb[43].mxu0  ;;  %v3123_v8 = vpop.f32.mrb[55].mxu1 }
 0x70b   :  { %v3047_v45 = vadd.f32 %v3046_v17, %v9377_v19  ;;  %v3124_v22 = vadd.f32 %v3123_v8, %v7965_v62  ;;  %v9378_v17 = vld [vmem:[#allocation90_spill] sm:$0xff] }
 0x70c   :  { %v4661_v35 = vmul.f32 -1.442695, %v3045_v53  ;;  %v3122_v53 = vadd.f32 %v3121_v48, %v9378_v17 }
 0x70d   :  { %v4663_v28 = vmul.f32 -1.442695, %v3047_v45  ;;  %v3050_v3 = vpop.f32.mrb[44].mxu0  ;;  %v3127_v55 = vpop.f32.mrb[56].mxu1  ;;  %v4665_v39 = vmul.f32 -1.442695, %v3124_v22 }
 0x70e   :  { %6788 = vpow2.f32 %v4661_v35  ;;  %v3051_v0 = vadd.f32 %v3050_v3, %v9246_v63  ;;  %v3052_v42 = vpop.f32.mrb[45].mxu0  ;;  %v3129_v12 = vpop.f32.mrb[57].mxu1  ;;  %v3128_v35 = vadd.f32 %v3127_v55, %v9378_v17 }
 0x70f   :  { %6790 = vpow2.f32 %v4663_v28  ;;  %v3053_v61 = vadd.f32 %v3052_v42, %v9377_v19 }
 0x710   :  { %v4662_v58 = vmul.f32 -1.442695, %v3051_v0 }
 0x711   :  { %v4664_v9 = vmul.f32 -1.442695, %v3053_v61 }
 0x712   :  { %6792 = vpow2.f32 %v4662_v58 }
 0x713   :  { %6794 = vpow2.f32 %v4664_v9 }
 0x714   :  { %6796 = vpow2.f32 %v4665_v39 }
 0x715   :  { %6798 = vtanh.f32 %v3122_v53 }
 0x718   :  { %v6789_v45 = vpop.eup %6788 }
 0x719   :  { %v6791_v32 = vpop.eup %6790  ;;  %v3138_v47 = vadd.f32 1.0, %v6789_v45 }
 0x71a   :  { %v3150_v3 = vadd.f32 1.0, %v6791_v32 }
 0x71b   :  { %6800 = vrcp.f32 %v3138_v47 }
 0x71c   :  { %v6793_v28 = vpop.eup %6792  ;;  %6802 = vrcp.f32 %v3150_v3 }
 0x71d   :  { %v6795_v0 = vpop.eup %6794  ;;  %v3139_v42 = vadd.f32 1.0, %v6793_v28  ;;  %6804 = vtanh.f32 %v3128_v35 }
 0x71e   :  { %v3151_v8 = vadd.f32 1.0, %v6795_v0  ;;  %v6797_v22 = vpop.eup %6796 }
 0x71f   :  { %6806 = vrcp.f32 %v3139_v42  ;;  %v6799_v58 = vpop.eup %6798  ;;  %v3164_v45 = vadd.f32 1.0, %v6797_v22 }
 0x720   :  { %6808 = vrcp.f32 %v3151_v8 }
 0x721   :  { %6810 = vrcp.f32 %v3164_v45 }
 0x725   :  { %v6801_v48 = vpop.eup %6800 }
 0x726   :  { %v6803_v61 = vpop.eup %6802  ;;  %v3172_v9 = vmul.f32 %v6801_v48, %v6799_v58 }
 0x727   :  { %v3170_v39 = vmul.f32 %v6803_v61, %v8371_v33  ;;  %v6805_v32 = vpop.eup %6804 }
 0x729   :  { %v6807_v53 = vpop.eup %6806  ;;  %v3257_v55 = vpop.f32.mrb[20].mxu0  ;;  %v8503_v17 = vadd.f32 %v3172_v9, %v3170_v39 }
 0x72a   :  { %v3334_v47 = vpop.f32.mrb[26].mxu1  ;;  %v6809_v3 = vpop.eup %6808  ;;  %v3173_v35 = vmul.f32 %v6807_v53, %v6805_v32  ;;  %v6355_v28 = vadd.f32 %v3257_v55, %v9183_v52 }
 0x72b   :  { %v3259_v0 = vpop.f32.mrb[21].mxu0  ;;  %v3336_v42 = vpop.f32.mrb[27].mxu1  ;;  %v3171_v8 = vmul.f32 %v6809_v3, %v8377_v30  ;;  %6812 = vtanh.f32 %v8503_v17  ;;  %v3130_v30 = vadd.f32 %v3129_v12, %v7965_v62 }
 0x72c   :  { %v6356_v58 = vadd.f32 %v3259_v0, %v9117_v43  ;;  %v4667_v33 = vmul.f32 -1.442695, %v6355_v28  ;;  %v6394_v55 = vadd.f32 %v3336_v42, %v7836_v38  ;;  %v6811_v28 = vpop.eup %6810 }
 0x72d   :  { %v3263_v48 = vpop.f32.mrb[22].mxu0  ;;  %v3340_v61 = vpop.f32.mrb[28].mxu1  ;;  %v8509_v19 = vadd.f32 %v3173_v35, %v3171_v8  ;;  %v4666_v0 = vmul.f32 -1.442695, %v3130_v30 }
 0x72e   :  { %v4669_v22 = vmul.f32 -1.442695, %v6356_v58  ;;  %6814 = vpow2.f32 %v4667_v33  ;;  %v6357_v9 = vadd.f32 %v3263_v48, %v9183_v52  ;;  %v3265_v45 = vpop.f32.mrb[23].mxu0  ;;  %v3342_v39 = vpop.f32.mrb[29].mxu1  ;;  %v4671_v8 = vmul.f32 -1.442695, %v6394_v55 }
 0x72f   :  { %v6358_v32 = vadd.f32 %v3265_v45, %v9117_v43  ;;  %v6396_v58 = vadd.f32 %v3342_v39, %v7836_v38  ;;  %v6393_v33 = vadd.f32 %v3334_v47, %v7832_v15 }
 0x730   :  { %6816 = vpow2.f32 %v4669_v22  ;;  %v4668_v53 = vmul.f32 -1.442695, %v6357_v9 }
 0x731   :  { %v4670_v3 = vmul.f32 -1.442695, %v6358_v32  ;;  %v4672_v42 = vmul.f32 -1.442695, %v6396_v58  ;;  %v6395_v32 = vadd.f32 %v3340_v61, %v7832_v15 }
 0x732   :  { %6818 = vpow2.f32 %v4668_v53 }
 0x733   :  { %6820 = vpow2.f32 %v4670_v3 }
 0x734   :  { %6822 = vpow2.f32 %v4666_v0 }
 0x735   :  { %v6813_v35 = vpop.eup %6812  ;;  %6824 = vpow2.f32 %v4671_v8 }
 0x736   :  { %v3178_v48 = vmul.f32 %v6813_v35, %v6811_v28  ;;  %6826 = vtanh.f32 %v6393_v33 }
 0x738   :  { %v6815_v22 = vpop.eup %6814  ;;  %3465 = vmatprep.mubr.f32.mxu0 %v3178_v48  ;;  %3542 = vmatprep.mubr.f32.mxu1 %v3178_v48 }
 0x739   :  { %v3359_v9 = vadd.f32 1.0, %v6815_v22 }
 0x73a   :  { %v6817_v12 = vpop.eup %6816 }
 0x73b   :  { %v3371_v45 = vadd.f32 1.0, %v6817_v12  ;;  %6828 = vrcp.f32 %v3359_v9 }
 0x73c   :  { %v6819_v30 = vpop.eup %6818 }
 0x73d   :  { %6830 = vrcp.f32 %v3371_v45  ;;  %v6821_v53 = vpop.eup %6820  ;;  %v3360_v39 = vadd.f32 1.0, %v6819_v30 }
 0x73e   :  { %6832 = vpow2.f32 %v4672_v42  ;;  %v3372_v47 = vadd.f32 1.0, %v6821_v53  ;;  %v6823_v55 = vpop.eup %6822 }
 0x73f   :  { %6834 = vtanh.f32 %v6395_v32  ;;  %v6825_v3 = vpop.eup %6824  ;;  %v3165_v12 = vadd.f32 1.0, %v6823_v55 }
 0x740   :  { %6836 = vrcp.f32 %v3360_v39  ;;  %v6827_v28 = vpop.eup %6826  ;;  %v3385_v58 = vadd.f32 1.0, %v6825_v3 }
 0x741   :  { %6838 = vrcp.f32 %v3372_v47 }
 0x742   :  { %6840 = vtanh.f32 %v8509_v19 }
 0x743   :  { %6842 = vrcp.f32 %v3385_v58  ;;  %v9380_v58 = vld [vmem:[#allocation20_spill] sm:$0xff] }
 0x745   :  { %v6829_v0 = vpop.eup %6828 }
 0x746   :  { %v3393_v8 = vmul.f32 %v6829_v0, %v6827_v28 }
 0x747   :  { %v6831_v35 = vpop.eup %6830 }
 0x748   :  { %v6833_v33 = vpop.eup %6832  ;;  %v3391_v61 = vmul.f32 %v6831_v35, %v8387_v5 }
 0x749   :  { %v6835_v48 = vpop.eup %6834  ;;  %v3386_v32 = vadd.f32 1.0, %v6833_v33  ;;  %v9381_v33 = vld [vmem:[#allocation21_spill] sm:$0xff] }
 0x74a   :  { %v6837_v22 = vpop.eup %6836  ;;  %v8519_v9 = vadd.f32 %v3393_v8, %v3391_v61  ;;  %v9379_v8 = vld [vmem:[#allocation19_spill] sm:$0xff]  ;;  %v9382_v61 = vld [vmem:[#allocation22_spill] sm:$0xff] }
 0x74b   :  { %v6839_v42 = vpop.eup %6838  ;;  %v3394_v45 = vmul.f32 %v6837_v22, %v6835_v48  ;;  %v9383_v48 = vld [vmem:[#allocation23_spill] sm:$0xff]  ;;  %v9384_v22 = vld [vmem:[#allocation24_spill] sm:$0xff] }
 0x74c   :  { %6844 = vtanh.f32 %v8519_v9  ;;  %v3392_v30 = vmul.f32 %v6839_v42, %v8392_v54  ;;  %v6841_v5 = vpop.eup %6840  ;;  %v9386_v42 = vld [vmem:[#allocation26_spill] sm:$0xff] }
 0x74d   :  { %6846 = vrcp.f32 %v3165_v12  ;;  %v6843_v39 = vpop.eup %6842  ;;  %v9385_v12 = vld [vmem:[#allocation25_spill] sm:$0xff] }
 0x74e   :  { %v8524_v53 = vadd.f32 %v3394_v45, %v3392_v30  ;;  %6848 = vrcp.f32 %v3386_v32  ;;  %v9387_v45 = vld [vmem:[#allocation27_spill] sm:$0xff]  ;;  %v9388_v32 = vld [vmem:[#allocation28_spill] sm:$0xff]  ;;  %v9389_v30 = vld [vmem:[#allocation29_spill] sm:$0xff] }
 0x750   :  { %6850 = vtanh.f32 %v8524_v53 }
 0x756   :  { %v6845_v47 = vpop.eup %6844 }
 0x757   :  { %v3399_v55 = vmul.f32 %v6845_v47, %v6843_v39  ;;  %v6847_v3 = vpop.eup %6846  ;;  %v9391_v39 = vld [vmem:[#allocation31_spill] sm:$0xff]  ;;  %v9392_v47 = vld [vmem:[#allocation32_spill] sm:$0xff] }
 0x758   :  { %v6849_v28 = vpop.eup %6848  ;;  %v3179_v0 = vmul.f32 %v6847_v3, %v6841_v5  ;;  %v9390_v5 = vld [vmem:[#allocation30_spill] sm:$0xff] }
 0x759   :  { %3466 = vmatmul.mubr.f32.vlgmr.msra.gmra.mrb[46].mxu0 %v3399_v55  ;;  %3543 = vmatmul.mubr.f32.vlgmr.msra.gmra.mrb[58].mxu1 %v3399_v55  ;;  %v9394_v3 = vld [vmem:[#allocation34_spill] sm:$0xff] }
 0x75a   :  { %v6851_v35 = vpop.eup %6850  ;;  %5920 = vmatpush1.bf16.msra.mxu0 %v7359_v16  ;;  %5952 = vmatpush1.bf16.msra.mxu1 %v7432_v7 }
 0x75b   :  { %3471 = vmatprep.mubr.f32.mxu0 %v3179_v0  ;;  %3548 = vmatprep.mubr.f32.mxu1 %v3179_v0  ;;  %v3400_v54 = vmul.f32 %v6851_v35, %v6849_v28  ;;  %v9395_v28 = vld [vmem:[#allocation35_spill] sm:$0xff]  ;;  %v9396_v0 = vld [vmem:[#allocation36_spill] sm:$0xff]  ;;  %v9397_v35 = vld [vmem:[#allocation37_spill] sm:$0xff] }
 0x75c   :  { %5922 = vmatprep.subr.bf16.mxu0 %v7373_v29  ;;  %5954 = vmatprep.subr.bf16.mxu1 %v7440_v57 }
 0x75d   :  { %3472 = vmatmul.mubr.f32.gmra.mrb[48].mxu0 %v3400_v54  ;;  %3549 = vmatmul.mubr.f32.gmra.mrb[60].mxu1 %v3400_v54 }
 0x75e   :  { %5924 = vmatpush1.bf16.msra.mxu0 %v7387_v40  ;;  %5956 = vmatpush1.bf16.msra.mxu1 %v7454_v31 }
 0x75f   :  { %5926 = vmatprep.subr.bf16.mxu0 %v7400_v23  ;;  %5958 = vmatprep.subr.bf16.mxu1 %v7461_v41 }
 0x760   :  { %3678 = vmatprep.mubr.f32.mxu0 %v9055_v11  ;;  %3755 = vmatprep.mubr.f32.mxu1 %v9055_v11 }
 0x762   :  { %5928 = vmatpush1.bf16.msra.mxu0 %v7407_v36  ;;  %5960 = vmatpush1.bf16.msra.mxu1 %v7474_v60 }
 0x763   :  { %5930 = vmatprep.subr.bf16.mxu0 %v7414_v26  ;;  %5962 = vmatprep.subr.bf16.mxu1 %v7486_v6 }
 0x766   :  { %5932 = vmatpush1.bf16.msra.mxu0 %v7429_v1  ;;  %5964 = vmatpush1.bf16.msra.mxu1 %v7504_v13 }
 0x767   :  { %5934 = vmatprep.subr.bf16.mxu0 %v7445_v14  ;;  %5966 = vmatprep.subr.bf16.mxu1 %v7512_v21 }
 0x76a   :  { %5936 = vmatpush1.bf16.msra.mxu0 %v7450_v18  ;;  %5968 = vmatpush1.bf16.msra.mxu1 %v7526_v44 }
 0x76b   :  { %5938 = vmatprep.subr.bf16.mxu0 %v7465_v37  ;;  %5970 = vmatprep.subr.bf16.mxu1 %v7532_v51 }
 0x76e   :  { %5940 = vmatpush1.bf16.msra.mxu0 %v7470_v50  ;;  %5972 = vmatpush1.bf16.msra.mxu1 %v7541_v27 }
 0x76f   :  { %5942 = vmatprep.subr.bf16.mxu0 %v7490_v10  ;;  %5974 = vmatprep.subr.bf16.mxu1 %v7545_v4 }
 0x772   :  { %5944 = vmatpush1.bf16.msra.mxu0 %v7497_v2  ;;  %5976 = vmatpush1.bf16.msra.mxu1 %v7552_v59 }
 0x773   :  { %5946 = vmatprep.subr.bf16.mxu0 %v7516_v34  ;;  %5978 = vmatprep.subr.bf16.mxu1 %v7556_v56 }
 0x776   :  { %5948 = vmatpush1.bf16.msra.mxu0 %v7521_v46  ;;  %5980 = vmatpush1.bf16.msra.mxu1 %v7563_v49 }
 0x777   :  { %5982 = vmatprep.subr.bf16.mxu0 %v7605_v25  ;;  %6046 = vmatprep.subr.bf16.mxu1 %v7607_v20 }
 0x779   :  { %3679 = vmatmul.mubr.f32.vlgmr.msra.gmra.mrb[24].mxu0 %v3399_v55  ;;  %3756 = vmatmul.mubr.f32.vlgmr.msra.gmra.mrb[30].mxu1 %v3399_v55  ;;  %v9393_v55 = vld [vmem:[#allocation33_spill] sm:$0xff] }
 0x77a   :  { %3684 = vmatprep.mubr.f32.mxu0 %v9055_v11  ;;  %3761 = vmatprep.mubr.f32.mxu1 %v9055_v11 }
 0x77b   :  { %5984 = vmatpush1.bf16.msra.mxu0 %v7609_v24  ;;  %6048 = vmatpush1.bf16.msra.mxu1 %v9379_v8 }
 0x77c   :  { %5986 = vmatprep.subr.bf16.mxu0 %v9380_v58  ;;  %6050 = vmatprep.subr.bf16.mxu1 %v9381_v33 }
 0x77d   :  { %3685 = vmatmul.mubr.f32.gmra.mrb[50].mxu0 %v3400_v54  ;;  %3762 = vmatmul.mubr.f32.gmra.mrb[32].mxu1 %v3400_v54  ;;  %v9398_v54 = vld [vmem:[#allocation38_spill] sm:$0xff] }
 0x77f   :  { %5988 = vmatpush1.bf16.msra.mxu0 %v9382_v61  ;;  %6052 = vmatpush1.bf16.msra.mxu1 %v9383_v48 }
 0x780   :  { %5990 = vmatprep.subr.bf16.mxu0 %v9384_v22  ;;  %6054 = vmatprep.subr.bf16.mxu1 %v9385_v12 }
 0x783   :  { %5992 = vmatpush1.bf16.msra.mxu0 %v9386_v42  ;;  %6056 = vmatpush1.bf16.msra.mxu1 %v9387_v45  ;;  %v9442_v42 = vld [vmem:[#allocation89_spill] sm:$0xff] }
 0x784   :  { %5994 = vmatprep.subr.bf16.mxu0 %v9388_v32  ;;  %6058 = vmatprep.subr.bf16.mxu1 %v9389_v30  ;;  %v9399_v32 = vld [vmem:[#allocation39_spill] sm:$0xff]  ;;  %v9400_v30 = vld [vmem:[#allocation40_spill] sm:$0xff] }
 0x787   :  { %5996 = vmatpush1.bf16.msra.mxu0 %v9390_v5  ;;  %6060 = vmatpush1.bf16.msra.mxu1 %v9391_v39  ;;  %v9401_v5 = vld [vmem:[#allocation41_spill] sm:$0xff]  ;;  %v9402_v39 = vld [vmem:[#allocation42_spill] sm:$0xff] }
 0x788   :  { %5998 = vmatprep.subr.bf16.mxu0 %v9392_v47  ;;  %6062 = vmatprep.subr.bf16.mxu1 %v9393_v55  ;;  %v9403_v47 = vld [vmem:[#allocation43_spill] sm:$0xff]  ;;  %v9404_v55 = vld [vmem:[#allocation44_spill] sm:$0xff] }
 0x78b   :  { %6000 = vmatpush1.bf16.msra.mxu0 %v9394_v3  ;;  %6064 = vmatpush1.bf16.msra.mxu1 %v9395_v28  ;;  %v9405_v3 = vld [vmem:[#allocation45_spill] sm:$0xff]  ;;  %v9406_v28 = vld [vmem:[#allocation46_spill] sm:$0xff] }
 0x78c   :  { %6002 = vmatprep.subr.bf16.mxu0 %v9396_v0  ;;  %6066 = vmatprep.subr.bf16.mxu1 %v9397_v35  ;;  %v9407_v0 = vld [vmem:[#allocation47_spill] sm:$0xff]  ;;  %v9408_v35 = vld [vmem:[#allocation48_spill] sm:$0xff] }
 0x78f   :  { %6004 = vmatpush1.bf16.msra.mxu0 %v9398_v54  ;;  %6068 = vmatpush1.bf16.msra.mxu1 %v9399_v32  ;;  %v9409_v54 = vld [vmem:[#allocation49_spill] sm:$0xff]  ;;  %v9410_v32 = vld [vmem:[#allocation50_spill] sm:$0xff] }
 0x790   :  { %6006 = vmatprep.subr.bf16.mxu0 %v9400_v30  ;;  %6070 = vmatprep.subr.bf16.mxu1 %v9401_v5  ;;  %v9411_v30 = vld [vmem:[#allocation51_spill] sm:$0xff]  ;;  %v9412_v5 = vld [vmem:[#allocation52_spill] sm:$0xff] }
 0x793   :  { %6008 = vmatpush1.bf16.msra.mxu0 %v9402_v39  ;;  %6072 = vmatpush1.bf16.msra.mxu1 %v9403_v47  ;;  %v9413_v39 = vld [vmem:[#allocation53_spill] sm:$0xff]  ;;  %v9414_v47 = vld [vmem:[#allocation54_spill] sm:$0xff] }
 0x794   :  { %6010 = vmatprep.subr.bf16.mxu0 %v9404_v55  ;;  %6074 = vmatprep.subr.bf16.mxu1 %v9405_v3  ;;  %v9415_v55 = vld [vmem:[#allocation55_spill] sm:$0xff]  ;;  %v9416_v3 = vld [vmem:[#allocation56_spill] sm:$0xff] }
 0x797   :  { %6012 = vmatpush1.bf16.msra.mxu0 %v9406_v28  ;;  %6076 = vmatpush1.bf16.msra.mxu1 %v9407_v0  ;;  %v9417_v28 = vld [vmem:[#allocation57_spill] sm:$0xff]  ;;  %v9418_v0 = vld [vmem:[#allocation58_spill] sm:$0xff] }
 0x798   :  { %6014 = vmatprep.subr.bf16.mxu0 %v9408_v35  ;;  %6078 = vmatprep.subr.bf16.mxu1 %v9409_v54  ;;  %v9419_v35 = vld [vmem:[#allocation59_spill] sm:$0xff]  ;;  %v9420_v54 = vld [vmem:[#allocation60_spill] sm:$0xff] }
 0x79b   :  { %6016 = vmatpush1.bf16.msra.mxu0 %v9410_v32  ;;  %6080 = vmatpush1.bf16.msra.mxu1 %v9411_v30  ;;  %v9421_v32 = vld [vmem:[#allocation61_spill] sm:$0xff]  ;;  %v9422_v30 = vld [vmem:[#allocation62_spill] sm:$0xff] }
 0x79c   :  { %6018 = vmatprep.subr.bf16.mxu0 %v9412_v5  ;;  %6082 = vmatprep.subr.bf16.mxu1 %v9413_v39  ;;  %v9423_v5 = vld [vmem:[#allocation63_spill] sm:$0xff]  ;;  %v9424_v39 = vld [vmem:[#allocation64_spill] sm:$0xff] }
 0x79f   :  { %6020 = vmatpush1.bf16.msra.mxu0 %v9414_v47  ;;  %6084 = vmatpush1.bf16.msra.mxu1 %v9415_v55  ;;  %v9425_v47 = vld [vmem:[#allocation65_spill] sm:$0xff]  ;;  %v9426_v55 = vld [vmem:[#allocation66_spill] sm:$0xff] }
 0x7a0   :  { %6022 = vmatprep.subr.bf16.mxu0 %v9416_v3  ;;  %6086 = vmatprep.subr.bf16.mxu1 %v9417_v28  ;;  %v9427_v3 = vld [vmem:[#allocation67_spill] sm:$0xff]  ;;  %v9428_v28 = vld [vmem:[#allocation68_spill] sm:$0xff] }
 0x7a3   :  { %6024 = vmatpush1.bf16.msra.mxu0 %v9418_v0  ;;  %6088 = vmatpush1.bf16.msra.mxu1 %v9419_v35  ;;  %v9429_v0 = vld [vmem:[#allocation69_spill] sm:$0xff]  ;;  %v9430_v35 = vld [vmem:[#allocation70_spill] sm:$0xff] }
 0x7a4   :  { %6026 = vmatprep.subr.bf16.mxu0 %v9420_v54  ;;  %6090 = vmatprep.subr.bf16.mxu1 %v9421_v32  ;;  %v9431_v54 = vld [vmem:[#allocation71_spill] sm:$0xff]  ;;  %v9432_v32 = vld [vmem:[#allocation72_spill] sm:$0xff] }
 0x7a7   :  { %6028 = vmatpush1.bf16.msra.mxu0 %v9422_v30  ;;  %6092 = vmatpush1.bf16.msra.mxu1 %v9423_v5  ;;  %v9433_v30 = vld [vmem:[#allocation73_spill] sm:$0xff]  ;;  %v9434_v5 = vld [vmem:[#allocation74_spill] sm:$0xff] }
 0x7a8   :  { %6030 = vmatprep.subr.bf16.mxu0 %v9424_v39  ;;  %6094 = vmatprep.subr.bf16.mxu1 %v9425_v47  ;;  %v9435_v39 = vld [vmem:[#allocation75_spill] sm:$0xff]  ;;  %v9436_v47 = vld [vmem:[#allocation76_spill] sm:$0xff] }
 0x7ab   :  { %6032 = vmatpush1.bf16.msra.mxu0 %v9426_v55  ;;  %6096 = vmatpush1.bf16.msra.mxu1 %v9427_v3  ;;  %v9437_v55 = vld [vmem:[#allocation77_spill] sm:$0xff]  ;;  %v9438_v3 = vld [vmem:[#allocation78_spill] sm:$0xff] }
 0x7ac   :  { %6034 = vmatprep.subr.bf16.mxu0 %v9428_v28  ;;  %6098 = vmatprep.subr.bf16.mxu1 %v9429_v0  ;;  %v9439_v28 = vld [vmem:[#allocation79_spill] sm:$0xff]  ;;  %v9440_v0 = vld [vmem:[#allocation17_spill] sm:$0xff] }
 0x7af   :  { %6036 = vmatpush1.bf16.msra.mxu0 %v9430_v35  ;;  %6100 = vmatpush1.bf16.msra.mxu1 %v9431_v54  ;;  %v9441_v35 = vld [vmem:[#allocation18_spill] sm:$0xff] }
 0x7b0   :  { %6038 = vmatprep.subr.bf16.mxu0 %v9432_v32  ;;  %6102 = vmatprep.subr.bf16.mxu1 %v9433_v30 }
 0x7b3   :  { %6040 = vmatpush1.bf16.msra.mxu0 %v9434_v5  ;;  %6104 = vmatpush1.bf16.msra.mxu1 %v9435_v39 }
 0x7b4   :  { %6042 = vmatprep.subr.bf16.mxu0 %v9436_v47  ;;  %6106 = vmatprep.subr.bf16.mxu1 %v9437_v55 }
 0x7b7   :  { %6044 = vmatpush1.bf16.msra.mxu0 %v9438_v3  ;;  %6108 = vmatpush1.bf16.msra.mxu1 %v9439_v28 }
 0x7b8   :  { %6110 = vmatprep.subr.bf16.mxu0 %v9440_v0  ;;  %6142 = vmatprep.subr.bf16.mxu1 %v9441_v35 }
 0x82c   :  { %v3467_v54 = vpop.f32.mrb[46].mxu0  ;;  %v3544_v32 = vpop.f32.mrb[58].mxu1 }
 0x82d   :  { %v3468_v30 = vadd.f32 %v3467_v54, %v9246_v63  ;;  %v3469_v45 = vpop.f32.mrb[47].mxu0  ;;  %v3546_v5 = vpop.f32.mrb[59].mxu1 }
 0x82e   :  { %v3470_v39 = vadd.f32 %v3469_v45, %v9442_v42  ;;  %v3547_v61 = vadd.f32 %v3546_v5, %v7965_v62  ;;  %v9443_v45 = vld [vmem:[#allocation90_spill] sm:$0xff] }
 0x82f   :  { %v4673_v12 = vmul.f32 -1.442695, %v3468_v30  ;;  %v3545_v30 = vadd.f32 %v3544_v32, %v9443_v45 }
 0x830   :  { %v4675_v47 = vmul.f32 -1.442695, %v3470_v39  ;;  %v3473_v22 = vpop.f32.mrb[48].mxu0  ;;  %v3550_v55 = vpop.f32.mrb[60].mxu1  ;;  %v4677_v33 = vmul.f32 -1.442695, %v3547_v61 }
 0x831   :  { %6852 = vpow2.f32 %v4673_v12  ;;  %v3474_v3 = vadd.f32 %v3473_v22, %v9246_v63  ;;  %v3475_v28 = vpop.f32.mrb[49].mxu0  ;;  %v3552_v48 = vpop.f32.mrb[61].mxu1  ;;  %v3551_v12 = vadd.f32 %v3550_v55, %v9443_v45 }
 0x832   :  { %6854 = vpow2.f32 %v4675_v47  ;;  %v3476_v0 = vadd.f32 %v3475_v28, %v9442_v42 }
 0x833   :  { %v4674_v35 = vmul.f32 -1.442695, %v3474_v3 }
 0x834   :  { %v4676_v54 = vmul.f32 -1.442695, %v3476_v0 }
 0x835   :  { %6856 = vpow2.f32 %v4674_v35 }
 0x836   :  { %6858 = vpow2.f32 %v4676_v54 }
 0x837   :  { %6860 = vpow2.f32 %v4677_v33 }
 0x838   :  { %6862 = vtanh.f32 %v3545_v30 }
 0x83b   :  { %v6853_v39 = vpop.eup %6852 }
 0x83c   :  { %v6855_v58 = vpop.eup %6854  ;;  %v3561_v8 = vadd.f32 1.0, %v6853_v39 }
 0x83d   :  { %v3573_v22 = vadd.f32 1.0, %v6855_v58 }
 0x83e   :  { %6864 = vrcp.f32 %v3561_v8 }
 0x83f   :  { %v6857_v47 = vpop.eup %6856  ;;  %6866 = vrcp.f32 %v3573_v22 }
 0x840   :  { %v6859_v3 = vpop.eup %6858  ;;  %v3562_v28 = vadd.f32 1.0, %v6857_v47  ;;  %6868 = vtanh.f32 %v3551_v12 }
 0x841   :  { %v3574_v5 = vadd.f32 1.0, %v6859_v3  ;;  %v6861_v61 = vpop.eup %6860 }
 0x842   :  { %6870 = vrcp.f32 %v3562_v28  ;;  %v6863_v0 = vpop.eup %6862  ;;  %v3587_v39 = vadd.f32 1.0, %v6861_v61 }
 0x843   :  { %6872 = vrcp.f32 %v3574_v5 }
 0x844   :  { %6874 = vrcp.f32 %v3587_v39 }
 0x848   :  { %v6865_v32 = vpop.eup %6864 }
 0x849   :  { %v6867_v35 = vpop.eup %6866  ;;  %v3595_v54 = vmul.f32 %v6865_v32, %v6863_v0 }
 0x84a   :  { %v3593_v33 = vmul.f32 %v6867_v35, %v8503_v17  ;;  %v6869_v58 = vpop.eup %6868  ;;  %v9445_v17 = vld [vmem:[#allocation80_spill] sm:$0xff]  ;;  %v9446_v35 = vld [vmem:[#allocation81_spill] sm:$0xff] }
 0x84b   :  { %v610_v61 = vadd.f32 %v9445_v17, %v9183_v52 }
 0x84c   :  { %v6871_v30 = vpop.eup %6870  ;;  %v3680_v55 = vpop.f32.mrb[24].mxu0  ;;  %v8635_v45 = vadd.f32 %v3595_v54, %v3593_v33  ;;  %v612_v54 = vadd.f32 %v9446_v35, %v9117_v43 }
 0x84d   :  { %v3757_v8 = vpop.f32.mrb[30].mxu1  ;;  %v6873_v22 = vpop.eup %6872  ;;  %v3596_v12 = vmul.f32 %v6871_v30, %v6869_v58  ;;  %v6359_v47 = vadd.f32 %v3680_v55, %v9183_v52 }
 0x84e   :  { %9444 = vst [vmem:[#allocation91_spill] sm:$0xff] %v8635_v45  ;;  %v3682_v3 = vpop.f32.mrb[25].mxu0  ;;  %v3759_v28 = vpop.f32.mrb[31].mxu1  ;;  %v3594_v5 = vmul.f32 %v6873_v22, %v8509_v19  ;;  %6876 = vtanh.f32 %v8635_v45 }
 0x84f   :  { %v6360_v0 = vadd.f32 %v3682_v3, %v9117_v43  ;;  %v4679_v32 = vmul.f32 -1.442695, %v6359_v47  ;;  %v3553_v3 = vadd.f32 %v3552_v48, %v7965_v62  ;;  %v6398_v17 = vadd.f32 %v3759_v28, %v7836_v38  ;;  %v6875_v35 = vpop.eup %6874 }
 0x850   :  { %v3686_v39 = vpop.f32.mrb[50].mxu0  ;;  %v3763_v58 = vpop.f32.mrb[32].mxu1  ;;  %v8645_v30 = vadd.f32 %v3596_v12, %v3594_v5  ;;  %v6397_v5 = vadd.f32 %v3757_v8, %v7832_v15 }
 0x851   :  { %v4681_v33 = vmul.f32 -1.442695, %v6360_v0  ;;  %6878 = vpow2.f32 %v4679_v32  ;;  %v3772_v55 = vadd.f32 %v3686_v39, %v610_v61  ;;  %v3688_v42 = vpop.f32.mrb[51].mxu0  ;;  %v3765_v19 = vpop.f32.mrb[33].mxu1  ;;  %v4678_v0 = vmul.f32 -1.442695, %v3553_v3 }
 0x852   :  { %v3773_v22 = vadd.f32 %v3688_v42, %v612_v54  ;;  %v4683_v52 = vmul.f32 -1.442695, %v6398_v17  ;;  %v6400_v12 = vadd.f32 %v3765_v19, %v7836_v38  ;;  %v6399_v54 = vadd.f32 %v3763_v58, %v7832_v15 }
 0x853   :  { %6880 = vpow2.f32 %v4681_v33  ;;  %v4680_v45 = vmul.f32 -1.442695, %v3772_v55 }
 0x854   :  { %v4682_v47 = vmul.f32 -1.442695, %v3773_v22  ;;  %v4684_v28 = vmul.f32 -1.442695, %v6400_v12 }
 0x855   :  { %6882 = vpow2.f32 %v4680_v45 }
 0x856   :  { %6884 = vpow2.f32 %v4682_v47 }
 0x857   :  { %6886 = vpow2.f32 %v4678_v0 }
 0x858   :  { %v6877_v43 = vpop.eup %6876  ;;  %6888 = vpow2.f32 %v4683_v52 }
 0x859   :  { %v3601_v61 = vmul.f32 %v6877_v43, %v6875_v35  ;;  %6890 = vtanh.f32 %v6397_v5 }
 0x85b   :  { %v6879_v32 = vpop.eup %6878  ;;  %3888 = vmatprep.mubr.f32.mxu0 %v3601_v61  ;;  %3965 = vmatprep.mubr.f32.mxu1 %v3601_v61 }
 0x85c   :  { %v3782_v42 = vadd.f32 1.0, %v6879_v32 }
 0x85d   :  { %v6881_v48 = vpop.eup %6880 }
 0x85e   :  { %v3794_v45 = vadd.f32 1.0, %v6881_v48  ;;  %6892 = vrcp.f32 %v3782_v42 }
 0x85f   :  { %v6883_v33 = vpop.eup %6882 }
 0x860   :  { %6894 = vrcp.f32 %v3794_v45  ;;  %v6885_v39 = vpop.eup %6884  ;;  %v3783_v55 = vadd.f32 1.0, %v6883_v33 }
 0x861   :  { %6896 = vpow2.f32 %v4684_v28  ;;  %v3795_v43 = vadd.f32 1.0, %v6885_v39  ;;  %v6887_v8 = vpop.eup %6886 }
 0x862   :  { %6898 = vtanh.f32 %v6399_v54  ;;  %v6889_v19 = vpop.eup %6888  ;;  %v3588_v5 = vadd.f32 1.0, %v6887_v8 }
 0x863   :  { %6900 = vrcp.f32 %v3783_v55  ;;  %v6891_v22 = vpop.eup %6890  ;;  %v3808_v47 = vadd.f32 1.0, %v6889_v19 }
 0x864   :  { %6902 = vrcp.f32 %v3795_v43 }
 0x865   :  { %6904 = vtanh.f32 %v8645_v30 }
 0x866   :  { %6906 = vrcp.f32 %v3808_v47  ;;  %v9485_v47 = vld [vmem:[#allocation57_spill] sm:$0xff] }
 0x868   :  { %v6893_v3 = vpop.eup %6892 }
 0x869   :  { %v3816_v17 = vmul.f32 %v6893_v3, %v6891_v22  ;;  %v9481_v22 = vld [vmem:[#allocation53_spill] sm:$0xff]  ;;  %v9482_v3 = vld [vmem:[#allocation54_spill] sm:$0xff] }
 0x86a   :  { %v6895_v52 = vpop.eup %6894 }
 0x86b   :  { %v6897_v35 = vpop.eup %6896  ;;  %v3814_v58 = vmul.f32 %v6895_v52, %v8519_v9  ;;  %v9483_v52 = vld [vmem:[#allocation55_spill] sm:$0xff] }
 0x86c   :  { %v6899_v0 = vpop.eup %6898  ;;  %v3809_v42 = vadd.f32 1.0, %v6897_v35  ;;  %v9486_v35 = vld [vmem:[#allocation58_spill] sm:$0xff] }
 0x86d   :  { %v6901_v12 = vpop.eup %6900  ;;  %v8653_v61 = vadd.f32 %v3816_v17, %v3814_v58  ;;  %v9484_v17 = vld [vmem:[#allocation56_spill] sm:$0xff]  ;;  %v9487_v58 = vld [vmem:[#allocation59_spill] sm:$0xff] }
 0x86e   :  { %v6903_v32 = vpop.eup %6902  ;;  %v3817_v48 = vmul.f32 %v6901_v12, %v6899_v0  ;;  %v9488_v0 = vld [vmem:[#allocation60_spill] sm:$0xff]  ;;  %v9489_v12 = vld [vmem:[#allocation61_spill] sm:$0xff] }
 0x86f   :  { %6908 = vtanh.f32 %v8653_v61  ;;  %v3815_v28 = vmul.f32 %v6903_v32, %v8524_v53  ;;  %v6905_v9 = vpop.eup %6904  ;;  %v9491_v32 = vld [vmem:[#allocation63_spill] sm:$0xff] }
 0x870   :  { %6910 = vrcp.f32 %v3588_v5  ;;  %v6907_v54 = vpop.eup %6906  ;;  %v9490_v5 = vld [vmem:[#allocation62_spill] sm:$0xff] }
 0x871   :  { %v8658_v45 = vadd.f32 %v3817_v48, %v3815_v28  ;;  %6912 = vrcp.f32 %v3809_v42  ;;  %v9492_v48 = vld [vmem:[#allocation64_spill] sm:$0xff]  ;;  %v9493_v42 = vld [vmem:[#allocation65_spill] sm:$0xff]  ;;  %v9494_v28 = vld [vmem:[#allocation66_spill] sm:$0xff] }
 0x873   :  { %6914 = vtanh.f32 %v8658_v45 }
 0x879   :  { %v6909_v33 = vpop.eup %6908 }
 0x87a   :  { %v3822_v39 = vmul.f32 %v6909_v33, %v6907_v54  ;;  %v6911_v55 = vpop.eup %6910  ;;  %v9496_v54 = vld [vmem:[#allocation68_spill] sm:$0xff]  ;;  %v9497_v33 = vld [vmem:[#allocation69_spill] sm:$0xff] }
 0x87b   :  { %v6913_v43 = vpop.eup %6912  ;;  %v3602_v8 = vmul.f32 %v6911_v55, %v6905_v9  ;;  %v9495_v9 = vld [vmem:[#allocation67_spill] sm:$0xff] }
 0x87c   :  { %3889 = vmatmul.mubr.f32.vlgmr.msra.gmra.mrb[52].mxu0 %v3822_v39  ;;  %3966 = vmatmul.mubr.f32.vlgmr.msra.gmra.mrb[62].mxu1 %v3822_v39  ;;  %v9499_v55 = vld [vmem:[#allocation71_spill] sm:$0xff] }
 0x87d   :  { %v6915_v19 = vpop.eup %6914  ;;  %6112 = vmatpush1.bf16.msra.mxu0 %v7359_v16  ;;  %6144 = vmatpush1.bf16.msra.mxu1 %v7432_v7  ;;  %v9447_v16 = vld [vmem:[#allocation19_spill] sm:$0xff]  ;;  %v9454_v7 = vld [vmem:[#allocation26_spill] sm:$0xff] }
 0x87e   :  { %3894 = vmatprep.mubr.f32.mxu0 %v3602_v8  ;;  %3971 = vmatprep.mubr.f32.mxu1 %v3602_v8  ;;  %v3823_v53 = vmul.f32 %v6915_v19, %v6913_v43  ;;  %v9500_v43 = vld [vmem:[#allocation72_spill] sm:$0xff]  ;;  %v9501_v8 = vld [vmem:[#allocation73_spill] sm:$0xff]  ;;  %v9502_v19 = vld [vmem:[#allocation74_spill] sm:$0xff] }
 0x87f   :  { %6114 = vmatprep.subr.bf16.mxu0 %v7373_v29  ;;  %6146 = vmatprep.subr.bf16.mxu1 %v7440_v57  ;;  %v9448_v29 = vld [vmem:[#allocation20_spill] sm:$0xff]  ;;  %v9455_v57 = vld [vmem:[#allocation27_spill] sm:$0xff] }
 0x880   :  { %3895 = vmatmul.mubr.f32.gmra.mrb[54].mxu0 %v3823_v53  ;;  %3972 = vmatmul.mubr.f32.gmra.mrb[64].mxu1 %v3823_v53 }
 0x881   :  { %6116 = vmatpush1.bf16.msra.mxu0 %v7387_v40  ;;  %6148 = vmatpush1.bf16.msra.mxu1 %v7454_v31  ;;  %v9449_v40 = vld [vmem:[#allocation21_spill] sm:$0xff]  ;;  %v9458_v31 = vld [vmem:[#allocation30_spill] sm:$0xff] }
 0x882   :  { %6118 = vmatprep.subr.bf16.mxu0 %v7400_v23  ;;  %6150 = vmatprep.subr.bf16.mxu1 %v7461_v41  ;;  %v9450_v23 = vld [vmem:[#allocation22_spill] sm:$0xff]  ;;  %v9459_v41 = vld [vmem:[#allocation31_spill] sm:$0xff] }
 0x883   :  { %4101 = vmatprep.mubr.f32.mxu0 %v9055_v11  ;;  %4178 = vmatprep.mubr.f32.mxu1 %v9055_v11 }
 0x885   :  { %6120 = vmatpush1.bf16.msra.mxu0 %v7407_v36  ;;  %6152 = vmatpush1.bf16.msra.mxu1 %v7474_v60  ;;  %v9451_v36 = vld [vmem:[#allocation23_spill] sm:$0xff]  ;;  %v9462_v60 = vld [vmem:[#allocation34_spill] sm:$0xff] }
 0x886   :  { %6122 = vmatprep.subr.bf16.mxu0 %v7414_v26  ;;  %6154 = vmatprep.subr.bf16.mxu1 %v7486_v6  ;;  %v9452_v26 = vld [vmem:[#allocation24_spill] sm:$0xff]  ;;  %v9463_v6 = vld [vmem:[#allocation35_spill] sm:$0xff] }
 0x889   :  { %6124 = vmatpush1.bf16.msra.mxu0 %v7429_v1  ;;  %6156 = vmatpush1.bf16.msra.mxu1 %v7504_v13  ;;  %v9453_v1 = vld [vmem:[#allocation25_spill] sm:$0xff]  ;;  %v9466_v13 = vld [vmem:[#allocation38_spill] sm:$0xff] }
 0x88a   :  { %6126 = vmatprep.subr.bf16.mxu0 %v7445_v14  ;;  %6158 = vmatprep.subr.bf16.mxu1 %v7512_v21  ;;  %v9456_v14 = vld [vmem:[#allocation28_spill] sm:$0xff]  ;;  %v9467_v21 = vld [vmem:[#allocation39_spill] sm:$0xff] }
 0x88d   :  { %6128 = vmatpush1.bf16.msra.mxu0 %v7450_v18  ;;  %6160 = vmatpush1.bf16.msra.mxu1 %v7526_v44  ;;  %v9457_v18 = vld [vmem:[#allocation29_spill] sm:$0xff]  ;;  %v9470_v44 = vld [vmem:[#allocation42_spill] sm:$0xff] }
 0x88e   :  { %6130 = vmatprep.subr.bf16.mxu0 %v7465_v37  ;;  %6162 = vmatprep.subr.bf16.mxu1 %v7532_v51  ;;  %v9460_v37 = vld [vmem:[#allocation32_spill] sm:$0xff]  ;;  %v9471_v51 = vld [vmem:[#allocation43_spill] sm:$0xff] }
 0x891   :  { %6132 = vmatpush1.bf16.msra.mxu0 %v7470_v50  ;;  %6164 = vmatpush1.bf16.msra.mxu1 %v7541_v27  ;;  %v9461_v50 = vld [vmem:[#allocation33_spill] sm:$0xff]  ;;  %v9472_v27 = vld [vmem:[#allocation44_spill] sm:$0xff] }
 0x892   :  { %6134 = vmatprep.subr.bf16.mxu0 %v7490_v10  ;;  %6166 = vmatprep.subr.bf16.mxu1 %v7545_v4  ;;  %v9464_v10 = vld [vmem:[#allocation36_spill] sm:$0xff]  ;;  %v9473_v4 = vld [vmem:[#allocation45_spill] sm:$0xff] }
 0x895   :  { %6136 = vmatpush1.bf16.msra.mxu0 %v7497_v2  ;;  %6168 = vmatpush1.bf16.msra.mxu1 %v7552_v59  ;;  %v9465_v2 = vld [vmem:[#allocation37_spill] sm:$0xff]  ;;  %v9474_v59 = vld [vmem:[#allocation46_spill] sm:$0xff] }
 0x896   :  { %6138 = vmatprep.subr.bf16.mxu0 %v7516_v34  ;;  %6170 = vmatprep.subr.bf16.mxu1 %v7556_v56  ;;  %v9468_v34 = vld [vmem:[#allocation40_spill] sm:$0xff]  ;;  %v9475_v56 = vld [vmem:[#allocation47_spill] sm:$0xff] }
 0x899   :  { %6140 = vmatpush1.bf16.msra.mxu0 %v7521_v46  ;;  %6172 = vmatpush1.bf16.msra.mxu1 %v7563_v49  ;;  %v9469_v46 = vld [vmem:[#allocation41_spill] sm:$0xff]  ;;  %v9476_v49 = vld [vmem:[#allocation48_spill] sm:$0xff] }
 0x89a   :  { %6174 = vmatprep.subr.bf16.mxu0 %v7605_v25  ;;  %6238 = vmatprep.subr.bf16.mxu1 %v7607_v20  ;;  %v9477_v25 = vld [vmem:[#allocation49_spill] sm:$0xff]  ;;  %v9478_v20 = vld [vmem:[#allocation50_spill] sm:$0xff] }
 0x89c   :  { %4102 = vmatmul.mubr.f32.vlgmr.msra.gmra.mrb[56].mxu0 %v3822_v39  ;;  %4179 = vmatmul.mubr.f32.vlgmr.msra.gmra.mrb[34].mxu1 %v3822_v39  ;;  %v9498_v39 = vld [vmem:[#allocation70_spill] sm:$0xff] }
 0x89d   :  { %4107 = vmatprep.mubr.f32.mxu0 %v9055_v11  ;;  %4184 = vmatprep.mubr.f32.mxu1 %v9055_v11  ;;  %v9480_v11 = vld [vmem:[#allocation52_spill] sm:$0xff] }
 0x89e   :  { %6176 = vmatpush1.bf16.msra.mxu0 %v7609_v24  ;;  %6240 = vmatpush1.bf16.msra.mxu1 %v9447_v16  ;;  %v9479_v24 = vld [vmem:[#allocation51_spill] sm:$0xff]  ;;  %v9504_v16 = vld [vmem:[#allocation76_spill] sm:$0xff] }
 0x89f   :  { %6178 = vmatprep.subr.bf16.mxu0 %v9448_v29  ;;  %6242 = vmatprep.subr.bf16.mxu1 %v9449_v40  ;;  %v9505_v29 = vld [vmem:[#allocation77_spill] sm:$0xff]  ;;  %v9506_v40 = vld [vmem:[#allocation78_spill] sm:$0xff] }
 0x8a0   :  { %4108 = vmatmul.mubr.f32.gmra.mrb[58].mxu0 %v3823_v53  ;;  %4185 = vmatmul.mubr.f32.gmra.mrb[36].mxu1 %v3823_v53  ;;  %v9503_v53 = vld [vmem:[#allocation75_spill] sm:$0xff] }
 0x8a2   :  { %6180 = vmatpush1.bf16.msra.mxu0 %v9450_v23  ;;  %6244 = vmatpush1.bf16.msra.mxu1 %v9451_v36  ;;  %v9507_v23 = vld [vmem:[#allocation79_spill] sm:$0xff] }
 0x8a3   :  { %6182 = vmatprep.subr.bf16.mxu0 %v9452_v26  ;;  %6246 = vmatprep.subr.bf16.mxu1 %v9453_v1 }
 0x8a6   :  { %6184 = vmatpush1.bf16.msra.mxu0 %v9454_v7  ;;  %6248 = vmatpush1.bf16.msra.mxu1 %v9455_v57 }
 0x8a7   :  { %6186 = vmatprep.subr.bf16.mxu0 %v9456_v14  ;;  %6250 = vmatprep.subr.bf16.mxu1 %v9457_v18  ;;  %v9508_v14 = vld [vmem:[#allocation89_spill] sm:$0xff] }
 0x8aa   :  { %6188 = vmatpush1.bf16.msra.mxu0 %v9458_v31  ;;  %6252 = vmatpush1.bf16.msra.mxu1 %v9459_v41 }
 0x8ab   :  { %6190 = vmatprep.subr.bf16.mxu0 %v9460_v37  ;;  %6254 = vmatprep.subr.bf16.mxu1 %v9461_v50 }
 0x8ae   :  { %6192 = vmatpush1.bf16.msra.mxu0 %v9462_v60  ;;  %6256 = vmatpush1.bf16.msra.mxu1 %v9463_v6 }
 0x8af   :  { %6194 = vmatprep.subr.bf16.mxu0 %v9464_v10  ;;  %6258 = vmatprep.subr.bf16.mxu1 %v9465_v2 }
 0x8b2   :  { %6196 = vmatpush1.bf16.msra.mxu0 %v9466_v13  ;;  %6260 = vmatpush1.bf16.msra.mxu1 %v9467_v21 }
 0x8b3   :  { %6198 = vmatprep.subr.bf16.mxu0 %v9468_v34  ;;  %6262 = vmatprep.subr.bf16.mxu1 %v9469_v46 }
 0x8b6   :  { %6200 = vmatpush1.bf16.msra.mxu0 %v9470_v44  ;;  %6264 = vmatpush1.bf16.msra.mxu1 %v9471_v51  ;;  %v9509_v44 = vld [vmem:[#allocation90_spill] sm:$0xff] }
 0x8b7   :  { %6202 = vmatprep.subr.bf16.mxu0 %v9472_v27  ;;  %6266 = vmatprep.subr.bf16.mxu1 %v9473_v4 }
 0x8ba   :  { %6204 = vmatpush1.bf16.msra.mxu0 %v9474_v59  ;;  %6268 = vmatpush1.bf16.msra.mxu1 %v9475_v56 }
 0x8bb   :  { %6206 = vmatprep.subr.bf16.mxu0 %v9476_v49  ;;  %6270 = vmatprep.subr.bf16.mxu1 %v9477_v25 }
 0x8be   :  { %6208 = vmatpush1.bf16.msra.mxu0 %v9478_v20  ;;  %6272 = vmatpush1.bf16.msra.mxu1 %v9479_v24 }
 0x8bf   :  { %6210 = vmatprep.subr.bf16.mxu0 %v9480_v11  ;;  %6274 = vmatprep.subr.bf16.mxu1 %v9481_v22 }
 0x8c2   :  { %6212 = vmatpush1.bf16.msra.mxu0 %v9482_v3  ;;  %6276 = vmatpush1.bf16.msra.mxu1 %v9483_v52 }
 0x8c3   :  { %6214 = vmatprep.subr.bf16.mxu0 %v9484_v17  ;;  %6278 = vmatprep.subr.bf16.mxu1 %v9485_v47 }
 0x8c6   :  { %6216 = vmatpush1.bf16.msra.mxu0 %v9486_v35  ;;  %6280 = vmatpush1.bf16.msra.mxu1 %v9487_v58  ;;  %v9510_v58 = vld [vmem:[#allocation91_spill] sm:$0xff] }
 0x8c7   :  { %6218 = vmatprep.subr.bf16.mxu0 %v9488_v0  ;;  %6282 = vmatprep.subr.bf16.mxu1 %v9489_v12 }
 0x8ca   :  { %6220 = vmatpush1.bf16.msra.mxu0 %v9490_v5  ;;  %6284 = vmatpush1.bf16.msra.mxu1 %v9491_v32  ;;  %v9511_v5 = vld [vmem:[#allocation87_spill] sm:$0xff]  ;;  %v9512_v32 = vld [vmem:[#allocation82_spill] sm:$0xff] }
 0x8cb   :  { %6222 = vmatprep.subr.bf16.mxu0 %v9492_v48  ;;  %6286 = vmatprep.subr.bf16.mxu1 %v9493_v42  ;;  %v616_v48 = vadd.f32 %v9512_v32, %v9511_v5 }
 0x8ce   :  { %6224 = vmatpush1.bf16.msra.mxu0 %v9494_v28  ;;  %6288 = vmatpush1.bf16.msra.mxu1 %v9495_v9  ;;  %v9513_v28 = vld [vmem:[#allocation86_spill] sm:$0xff]  ;;  %v9514_v9 = vld [vmem:[#allocation83_spill] sm:$0xff] }
 0x8cf   :  { %6226 = vmatprep.subr.bf16.mxu0 %v9496_v54  ;;  %6290 = vmatprep.subr.bf16.mxu1 %v9497_v33  ;;  %v618_v54 = vadd.f32 %v9514_v9, %v9513_v28 }
 0x8d2   :  { %6228 = vmatpush1.bf16.msra.mxu0 %v9498_v39  ;;  %6292 = vmatpush1.bf16.msra.mxu1 %v9499_v55 }
 0x8d3   :  { %6230 = vmatprep.subr.bf16.mxu0 %v9500_v43  ;;  %6294 = vmatprep.subr.bf16.mxu1 %v9501_v8 }
 0x8d6   :  { %6232 = vmatpush1.bf16.msra.mxu0 %v9502_v19  ;;  %6296 = vmatpush1.bf16.msra.mxu1 %v9503_v53 }
 0x8d7   :  { %6234 = vmatprep.subr.bf16.mxu0 %v9504_v16  ;;  %6298 = vmatprep.subr.bf16.mxu1 %v9505_v29 }
 0x8da   :  { %6236 = vmatpush1.bf16.msra.mxu0 %v9506_v40  ;;  %6300 = vmatpush1.bf16.msra.mxu1 %v9507_v23  ;;  %v9515_v23 = vld [vmem:[#allocation84_spill] sm:$0xff] }
 0x94f   :  { %v3890_v36 = vpop.f32.mrb[52].mxu0  ;;  %v3967_v26 = vpop.f32.mrb[62].mxu1 }
 0x950   :  { %v3891_v1 = vadd.f32 %v3890_v36, %v9246_v63  ;;  %v3892_v7 = vpop.f32.mrb[53].mxu0  ;;  %v3969_v57 = vpop.f32.mrb[63].mxu1  ;;  %v3968_v51 = vadd.f32 %v3967_v26, %v9509_v44  ;;  %v622_v36 = vadd.f32 %v9515_v23, %v9511_v5 }
 0x951   :  { %v3893_v18 = vadd.f32 %v3892_v7, %v9508_v14  ;;  %v3970_v21 = vadd.f32 %v3969_v57, %v7965_v62 }
 0x952   :  { %v4685_v31 = vmul.f32 -1.442695, %v3891_v1  ;;  %v9516_v1 = vld [vmem:[#allocation85_spill] sm:$0xff] }
 0x953   :  { %v4687_v41 = vmul.f32 -1.442695, %v3893_v18  ;;  %v3896_v37 = vpop.f32.mrb[54].mxu0  ;;  %v3973_v50 = vpop.f32.mrb[64].mxu1  ;;  %v4689_v46 = vmul.f32 -1.442695, %v3970_v21  ;;  %v624_v7 = vadd.f32 %v9516_v1, %v9513_v28 }
 0x954   :  { %6916 = vpow2.f32 %v4685_v31  ;;  %v3897_v60 = vadd.f32 %v3896_v37, %v9246_v63  ;;  %v3898_v6 = vpop.f32.mrb[55].mxu0  ;;  %v3975_v10 = vpop.f32.mrb[65].mxu1  ;;  %v3974_v49 = vadd.f32 %v3973_v50, %v9509_v44  ;;  %v4450_v1 = vld [vmem:[#allocation11 + $0x8] sm:$0xff] }
 0x955   :  { %6918 = vpow2.f32 %v4687_v41  ;;  %v3899_v2 = vadd.f32 %v3898_v6, %v9508_v14  ;;  %v3976_v6 = vadd.f32 %v3975_v10, %v7965_v62 }
 0x956   :  { %v4686_v13 = vmul.f32 -1.442695, %v3897_v60 }
 0x957   :  { %v4688_v34 = vmul.f32 -1.442695, %v3899_v2 }
 0x958   :  { %6920 = vpow2.f32 %v4686_v13 }
 0x959   :  { %6922 = vpow2.f32 %v4688_v34 }
 0x95a   :  { %6924 = vpow2.f32 %v4689_v46  ;;  %v4690_v46 = vmul.f32 -1.442695, %v3976_v6  ;;  %v4456_v6 = vld [vmem:[#allocation11 + $0x38] sm:$0xff] }
 0x95b   :  { %6926 = vtanh.f32 %v3968_v51 }
 0x95e   :  { %v6917_v27 = vpop.eup %6916 }
 0x95f   :  { %v6919_v4 = vpop.eup %6918  ;;  %v3984_v59 = vadd.f32 1.0, %v6917_v27 }
 0x960   :  { %v3996_v56 = vadd.f32 1.0, %v6919_v4 }
 0x961   :  { %6928 = vrcp.f32 %v3984_v59 }
 0x962   :  { %v6921_v25 = vpop.eup %6920  ;;  %6930 = vrcp.f32 %v3996_v56 }
 0x963   :  { %v6923_v20 = vpop.eup %6922  ;;  %v3985_v24 = vadd.f32 1.0, %v6921_v25  ;;  %6932 = vtanh.f32 %v3974_v49 }
 0x964   :  { %v3997_v11 = vadd.f32 1.0, %v6923_v20  ;;  %v6925_v22 = vpop.eup %6924 }
 0x965   :  { %6934 = vrcp.f32 %v3985_v24  ;;  %v6927_v3 = vpop.eup %6926  ;;  %v4010_v35 = vadd.f32 1.0, %v6925_v22 }
 0x966   :  { %6936 = vrcp.f32 %v3997_v11 }
 0x967   :  { %6938 = vrcp.f32 %v4010_v35 }
 0x96b   :  { %v6929_v52 = vpop.eup %6928 }
 0x96c   :  { %v6931_v17 = vpop.eup %6930  ;;  %v4018_v47 = vmul.f32 %v6929_v52, %v6927_v3 }
 0x96d   :  { %v4016_v0 = vmul.f32 %v6931_v17, %v9510_v58  ;;  %v6933_v12 = vpop.eup %6932 }
 0x96f   :  { %v6935_v42 = vpop.eup %6934  ;;  %v4103_v33 = vpop.f32.mrb[56].mxu0  ;;  %v8771_v55 = vadd.f32 %v4018_v47, %v4016_v0 }
 0x970   :  { %v4180_v39 = vpop.f32.mrb[34].mxu1  ;;  %v6937_v43 = vpop.eup %6936  ;;  %v4019_v8 = vmul.f32 %v6935_v42, %v6933_v12  ;;  %v4191_v19 = vadd.f32 %v4103_v33, %v616_v48 }
 0x971   :  { %v4105_v53 = vpop.f32.mrb[57].mxu0  ;;  %v4182_v16 = vpop.f32.mrb[35].mxu1  ;;  %v4017_v29 = vmul.f32 %v6937_v43, %v8645_v30  ;;  %6940 = vtanh.f32 %v8771_v55  ;;  %v6401_v59 = vadd.f32 %v4180_v39, %v7832_v15 }
 0x972   :  { %v4192_v40 = vadd.f32 %v4105_v53, %v618_v54  ;;  %v4691_v26 = vmul.f32 -1.442695, %v4191_v19  ;;  %v6402_v13 = vadd.f32 %v4182_v16, %v7836_v38  ;;  %v6939_v34 = vpop.eup %6938 }
 0x973   :  { %v4109_v18 = vpop.f32.mrb[58].mxu0  ;;  %v4186_v31 = vpop.f32.mrb[36].mxu1  ;;  %v8779_v41 = vadd.f32 %v4019_v8, %v4017_v29 }
 0x974   :  { %v4693_v57 = vmul.f32 -1.442695, %v4192_v40  ;;  %6942 = vpow2.f32 %v4691_v26  ;;  %v4195_v37 = vadd.f32 %v4109_v18, %v622_v36  ;;  %v4111_v50 = vpop.f32.mrb[59].mxu0  ;;  %v4188_v60 = vpop.f32.mrb[37].mxu1  ;;  %v4695_v27 = vmul.f32 -1.442695, %v6402_v13 }
 0x975   :  { %v4196_v30 = vadd.f32 %v4111_v50, %v624_v7  ;;  %v6404_v4 = vadd.f32 %v4188_v60, %v7836_v38  ;;  %v6403_v11 = vadd.f32 %v4186_v31, %v7832_v15  ;;  %v4452_v18 = vld [vmem:[#allocation11 + $0x18] sm:$0xff]  ;;  %v4454_v50 = vld [vmem:[#allocation11 + $0x28] sm:$0xff]  ;;  %v4457_v13 = vld [vmem:[#allocation11 + $0x40] sm:$0xff] }
 0x976   :  { %6944 = vpow2.f32 %v4693_v57  ;;  %v4692_v2 = vmul.f32 -1.442695, %v4195_v37  ;;  %v4451_v57 = vld [vmem:[#allocation11 + $0x10] sm:$0xff]  ;;  %v4453_v37 = vld [vmem:[#allocation11 + $0x20] sm:$0xff] }
 0x977   :  { %v4694_v21 = vmul.f32 -1.442695, %v4196_v30  ;;  %v4696_v20 = vmul.f32 -1.442695, %v6404_v4  ;;  %v6305_v31 = vpack.c.bf16 %v4452_v18, %v4451_v57  ;;  %v6309_v60 = vpack.c.bf16 %v4454_v50, %v4453_v37  ;;  %v4455_v30 = vld [vmem:[#allocation11 + $0x30] sm:$0xff]  ;;  %v4461_v4 = vld [vmem:[#allocation11 + $0x60] sm:$0xff] }
 0x978   :  { %6946 = vpow2.f32 %v4692_v2  ;;  %v6313_v2 = vpack.c.bf16 %v4456_v6, %v4455_v30 }
 0x979   :  { %6948 = vpow2.f32 %v4694_v21  ;;  %v4458_v21 = vld [vmem:[#allocation11 + $0x48] sm:$0xff] }
 0x97a   :  { %6950 = vpow2.f32 %v4690_v46  ;;  %v4459_v46 = vld [vmem:[#allocation11 + $0x50] sm:$0xff] }
 0x97b   :  { %v6941_v51 = vpop.eup %6940  ;;  %6952 = vpow2.f32 %v4695_v27 }
 0x97c   :  { %v4024_v56 = vmul.f32 %v6941_v51, %v6939_v34  ;;  %6954 = vtanh.f32 %v6401_v59  ;;  %v6317_v34 = vpack.c.bf16 %v4458_v21, %v4457_v13  ;;  %v4460_v51 = vld [vmem:[#allocation11 + $0x58] sm:$0xff]  ;;  %v4462_v59 = vld [vmem:[#allocation11 + $0x68] sm:$0xff]  ;;  %v4703_v21 = vld [vmem:[%s8824_s7] ss:$0 sm:$0xff] }
 0x97d   :  { %v6321_v27 = vpack.c.bf16 %v4460_v51, %v4459_v46 }
 0x97e   :  { %v6943_v49 = vpop.eup %6942  ;;  %4311 = vmatprep.mubr.f32.mxu0 %v4024_v56  ;;  %4388 = vmatprep.mubr.f32.mxu1 %v4024_v56  ;;  %v6325_v56 = vpack.c.bf16 %v4462_v59, %v4461_v4 }
 0x97f   :  { %v4205_v25 = vadd.f32 1.0, %v6943_v49  ;;  %v4463_v49 = vld [vmem:[#allocation11 + $0x70] sm:$0xff] }
 0x980   :  { %v6945_v10 = vpop.eup %6944 }
 0x981   :  { %v4217_v24 = vadd.f32 1.0, %v6945_v10  ;;  %6956 = vrcp.f32 %v4205_v25  ;;  %v4464_v10 = vld [vmem:[#allocation11 + $0x78] sm:$0xff] }
 0x982   :  { %v6947_v22 = vpop.eup %6946  ;;  %v6329_v25 = vpack.c.bf16 %v4464_v10, %v4463_v49 }
 0x983   :  { %6958 = vrcp.f32 %v4217_v24  ;;  %v6949_v3 = vpop.eup %6948  ;;  %v4206_v38 = vadd.f32 1.0, %v6947_v22 }
 0x984   :  { %6960 = vpow2.f32 %v4696_v20  ;;  %v4218_v52 = vadd.f32 1.0, %v6949_v3  ;;  %v6951_v17 = vpop.eup %6950 }
 0x985   :  { %6962 = vtanh.f32 %v6403_v11  ;;  %v6953_v47 = vpop.eup %6952  ;;  %v4011_v42 = vadd.f32 1.0, %v6951_v17 }
 0x986   :  { %6964 = vrcp.f32 %v4206_v38  ;;  %v6955_v35 = vpop.eup %6954  ;;  %v4231_v5 = vadd.f32 1.0, %v6953_v47 }
 0x987   :  { %6966 = vrcp.f32 %v4218_v52 }
 0x988   :  { %6968 = vtanh.f32 %v8779_v41 }
 0x989   :  { %6970 = vrcp.f32 %v4231_v5 }
 0x98b   :  { %v6957_v58 = vpop.eup %6956 }
 0x98c   :  { %v4239_v12 = vmul.f32 %v6957_v58, %v6955_v35 }
 0x98d   :  { %v6959_v0 = vpop.eup %6958 }
 0x98e   :  { %v6961_v32 = vpop.eup %6960  ;;  %v4237_v15 = vmul.f32 %v6959_v0, %v8653_v61 }
 0x98f   :  { %v6963_v48 = vpop.eup %6962  ;;  %v4232_v39 = vadd.f32 1.0, %v6961_v32 }
 0x990   :  { %v6965_v28 = vpop.eup %6964  ;;  %v4241_v9 = vadd.f32 %v4239_v12, %v4237_v15 }
 0x991   :  { %v6967_v54 = vpop.eup %6966  ;;  %v4240_v33 = vmul.f32 %v6965_v28, %v6963_v48 }
 0x992   :  { %6972 = vtanh.f32 %v4241_v9  ;;  %v4238_v43 = vmul.f32 %v6967_v54, %v8658_v45  ;;  %v6969_v19 = vpop.eup %6968  ;;  %v4449_v45 = vld [vmem:[#allocation11] sm:$0xff] }
 0x993   :  { %6974 = vrcp.f32 %v4011_v42  ;;  %v6971_v53 = vpop.eup %6970  ;;  %v6301_v7 = vpack.c.bf16 %v4450_v1, %v4449_v45 }
 0x994   :  { %v4242_v8 = vadd.f32 %v4240_v33, %v4238_v43  ;;  %6976 = vrcp.f32 %v4232_v39 }
 0x995   :  { %6302 = vmatprep.subr.bf16.mxu0 %v6301_v7 }
 0x996   :  { %6978 = vtanh.f32 %v4242_v8 }
 0x99c   :  { %v6973_v61 = vpop.eup %6972 }
 0x99d   :  { %v6975_v16 = vpop.eup %6974  ;;  %v4245_v29 = vmul.f32 %v6973_v61, %v6971_v53 }
 0x99e   :  { %v4025_v40 = vmul.f32 %v6975_v16, %v6969_v19  ;;  %v6977_v23 = vpop.eup %6976 }
 0x99f   :  { %4312 = vmatmul.mubr.f32.vlgmr.msra.gmra.mrb[60].mxu0 %v4245_v29  ;;  %4389 = vmatmul.mubr.f32.vlgmr.msra.gmra.mrb[66].mxu1 %v4245_v29 }
 0x9a0   :  { %v6979_v36 = vpop.eup %6978  ;;  %4317 = vmatprep.mubr.f32.mxu0 %v4025_v40  ;;  %4394 = vmatprep.mubr.f32.mxu1 %v4025_v40 }
 0x9a1   :  { %v4246_v26 = vmul.f32 %v6979_v36, %v6977_v23  ;;  %6304 = vmatpush3.bf16.msra.mxu0 %v6301_v7 }
 0x9a2   :  { %6306 = vmatprep.subr.bf16.mxu0 %v6305_v31 }
 0x9a3   :  { %4318 = vmatmul.mubr.f32.gmra.mrb[62].mxu0 %v4246_v26  ;;  %4395 = vmatmul.mubr.f32.gmra.mrb[68].mxu1 %v4246_v26 }
 0x9a5   :  { %6308 = vmatpush3.bf16.msra.mxu0 %v6305_v31 }
 0x9a6   :  { %6310 = vmatprep.subr.bf16.mxu0 %v6309_v60 }
 0x9a9   :  { %6312 = vmatpush3.bf16.msra.mxu0 %v6309_v60 }
 0x9aa   :  { %6314 = vmatprep.subr.bf16.mxu0 %v6313_v2 }
 0x9ad   :  { %6316 = vmatpush3.bf16.msra.mxu0 %v6313_v2 }
 0x9ae   :  { %6318 = vmatprep.subr.bf16.mxu0 %v6317_v34 }
 0x9b1   :  { %6320 = vmatpush3.bf16.msra.mxu0 %v6317_v34 }
 0x9b2   :  { %6322 = vmatprep.subr.bf16.mxu0 %v6321_v27 }
 0x9b5   :  { %6324 = vmatpush3.bf16.msra.mxu0 %v6321_v27 }
 0x9b6   :  { %6326 = vmatprep.subr.bf16.mxu0 %v6325_v56 }
 0x9b9   :  { %6328 = vmatpush3.bf16.msra.mxu0 %v6325_v56 }
 0x9ba   :  { %6330 = vmatprep.subr.bf16.mxu0 %v6329_v25 }
 0x9bd   :  { %6332 = vmatpush3.bf16.msra.mxu0 %v6329_v25 }
 0xa72   :  { %v4313_v20 = vpop.f32.mrb[60].mxu0  ;;  %v4390_v24 = vpop.f32.mrb[66].mxu1 }
 0xa73   :  { %v4314_v11 = vadd.f32 %v4313_v20, %v9246_v63  ;;  %v4315_v22 = vpop.f32.mrb[61].mxu0  ;;  %v4392_v3 = vpop.f32.mrb[67].mxu1  ;;  %v4391_v9 = vadd.f32 %v4390_v24, %v9509_v44 }
 0xa74   :  { %v4316_v38 = vadd.f32 %v4315_v22, %v9508_v14  ;;  %v4393_v15 = vadd.f32 %v4392_v3, %v7965_v62 }
 0xa75   :  { %v4697_v52 = vmul.f32 -1.442695, %v4314_v11 }
 0xa76   :  { %v4699_v17 = vmul.f32 -1.442695, %v4316_v38  ;;  %v4319_v47 = vpop.f32.mrb[62].mxu0  ;;  %v4396_v35 = vpop.f32.mrb[68].mxu1  ;;  %v4701_v42 = vmul.f32 -1.442695, %v4393_v15 }
 0xa77   :  { %6980 = vpow2.f32 %v4697_v52  ;;  %v4320_v58 = vadd.f32 %v4319_v47, %v9246_v63  ;;  %v4321_v0 = vpop.f32.mrb[63].mxu0  ;;  %v4398_v12 = vpop.f32.mrb[69].mxu1 }
 0xa78   :  { %6982 = vpow2.f32 %v4699_v17  ;;  %v4322_v5 = vadd.f32 %v4321_v0, %v9508_v14  ;;  %v4399_v28 = vadd.f32 %v4398_v12, %v7965_v62  ;;  %v4397_v14 = vadd.f32 %v4396_v35, %v9509_v44 }
 0xa79   :  { %v4698_v32 = vmul.f32 -1.442695, %v4320_v58 }
 0xa7a   :  { %v4700_v48 = vmul.f32 -1.442695, %v4322_v5  ;;  %v4702_v63 = vmul.f32 -1.442695, %v4399_v28 }
 0xa7b   :  { %6984 = vpow2.f32 %v4698_v32 }
 0xa7c   :  { %6986 = vpow2.f32 %v4700_v48 }
 0xa7d   :  { %6988 = vpow2.f32 %v4701_v42 }
 0xa7e   :  { %6990 = vtanh.f32 %v4391_v9 }
 0xa81   :  { %v6981_v54 = vpop.eup %6980 }
 0xa82   :  { %v6983_v33 = vpop.eup %6982  ;;  %v4407_v39 = vadd.f32 1.0, %v6981_v54 }
 0xa83   :  { %v4419_v43 = vadd.f32 1.0, %v6983_v33 }
 0xa84   :  { %6992 = vrcp.f32 %v4407_v39 }
 0xa85   :  { %v6985_v8 = vpop.eup %6984  ;;  %6994 = vrcp.f32 %v4419_v43 }
 0xa86   :  { %v6987_v19 = vpop.eup %6986  ;;  %v4408_v53 = vadd.f32 1.0, %v6985_v8  ;;  %6996 = vpow2.f32 %v4702_v63 }
 0xa87   :  { %6998 = vtanh.f32 %v4397_v14  ;;  %v4420_v61 = vadd.f32 1.0, %v6987_v19  ;;  %v6989_v62 = vpop.eup %6988 }
 0xa88   :  { %7000 = vrcp.f32 %v4408_v53  ;;  %v6991_v16 = vpop.eup %6990  ;;  %v4433_v36 = vadd.f32 1.0, %v6989_v62 }
 0xa89   :  { %7002 = vrcp.f32 %v4420_v61 }
 0xa8a   :  { %7004 = vrcp.f32 %v4433_v36 }
 0xa8e   :  { %v6993_v29 = vpop.eup %6992 }
 0xa8f   :  { %v6995_v40 = vpop.eup %6994  ;;  %v4441_v23 = vmul.f32 %v6993_v29, %v6991_v16 }
 0xa90   :  { %v6997_v26 = vpop.eup %6996  ;;  %v4439_v45 = vmul.f32 %v6995_v40, %v8771_v55 }
 0xa91   :  { %v6999_v44 = vpop.eup %6998  ;;  %v4434_v31 = vadd.f32 1.0, %v6997_v26 }
 0xa92   :  { %v7001_v1 = vpop.eup %7000  ;;  %v4443_v7 = vadd.f32 %v4441_v23, %v4439_v45 }
 0xa93   :  { %v7003_v57 = vpop.eup %7002  ;;  %v4442_v18 = vmul.f32 %v7001_v1, %v6999_v44 }
 0xa94   :  { %v4440_v37 = vmul.f32 %v7003_v57, %v8779_v41  ;;  %7006 = vtanh.f32 %v4443_v7  ;;  %v7005_v60 = vpop.eup %7004 }
 0xa95   :  { %7008 = vrcp.f32 %v4434_v31 }
 0xa96   :  { %v4444_v50 = vadd.f32 %v4442_v18, %v4440_v37 }
 0xa98   :  { %7010 = vtanh.f32 %v4444_v50 }
 0xa9e   :  { %v7007_v30 = vpop.eup %7006 }
 0xa9f   :  { %v4447_v6 = vmul.f32 %v7007_v30, %v7005_v60  ;;  %v7009_v2 = vpop.eup %7008 }
 0xaa1   :  { %4754 = vmatprep.mubr.f32.mxu0 %v4447_v6 }
 0xaa2   :  { %v7011_v13 = vpop.eup %7010 }
 0xaa3   :  { %v4448_v55 = vmul.f32 %v7011_v13, %v7009_v2 }
 0xaa5   :  { %4755 = vmatmul.mubr.f32.vlgmr.msra.gmra.mrb[64].mxu0 %v4448_v55 }
 0xb78   :  { %v4756_v34 = vpop.f32.mrb[64].mxu0 }
 0xb79   :  { %v4544_v41 = vadd.f32 %v4756_v34, %v4703_v21  ;;  %v4538_v46 = vpop.f32.mrb[65].mxu0 }
 0xb7a   :  { %v4539_v51 = vadd.f32 %v4703_v21, %v4538_v46 }
 0xb7b   :  { %4548 = vst [vmem:[#allocation12 + $0x8] sm:$0xff] %v4544_v41 }
 0xb7c   :  { %4547 = vst [vmem:[#allocation12] sm:$0xff] %v4539_v51 }
 0xb7d   :  { %7133 = shalt.err (!%p7130_p2)
}
 0xb7e   :  { %s7134_s7 = scalar_lea.hbm %s8825_s8, 256 }
 0xb7f   :  { %p7135_p3 = scmp.ne.s32.totalorder %s8825_s8, %s7134_s7  ;;  %p7138_p4 = scmp.lt.u32.totalorder %s7134_s7, %s8825_s8 }
 0xb81   :  { %p7140_p5 = pnand %p7138_p4, %p7135_p3 }
 0xb83   :  { %7143 = shalt.err (!%p7140_p5)
}
 0xb84   :  { %4560 = dma.vmem_to_hbm [thread:$0]  %s4555_s29, 256, %s8825_s8, [#allocation5], %s7157_s4, %s7157_s4, %s7158_s20  }
 0xb85   :  { %7150 = dma.done.wait [#allocation5], 256  }
 0xb86   :  { %7151 = vsyncadd [#allocation5], 4294967040 }
 0xb87   :  { %4564 = vsyncpa [#allocation4], 1 }
 0xb88   :  { %4565 = vsyncpa [#allocation7], 1 }
 0xb89   :  { %4566 = vsyncpa [#allocation10], 1 }
 0xb8a   :  { %4567 = vsyncpa [#allocation5], 1 }

</bundles_post_ra>
